<compile_context>
chip_gen: v6e
topology: v6e:2x2x1
jax: 0.10.0
libtpu: 0.0.40
codegen_flags: <defaults>
</compile_context>

<pallas_src>
import functools

import jax
import jax.numpy as jnp
from jax.experimental import pallas as pl
from jax.experimental.pallas import tpu as pltpu


def _rbm_kernel(v_ref, w_ref, wt_ref, bh_ref, bv_ref, uh_ref, uv_ref,
                out_ref, *, k):
    """One batch tile of the RBM Gibbs chain.

    v_ref  : [TB, I]     f32   visible units (this batch tile)
    w_ref  : [H, I]      bf16  nn.Linear weight (VMEM-resident)
    wt_ref : [I, H]      bf16  pre-transposed weight (VMEM-resident)
    bh_ref : [1, H]      f32   hidden bias
    bv_ref : [1, I]      f32   visible bias (self.bias_b)
    uh_ref : [k, TB, H]  f32   uniforms for hidden bernoulli draws
    uv_ref : [k, TB, I]  f32   uniforms for visible bernoulli draws
    out_ref: [TB, I]     f32   v1 (last visible sample)
    """
    w = w_ref[...]        # bf16 [H, I]
    wt = wt_ref[...]      # bf16 [I, H]
    bh = bh_ref[...]      # f32  [1, H]
    bv = bv_ref[...]      # f32  [1, I]

    def sample_h_given_v(x, step):
        # F.linear(x, W, b_h) = x @ W^T + b_h   (W^T supplied pre-transposed)
        logits = jnp.dot(x, wt, preferred_element_type=jnp.float32) + bh
        p = jax.nn.sigmoid(logits)
        return (uh_ref[step] < p).astype(jnp.bfloat16)   # {0,1}, exact in bf16

    def sample_v_given_h(h, step):
        # F.linear(h, W^T, b_v) = h @ W + b_v
        logits = jnp.dot(h, w, preferred_element_type=jnp.float32) + bv
        p = jax.nn.sigmoid(logits)
        return (uv_ref[step] < p).astype(jnp.bfloat16)

    v0 = v_ref[...].astype(jnp.bfloat16)
    h = sample_h_given_v(v0, 0)                 # h1
    # k is a small static int -> unrolled.
    for step in range(k - 1):
        v1 = sample_v_given_h(h, step)
        h = sample_h_given_v(v1, step + 1)
    # Final Gibbs half-step.  The PyTorch loop also computes one more hidden
    # sample here, but it feeds nothing (only v1 is returned) -> dropped.
    v1 = sample_v_given_h(h, k - 1)

    out_ref[...] = v1.astype(out_ref.dtype)


def _pick_batch_tile(b):
    for t in (256, 128, 64, 32, 16, 8):
        if b % t == 0:
            return t
    return b


def rbm_forward(v, weight, hidden_bias, bias_b, key, k=1):
    """Run the RBM forward (Gibbs chain of length k) with a batch-tiled grid."""
    assert k >= 1, "RBM forward requires k >= 1 (matches the PyTorch module)"
    B, I = v.shape
    H = weight.shape[0]
    assert weight.shape == (H, I)

    tb = _pick_batch_tile(B)
    grid = (B // tb,)

    # bf16 weights for the MXU; accumulation stays f32 via preferred_element_type.
    w_bf = weight.astype(jnp.bfloat16)       # [H, I]
    wt_bf = weight.T.astype(jnp.bfloat16)    # [I, H]  (transposed once, host side)
    bh2d = hidden_bias.reshape(1, H).astype(jnp.float32)
    bv2d = bias_b.reshape(1, I).astype(jnp.float32)

    # Uniforms for the bernoulli draws (distribution matches torch.bernoulli;
    # the RNG stream differs, as any non-torch RNG would).
    k_h, k_v = jax.random.split(key)
    u_h = jax.random.uniform(k_h, (k, B, H), jnp.float32)
    u_v = jax.random.uniform(k_v, (k, B, I), jnp.float32)

    # Explicit scoped-VMEM budget: resident weights/biases + double-buffered tiles.
    bytes_resident = (w_bf.size + wt_bf.size) * 2 + (bh2d.size + bv2d.size) * 4
    bytes_tiles = 2 * 4 * (tb * I            # v tile
                           + tb * I          # out tile
                           + k * tb * H      # u_h tile
                           + k * tb * I)     # u_v tile
    vmem_limit = int(min(max(2 * (bytes_resident + bytes_tiles), 8 << 20), 32 << 20))

    kernel = functools.partial(_rbm_kernel, k=k)

    return pl.pallas_call(
        kernel,
        out_shape=jax.ShapeDtypeStruct((B, I), jnp.float32),
        grid=grid,
        in_specs=[
            pl.BlockSpec((tb, I), lambda b: (b, 0)),        # v      (batch-tiled)
            pl.BlockSpec((H, I), lambda b: (0, 0)),         # W      (resident)
            pl.BlockSpec((I, H), lambda b: (0, 0)),         # W^T    (resident)
            pl.BlockSpec((1, H), lambda b: (0, 0)),         # b_h    (resident)
            pl.BlockSpec((1, I), lambda b: (0, 0)),         # b_v    (resident)
            pl.BlockSpec((k, tb, H), lambda b: (0, b, 0)),  # u_h    (batch-tiled)
            pl.BlockSpec((k, tb, I), lambda b: (0, b, 0)),  # u_v    (batch-tiled)
        ],
        out_specs=pl.BlockSpec((tb, I), lambda b: (b, 0)),
        compiler_params=pltpu.CompilerParams(
            dimension_semantics=("parallel",),
            vmem_limit_bytes=vmem_limit,
        ),
    )(v.astype(jnp.float32), w_bf, wt_bf, bh2d, bv2d, u_h, u_v)


if __name__ == "__main__":
    # Small but MXU-friendly shapes: 128-row batch tiles, feature dims that are
    # multiples of 128 (lane axis).
    B, INPUT_SIZE, HIDDEN_SIZE, K = 256, 256, 128, 2

    key = jax.random.PRNGKey(0)
    k_w, k_b, k_v0, k_samp = jax.random.split(key, 4)

    # Deterministic init matching nn.Linear's U(-1/sqrt(I), 1/sqrt(I)) scheme.
    bound = 1.0 / (INPUT_SIZE ** 0.5)
    weight = jax.random.uniform(
        k_w, (HIDDEN_SIZE, INPUT_SIZE), jnp.float32, -bound, bound)
    hidden_bias = jax.random.uniform(
        k_b, (HIDDEN_SIZE,), jnp.float32, -bound, bound)
    bias_b = jnp.zeros((INPUT_SIZE,), jnp.float32)   # self.bias_b

    # Binary visible units, as an RBM would typically see.
    v = jax.random.bernoulli(k_v0, 0.5, (B, INPUT_SIZE)).astype(jnp.float32)

    out = rbm_forward(v, weight, hidden_bias, bias_b, key=k_samp, k=K)
    out = jax.block_until_ready(out)

    assert out.shape == (B, INPUT_SIZE)
    assert out.dtype == jnp.float32
    # Output of a Gibbs step must be binary {0, 1}.
    assert bool(jnp.all((out == 0.0) | (out == 1.0)))

    print("KERNEL_OK")
</pallas_src>

<mosaic_0001>
module attributes {stable_mosaic.version = 11 : i64} {
  func.func @_rbm_kernel(%arg0: i32, %arg1: memref<256x256xf32, #tpu.memory_space<vmem>>, %arg2: memref<128x256xbf16, #tpu.memory_space<vmem>>, %arg3: memref<256x128xbf16, #tpu.memory_space<vmem>>, %arg4: memref<1x128xf32, #tpu.memory_space<vmem>>, %arg5: memref<1x256xf32, #tpu.memory_space<vmem>>, %arg6: memref<2x256x128xf32, #tpu.memory_space<vmem>>, %arg7: memref<2x256x256xf32, #tpu.memory_space<vmem>>, %arg8: memref<256x256xf32, #tpu.memory_space<vmem>>) attributes {dimension_semantics = [#tpu.dimension_semantics<parallel>], iteration_bounds = array<i64: 1>, scalar_prefetch = 0 : i64, scratch_operands = 0 : i64, tpu.core_type = #tpu.core_type<tc>, window_params = [{transform_indices = @transform_0, window_bounds = array<i64: 256, 256>}, {pipeline_mode = #tpu.pipeline_mode<synchronous>, transform_indices = @transform_1, window_bounds = array<i64: 128, 256>}, {pipeline_mode = #tpu.pipeline_mode<synchronous>, transform_indices = @transform_2, window_bounds = array<i64: 256, 128>}, {pipeline_mode = #tpu.pipeline_mode<synchronous>, transform_indices = @transform_3, window_bounds = array<i64: 1, 128>}, {pipeline_mode = #tpu.pipeline_mode<synchronous>, transform_indices = @transform_4, window_bounds = array<i64: 1, 256>}, {transform_indices = @transform_5, window_bounds = array<i64: 2, 256, 128>}, {transform_indices = @transform_6, window_bounds = array<i64: 2, 256, 256>}, {transform_indices = @transform_7, window_bounds = array<i64: 256, 256>}]} {
    %c0 = arith.constant 0 : index
    %c0_0 = arith.constant 0 : index
    %0 = vector.load %arg2[%c0, %c0_0] : memref<128x256xbf16, #tpu.memory_space<vmem>>, vector<128x256xbf16>
    %c0_1 = arith.constant 0 : index
    %c0_2 = arith.constant 0 : index
    %1 = vector.load %arg3[%c0_1, %c0_2] : memref<256x128xbf16, #tpu.memory_space<vmem>>, vector<256x128xbf16>
    %c0_3 = arith.constant 0 : index
    %c0_4 = arith.constant 0 : index
    %2 = vector.load %arg4[%c0_3, %c0_4] : memref<1x128xf32, #tpu.memory_space<vmem>>, vector<1x128xf32>
    %c0_5 = arith.constant 0 : index
    %c0_6 = arith.constant 0 : index
    %3 = vector.load %arg5[%c0_5, %c0_6] : memref<1x256xf32, #tpu.memory_space<vmem>>, vector<1x256xf32>
    %c0_7 = arith.constant 0 : index
    %c0_8 = arith.constant 0 : index
    %4 = vector.load %arg1[%c0_7, %c0_8] : memref<256x256xf32, #tpu.memory_space<vmem>>, vector<256x256xf32>
    %5 = arith.truncf %4 : vector<256x256xf32> to vector<256x256xbf16>
    %cst = arith.constant dense<0.000000e+00> : vector<256x128xf32>
    %6 = tpu.matmul %5, %1, %cst {dimension_numbers = #tpu.dot_dimension_numbers<[1], [0], [0], [1], [0, 0, 1, 1], [], []>} : vector<256x256xbf16>, vector<256x128xbf16>, vector<256x128xf32> -> vector<256x128xf32>
    %7 = vector.broadcast %2 : vector<1x128xf32> to vector<256x128xf32>
    %8 = arith.addf %6, %7 : vector<256x128xf32>
    %9 = arith.negf %8 : vector<256x128xf32>
    %10 = math.exp %9 : vector<256x128xf32>
    %cst_9 = arith.constant 1.000000e+00 : f32
    %11 = vector.broadcast %cst_9 : f32 to vector<256x128xf32>
    %12 = arith.addf %11, %10 : vector<256x128xf32>
    %13 = arith.divf %11, %12 : vector<256x128xf32>
    %c0_10 = arith.constant 0 : index
    %c0_11 = arith.constant 0 : index
    %c0_12 = arith.constant 0 : index
    %14 = vector.load %arg6[%c0_10, %c0_11, %c0_12] : memref<2x256x128xf32, #tpu.memory_space<vmem>>, vector<1x256x128xf32>
    %15 = vector.shape_cast %14 : vector<1x256x128xf32> to vector<256x128xf32>
    %16 = arith.cmpf olt, %15, %13 : vector<256x128xf32>
    %17 = arith.extui %16 : vector<256x128xi1> to vector<256x128xi32>
    %18 = arith.sitofp %17 : vector<256x128xi32> to vector<256x128xf32>
    %19 = arith.truncf %18 : vector<256x128xf32> to vector<256x128xbf16>
    %cst_13 = arith.constant dense<0.000000e+00> : vector<256x256xf32>
    %20 = tpu.matmul %19, %0, %cst_13 {dimension_numbers = #tpu.dot_dimension_numbers<[1], [0], [0], [1], [0, 0, 1, 1], [], []>} : vector<256x128xbf16>, vector<128x256xbf16>, vector<256x256xf32> -> vector<256x256xf32>
    %21 = vector.broadcast %3 : vector<1x256xf32> to vector<256x256xf32>
    %22 = arith.addf %20, %21 : vector<256x256xf32>
    %23 = arith.negf %22 : vector<256x256xf32>
    %24 = math.exp %23 : vector<256x256xf32>
    %cst_14 = arith.constant 1.000000e+00 : f32
    %25 = vector.broadcast %cst_14 : f32 to vector<256x256xf32>
    %26 = arith.addf %25, %24 : vector<256x256xf32>
    %27 = arith.divf %25, %26 : vector<256x256xf32>
    %c0_15 = arith.constant 0 : index
    %c0_16 = arith.constant 0 : index
    %c0_17 = arith.constant 0 : index
    %28 = vector.load %arg7[%c0_15, %c0_16, %c0_17] : memref<2x256x256xf32, #tpu.memory_space<vmem>>, vector<1x256x256xf32>
    %29 = vector.shape_cast %28 : vector<1x256x256xf32> to vector<256x256xf32>
    %30 = arith.cmpf olt, %29, %27 : vector<256x256xf32>
    %31 = arith.extui %30 : vector<256x256xi1> to vector<256x256xi32>
    %32 = arith.sitofp %31 : vector<256x256xi32> to vector<256x256xf32>
    %33 = arith.truncf %32 : vector<256x256xf32> to vector<256x256xbf16>
    %cst_18 = arith.constant dense<0.000000e+00> : vector<256x128xf32>
    %34 = tpu.matmul %33, %1, %cst_18 {dimension_numbers = #tpu.dot_dimension_numbers<[1], [0], [0], [1], [0, 0, 1, 1], [], []>} : vector<256x256xbf16>, vector<256x128xbf16>, vector<256x128xf32> -> vector<256x128xf32>
    %35 = vector.broadcast %2 : vector<1x128xf32> to vector<256x128xf32>
    %36 = arith.addf %34, %35 : vector<256x128xf32>
    %37 = arith.negf %36 : vector<256x128xf32>
    %38 = math.exp %37 : vector<256x128xf32>
    %cst_19 = arith.constant 1.000000e+00 : f32
    %39 = vector.broadcast %cst_19 : f32 to vector<256x128xf32>
    %40 = arith.addf %39, %38 : vector<256x128xf32>
    %41 = arith.divf %39, %40 : vector<256x128xf32>
    %c1 = arith.constant 1 : index
    %c0_20 = arith.constant 0 : index
    %c0_21 = arith.constant 0 : index
    %42 = vector.load %arg6[%c1, %c0_20, %c0_21] : memref<2x256x128xf32, #tpu.memory_space<vmem>>, vector<1x256x128xf32>
    %43 = vector.shape_cast %42 : vector<1x256x128xf32> to vector<256x128xf32>
    %44 = arith.cmpf olt, %43, %41 : vector<256x128xf32>
    %45 = arith.extui %44 : vector<256x128xi1> to vector<256x128xi32>
    %46 = arith.sitofp %45 : vector<256x128xi32> to vector<256x128xf32>
    %47 = arith.truncf %46 : vector<256x128xf32> to vector<256x128xbf16>
    %cst_22 = arith.constant dense<0.000000e+00> : vector<256x256xf32>
    %48 = tpu.matmul %47, %0, %cst_22 {dimension_numbers = #tpu.dot_dimension_numbers<[1], [0], [0], [1], [0, 0, 1, 1], [], []>} : vector<256x128xbf16>, vector<128x256xbf16>, vector<256x256xf32> -> vector<256x256xf32>
    %49 = vector.broadcast %3 : vector<1x256xf32> to vector<256x256xf32>
    %50 = arith.addf %48, %49 : vector<256x256xf32>
    %51 = arith.negf %50 : vector<256x256xf32>
    %52 = math.exp %51 : vector<256x256xf32>
    %cst_23 = arith.constant 1.000000e+00 : f32
    %53 = vector.broadcast %cst_23 : f32 to vector<256x256xf32>
    %54 = arith.addf %53, %52 : vector<256x256xf32>
    %55 = arith.divf %53, %54 : vector<256x256xf32>
    %c1_24 = arith.constant 1 : index
    %c0_25 = arith.constant 0 : index
    %c0_26 = arith.constant 0 : index
    %56 = vector.load %arg7[%c1_24, %c0_25, %c0_26] : memref<2x256x256xf32, #tpu.memory_space<vmem>>, vector<1x256x256xf32>
    %57 = vector.shape_cast %56 : vector<1x256x256xf32> to vector<256x256xf32>
    %58 = arith.cmpf olt, %57, %55 : vector<256x256xf32>
    %59 = arith.extui %58 : vector<256x256xi1> to vector<256x256xi32>
    %60 = arith.sitofp %59 : vector<256x256xi32> to vector<256x256xf32>
    %61 = arith.truncf %60 : vector<256x256xf32> to vector<256x256xbf16>
    %62 = arith.extf %61 : vector<256x256xbf16> to vector<256x256xf32>
    %c0_27 = arith.constant 0 : index
    %c0_28 = arith.constant 0 : index
    %63 = vector.load %arg8[%c0_27, %c0_28] : memref<256x256xf32, #tpu.memory_space<vmem>>, vector<256x256xf32>
    tpu.vector_store %arg8[%c0_27, %c0_28], %62 {strides = array<i32>} : memref<256x256xf32, #tpu.memory_space<vmem>>, vector<256x256xf32>,
    return
  }
  func.func @transform_0(%arg0: i32) -> (i32, i32) {
    %c0_i32 = arith.constant 0 : i32
    %c0_i32_0 = arith.constant 0 : i32
    return %arg0, %c0_i32 : i32, i32
  }
  func.func @transform_1(%arg0: i32) -> (i32, i32) {
    %c0_i32 = arith.constant 0 : i32
    %c0_i32_0 = arith.constant 0 : i32
    %c0_i32_1 = arith.constant 0 : i32
    return %c0_i32, %c0_i32_0 : i32, i32
  }
  func.func @transform_2(%arg0: i32) -> (i32, i32) {
    %c0_i32 = arith.constant 0 : i32
    %c0_i32_0 = arith.constant 0 : i32
    %c0_i32_1 = arith.constant 0 : i32
    return %c0_i32, %c0_i32_0 : i32, i32
  }
  func.func @transform_3(%arg0: i32) -> (i32, i32) {
    %c0_i32 = arith.constant 0 : i32
    %c0_i32_0 = arith.constant 0 : i32
    %c0_i32_1 = arith.constant 0 : i32
    return %c0_i32, %c0_i32_0 : i32, i32
  }
  func.func @transform_4(%arg0: i32) -> (i32, i32) {
    %c0_i32 = arith.constant 0 : i32
    %c0_i32_0 = arith.constant 0 : i32
    %c0_i32_1 = arith.constant 0 : i32
    return %c0_i32, %c0_i32_0 : i32, i32
  }
  func.func @transform_5(%arg0: i32) -> (i32, i32, i32) {
    %c0_i32 = arith.constant 0 : i32
    %c0_i32_0 = arith.constant 0 : i32
    %c0_i32_1 = arith.constant 0 : i32
    return %c0_i32, %arg0, %c0_i32_0 : i32, i32, i32
  }
  func.func @transform_6(%arg0: i32) -> (i32, i32, i32) {
    %c0_i32 = arith.constant 0 : i32
    %c0_i32_0 = arith.constant 0 : i32
    %c0_i32_1 = arith.constant 0 : i32
    return %c0_i32, %arg0, %c0_i32_0 : i32, i32, i32
  }
  func.func @transform_7(%arg0: i32) -> (i32, i32) {
    %c0_i32 = arith.constant 0 : i32
    %c0_i32_0 = arith.constant 0 : i32
    return %arg0, %c0_i32 : i32, i32
  }
}

</mosaic_0001>

<bundles_post_ra>
// kernel: tpu_custom_call.1
= control target key start
LH: loop header
LB: loop body
LE: loop exit
PB: predicated region body
PF: predicated region fallthrough
CT: control target
= control target key end

     0   :  { %12 = vsyncpa [#allocation3], 0  ;;  %s5555_s0 = inlined_call_operand.hbm [shape: f32[256,256], index: 0, kind: input, shape index: {}]   ;;  %s5556_s1 = inlined_call_operand.hbm [shape: bf16[128,256], index: 1, kind: input, shape index: {}]   ;;  %s5557_s2 = inlined_call_operand.hbm [shape: bf16[256,128], index: 2, kind: input, shape index: {}]   ;;  %s5558_s3 = inlined_call_operand.vmem [shape: f32[1,128], index: 3, kind: input, shape index: {}]   ;;  %s5559_s4 = inlined_call_operand.vmem [shape: f32[1,256], index: 4, kind: input, shape index: {}]   ;;  %s5560_s5 = inlined_call_operand.hbm [shape: f32[2,256,128], index: 5, kind: input, shape index: {}]   ;;  %s5561_s6 = inlined_call_operand.hbm [shape: f32[2,256,256], index: 6, kind: input, shape index: {}]   ;;  %s5562_s7 = inlined_call_operand.hbm [shape: f32[256,256], index: 7, kind: output, shape index: {}]  }
   0x1   :  { %13 = vsyncpa [#allocation6], 0 }
   0x2   :  { %14 = vsyncpa [#allocation9], 0 }
   0x3   :  { %15 = vsyncpa [#allocation4], 0  ;;  %s5029_s24 = smov [#allocation5]  }
   0x4   :  { %s33_s25 = sshll.u32 %s5029_s24, 4  ;;  %s34_s25 = int_to_ptr.vmem [resolvable:$true] %s33_s25 }
   0x5   :  { %s4909_s26 = scalar_lea.vmem %s34_s25, 2048  ;;  %p4914_p1 = scmp.lt.s32.totalorder %s34_s25, %s34_s25 }
   0x6   :  { %p4910_p0 = scmp.ne.s32.totalorder %s34_s25, %s4909_s26  ;;  %p4915_p2 = scmp.lt.s32.totalorder %s4909_s26, %s4909_s26 }
   0x8   :  { %p4916_p3 = por %p4915_p2, %p4914_p1 }
   0xa   :  { %p4917_p4 = pnand %p4916_p3, %p4910_p0 }
   0xc   :  { %4920 = shalt.err (!%p4917_p4)
}
   0xd   :  { %s5030_s27 = smov 128   ;;  %s5031_s28 = smov 8  }
   0xe   :  { %39 = dma.hbm_to_vmem [thread:$0]  %s5556_s1, 2048, %s34_s25, [#allocation6], %s5030_s27, %s5030_s27, %s5031_s28  }
   0xf   :  { %s5032_s8 = smov [#allocation8]   ;;  %s5033_s10 = smov [#allocation2]  }
  0x10   :  { %s61_s9 = sshll.u32 %s5032_s8, 4  ;;  %s21_s11 = sshll.u32 %s5033_s10, 4  ;;  %s62_s9 = int_to_ptr.vmem [resolvable:$true] %s61_s9  ;;  %s22_s11 = int_to_ptr.vmem [resolvable:$true] %s21_s11 }
  0x11   :  { %s4929_s12 = scalar_lea.vmem %s62_s9, 8192  ;;  %p4934_p6 = scmp.lt.s32.totalorder %s62_s9, %s62_s9 }
  0x12   :  { %p4930_p5 = scmp.ne.s32.totalorder %s62_s9, %s4929_s12  ;;  %p4935_p7 = scmp.lt.s32.totalorder %s4929_s12, %s4929_s12 }
  0x14   :  { %p4936_p8 = por %p4935_p7, %p4934_p6 }
  0x16   :  { %p4937_p9 = pnand %p4936_p8, %p4930_p5 }
  0x18   :  { %4940 = shalt.err (!%p4937_p9)
}
  0x19   :  { %67 = dma.hbm_to_vmem [thread:$0]  %s5560_s5, 8192, %s62_s9, [#allocation9], %s5030_s27, %s5030_s27, %s5031_s28  }
  0x1a   :  { %s4949_s15 = scalar_lea.vmem %s22_s11, 8192  ;;  %p4954_p11 = scmp.lt.s32.totalorder %s22_s11, %s22_s11 }
  0x1b   :  { %p4950_p10 = scmp.ne.s32.totalorder %s22_s11, %s4949_s15  ;;  %p4955_p12 = scmp.lt.s32.totalorder %s4949_s15, %s4949_s15 }
  0x1d   :  { %p4956_p13 = por %p4955_p12, %p4954_p11 }
  0x1f   :  { %p4957_p0 = pnand %p4956_p13, %p4950_p10 }
  0x21   :  { %4960 = shalt.err (!%p4957_p0)
}
  0x22   :  { %s5034_s1 = smov 256   ;;  %s5035_s16 = smov 16  }
  0x23   :  { %27 = dma.hbm_to_vmem [thread:$0]  %s5555_s0, 8192, %s22_s11, [#allocation3], %s5034_s1, %s5034_s1, %s5035_s16  }
  0x24   :  { %s5036_s19 = smov [#allocation7]  }
  0x25   :  { %s45_s20 = sshll.u32 %s5036_s19, 4  ;;  %s46_s20 = int_to_ptr.vmem [resolvable:$true] %s45_s20 }
  0x26   :  { %s4969_s5 = scalar_lea.vmem %s46_s20, 2048  ;;  %p4974_p2 = scmp.lt.s32.totalorder %s46_s20, %s46_s20 }
  0x27   :  { %p4970_p1 = scmp.ne.s32.totalorder %s46_s20, %s4969_s5  ;;  %p4975_p3 = scmp.lt.s32.totalorder %s4969_s5, %s4969_s5 }
  0x29   :  { %p4976_p4 = por %p4975_p3, %p4974_p2 }
  0x2b   :  { %p4977_p5 = pnand %p4976_p4, %p4970_p1 }
  0x2d   :  { %4980 = shalt.err (!%p4977_p5)
}
  0x2e   :  { %s5037_s21 = smov 64   ;;  %s5038_s22 = smov 4  }
  0x2f   :  { %51 = dma.hbm_to_vmem [thread:$0]  %s5557_s2, 2048, %s46_s20, [#allocation6], %s5037_s21, %s5037_s21, %s5038_s22  }
  0x30   :  { %s5039_s25 = smov [#allocation10]  }
  0x31   :  { %s73_s26 = sshll.u32 %s5039_s25, 4  ;;  %s74_s26 = int_to_ptr.vmem [resolvable:$true] %s73_s26 }
  0x32   :  { %s4989_s0 = scalar_lea.vmem %s74_s26, 16384  ;;  %p4994_p7 = scmp.lt.s32.totalorder %s74_s26, %s74_s26 }
  0x33   :  { %p4990_p6 = scmp.ne.s32.totalorder %s74_s26, %s4989_s0  ;;  %p4995_p8 = scmp.lt.s32.totalorder %s4989_s0, %s4989_s0 }
  0x35   :  { %p4996_p9 = por %p4995_p8, %p4994_p7 }
  0x37   :  { %p4997_p10 = pnand %p4996_p9, %p4990_p6 }
  0x39   :  { %5000 = shalt.err (!%p4997_p10)
}
  0x3a   :  { %79 = dma.hbm_to_vmem [thread:$0]  %s5561_s6, 16384, %s74_s26, [#allocation9], %s5034_s1, %s5034_s1, %s5035_s16  }
  0x3b   :  { %5021 = dma.done.wait [#allocation3], 8192  }
  0x3c   :  { %5022 = vsyncadd [#allocation3], 4294959104 }
  0x3d   :  { %5023 = dma.done.wait [#allocation6], 4096  }
  0x3e   :  { %5024 = vsyncadd [#allocation6], 4294963200 }
  0x3f   :  { %5025 = dma.done.wait [#allocation9], 24576  }
  0x40   :  { %5026 = vsyncadd [#allocation9], 4294942720  ;;  %v4092_v0 = vld [vmem:[#allocation7 + $0x78] sm:$0xff]   ;;  %v4094_v2 = vld [vmem:[#allocation7 + $0x70] sm:$0xff]  }
  0x41   :  { %v4093_v1 = vld [vmem:[#allocation7 + $0x38] sm:$0xff]   ;;  %3853 = vmatprep.subr.bf16.mxu0 %v4092_v0  ;;  %v4095_v3 = vld [vmem:[#allocation7 + $0x30] sm:$0xff]   ;;  %v4096_v4 = vld [vmem:[#allocation7 + $0x68] sm:$0xff]  }
  0x42   :  { %3854 = vmatpush3.bf16.msra.mxu0 %v4093_v1  ;;  %v4097_v5 = vld [vmem:[#allocation7 + $0x28] sm:$0xff]   ;;  %v4098_v6 = vld [vmem:[#allocation7 + $0x60] sm:$0xff]   ;;  %v4100_v8 = vld [vmem:[#allocation7 + $0x58] sm:$0xff]  }
  0x43   :  { %3855 = vmatprep.subr.bf16.mxu0 %v4094_v2  ;;  %v4099_v7 = vld [vmem:[#allocation7 + $0x20] sm:$0xff]   ;;  %v4101_v9 = vld [vmem:[#allocation7 + $0x18] sm:$0xff]   ;;  %v4102_v10 = vld [vmem:[#allocation7 + $0x50] sm:$0xff]  }
  0x44   :  { %v147_v11 = vld [vmem:[#allocation2 + $0x8] sm:$0xff]  ;;  %v149_v12 = vld [vmem:[#allocation2 + $0x18] sm:$0xff]  ;;  %v4103_v14 = vld [vmem:[#allocation7 + $0x10] sm:$0xff]  }
  0x45   :  { %v211_v13 = vpack.c.bf16 %v149_v12, %v147_v11  ;;  %v4104_v15 = vld [vmem:[#allocation7 + $0x48] sm:$0xff]   ;;  %v4106_v17 = vld [vmem:[#allocation7 + $0x40] sm:$0xff]   ;;  %v148_v20 = vld [vmem:[#allocation2 + $0x10] sm:$0xff] }
  0x46   :  { %3856 = vmatpush3.bf16.msra.mxu0 %v4095_v3  ;;  %v4105_v16 = vld [vmem:[#allocation7 + $0x8] sm:$0xff]   ;;  %v4107_v18 = vld [vmem:[#allocation7] sm:$0xff]   ;;  %v153_v22 = vld [vmem:[#allocation2 + $0x38] sm:$0xff] }
  0x47   :  { %3857 = vmatprep.subr.bf16.mxu0 %v4096_v4  ;;  %376 = vmatprep.mubr.bf16.mxu0 %v211_v13  ;;  %v146_v19 = vld [vmem:[#allocation2] sm:$0xff]  ;;  %v151_v21 = vld [vmem:[#allocation2 + $0x28] sm:$0xff]  ;;  %v152_v26 = vld [vmem:[#allocation2 + $0x30] sm:$0xff] }
  0x48   :  { %v210_v23 = vpack.c.bf16 %v148_v20, %v146_v19  ;;  %v213_v24 = vpack.c.bf16 %v153_v22, %v151_v21  ;;  %v150_v25 = vld [vmem:[#allocation2 + $0x20] sm:$0xff]  ;;  %v155_v27 = vld [vmem:[#allocation2 + $0x48] sm:$0xff]  ;;  %v157_v28 = vld [vmem:[#allocation2 + $0x58] sm:$0xff] }
  0x49   :  { %v212_v29 = vpack.c.bf16 %v152_v26, %v150_v25  ;;  %v215_v30 = vpack.c.bf16 %v157_v28, %v155_v27  ;;  %v154_v31 = vld [vmem:[#allocation2 + $0x40] sm:$0xff]  ;;  %v156_v32 = vld [vmem:[#allocation2 + $0x50] sm:$0xff]  ;;  %v159_v33 = vld [vmem:[#allocation2 + $0x68] sm:$0xff] }
  0x4a   :  { %3858 = vmatpush3.bf16.msra.mxu0 %v4097_v5  ;;  %v161_v34 = vld [vmem:[#allocation2 + $0x78] sm:$0xff]  ;;  %v214_v35 = vpack.c.bf16 %v156_v32, %v154_v31  ;;  %v158_v37 = vld [vmem:[#allocation2 + $0x60] sm:$0xff]  ;;  %v160_v38 = vld [vmem:[#allocation2 + $0x70] sm:$0xff] }
  0x4b   :  { %3859 = vmatprep.subr.bf16.mxu0 %v4098_v6  ;;  %v217_v36 = vpack.c.bf16 %v161_v34, %v159_v33  ;;  %v163_v39 = vld [vmem:[#allocation2 + $0x88] sm:$0xff]  ;;  %v165_v40 = vld [vmem:[#allocation2 + $0x98] sm:$0xff]  ;;  %v216_v41 = vpack.c.bf16 %v160_v38, %v158_v37  ;;  %v162_v43 = vld [vmem:[#allocation2 + $0x80] sm:$0xff] }
  0x4c   :  { %v219_v42 = vpack.c.bf16 %v165_v40, %v163_v39  ;;  %v164_v44 = vld [vmem:[#allocation2 + $0x90] sm:$0xff]  ;;  %v167_v45 = vld [vmem:[#allocation2 + $0xa8] sm:$0xff]  ;;  %v169_v46 = vld [vmem:[#allocation2 + $0xb8] sm:$0xff] }
  0x4d   :  { %v218_v47 = vpack.c.bf16 %v164_v44, %v162_v43  ;;  %v221_v48 = vpack.c.bf16 %v169_v46, %v167_v45  ;;  %v166_v49 = vld [vmem:[#allocation2 + $0xa0] sm:$0xff]  ;;  %v168_v50 = vld [vmem:[#allocation2 + $0xb0] sm:$0xff]  ;;  %v171_v51 = vld [vmem:[#allocation2 + $0xc8] sm:$0xff] }
  0x4e   :  { %3860 = vmatpush3.bf16.msra.mxu0 %v4099_v7  ;;  %v173_v52 = vld [vmem:[#allocation2 + $0xd8] sm:$0xff]  ;;  %v220_v53 = vpack.c.bf16 %v168_v50, %v166_v49  ;;  %v170_v55 = vld [vmem:[#allocation2 + $0xc0] sm:$0xff]  ;;  %v172_v56 = vld [vmem:[#allocation2 + $0xd0] sm:$0xff] }
  0x4f   :  { %3861 = vmatprep.subr.bf16.mxu0 %v4100_v8  ;;  %v223_v54 = vpack.c.bf16 %v173_v52, %v171_v51  ;;  %v175_v57 = vld [vmem:[#allocation2 + $0xe8] sm:$0xff]  ;;  %v177_v58 = vld [vmem:[#allocation2 + $0xf8] sm:$0xff]  ;;  %v222_v59 = vpack.c.bf16 %v172_v56, %v170_v55  ;;  %v174_v61 = vld [vmem:[#allocation2 + $0xe0] sm:$0xff] }
  0x50   :  { %v225_v60 = vpack.c.bf16 %v177_v58, %v175_v57  ;;  %v176_v62 = vld [vmem:[#allocation2 + $0xf0] sm:$0xff]  ;;  %v179_v63 = vld [vmem:[#allocation2 + $0x108] sm:$0xff]  ;;  %v189_v12 = vld [vmem:[#allocation2 + $0x158] sm:$0xff] }
  0x51   :  { %v187_v11 = vld [vmem:[#allocation2 + $0x148] sm:$0xff]  ;;  %v5105_v19 = vld [vmem:[#allocation5 + $0x74] ss:$8 sps:$4 sm:$0xff]   ;;  %v5107_v21 = vld [vmem:[#allocation5 + $0x70] ss:$8 sps:$4 sm:$0xff]  }
  0x52   :  { %3862 = vmatpush3.bf16.msra.mxu0 %v4101_v9  ;;  %932 = vmatprep.subr.bf16.mxu1 %v5105_v19  ;;  %v192_v25 = vld [vmem:[#allocation2 + $0x170] sm:$0xff]  ;;  %v5114_v26 = vld [vmem:[#allocation5 + $0x60] ss:$8 sps:$4 sm:$0xff]   ;;  %v197_v28 = vld [vmem:[#allocation2 + $0x198] sm:$0xff] }
  0x53   :  { %3863 = vmatprep.subr.bf16.mxu0 %v4102_v10  ;;  %933 = vmatpush1.bf16.msra.mxu1 %v5107_v21  ;;  %v195_v27 = vld [vmem:[#allocation2 + $0x188] sm:$0xff]  ;;  %v5119_v32 = vld [vmem:[#allocation5 + $0x50] ss:$8 sps:$4 sm:$0xff]   ;;  %v194_v34 = vld [vmem:[#allocation2 + $0x180] sm:$0xff] }
  0x54   :  { %v235_v31 = vpack.c.bf16 %v197_v28, %v195_v27  ;;  %v5123_v33 = vld [vmem:[#allocation5 + $0x44] ss:$8 sps:$4 sm:$0xff]   ;;  %v201_v38 = vld [vmem:[#allocation2 + $0x1b8] sm:$0xff]  ;;  %v200_v45 = vld [vmem:[#allocation2 + $0x1b0] sm:$0xff] }
  0x55   :  { %v199_v37 = vld [vmem:[#allocation2 + $0x1a8] sm:$0xff]  ;;  %v5129_v40 = vld [vmem:[#allocation5 + $0x34] ss:$8 sps:$4 sm:$0xff]   ;;  %v198_v44 = vld [vmem:[#allocation2 + $0x1a0] sm:$0xff] }
  0x56   :  { %3864 = vmatpush3.bf16.msra.mxu0 %v4103_v14  ;;  %v5135_v43 = vld [vmem:[#allocation5 + $0x24] ss:$8 sps:$4 sm:$0xff]   ;;  %v5137_v46 = vld [vmem:[#allocation5 + $0x20] ss:$8 sps:$4 sm:$0xff]   ;;  %v236_v49 = vpack.c.bf16 %v200_v45, %v198_v44  ;;  %v5141_v50 = vld [vmem:[#allocation5 + $0x14] ss:$8 sps:$4 sm:$0xff]  }
  0x57   :  { %3865 = vmatprep.subr.bf16.mxu0 %v4104_v15  ;;  %v5143_v52 = vld [vmem:[#allocation5 + $0x10] ss:$8 sps:$4 sm:$0xff]   ;;  %v5149_v56 = vld [vmem:[#allocation5] ss:$8 sps:$4 sm:$0xff]  }
  0x58   :  { %v204_v55 = vld [vmem:[#allocation2 + $0x1d0] sm:$0xff]  ;;  %v207_v57 = vld [vmem:[#allocation2 + $0x1e8] sm:$0xff]  ;;  %v209_v58 = vld [vmem:[#allocation2 + $0x1f8] sm:$0xff] }
  0x5a   :  { %3866 = vmatpush3.bf16.msra.mxu0 %v4105_v16 }
  0x5b   :  { %3867 = vmatprep.subr.bf16.mxu0 %v4106_v17 }
  0x5e   :  { %3868 = vmatpush3.bf16.msra.mxu0 %v4107_v18 }
  0x5f   :  { %3965 = vmatprep.subr.bf16.mxu0 %v4092_v0  ;;  %v181_v0 = vld [vmem:[#allocation2 + $0x118] sm:$0xff] }
  0x61   :  { %377 = vmatmul.mubr.bf16.vlgmr.msra.gmra.mxu0 %v210_v23  ;;  %v5111_v23 = vld [vmem:[#allocation5 + $0x64] ss:$8 sps:$4 sm:$0xff]  }
  0x62   :  { %384 = vmatprep.mubr.bf16.mxu0 %v213_v24  ;;  %3966 = vmatpush3.bf16.msra.mxu0 %v4093_v1  ;;  %v224_v1 = vpack.c.bf16 %v176_v62, %v174_v61  ;;  %v190_v24 = vld [vmem:[#allocation2 + $0x160] sm:$0xff]  ;;  %v5040_v61 = vmov 0  }
  0x63   :  { %3967 = vmatprep.subr.bf16.mxu0 %v4094_v2  ;;  %v227_v2 = vpack.c.bf16 %v181_v0, %v179_v63  ;;  %934 = vmatprep.subr.bf16.mxu1 %v5111_v23  ;;  %v206_v62 = vld [vmem:[#allocation2 + $0x1e0] sm:$0xff]  ;;  %v208_v63 = vld [vmem:[#allocation2 + $0x1f0] sm:$0xff] }
  0x64   :  { %935 = vmatpush1.bf16.msra.mxu1 %v5114_v26  ;;  %964 = vmatprep.mubr.bf16.mxu1 %v5040_v61  ;;  %v240_v0 = vpack.c.bf16 %v208_v63, %v206_v62 }
  0x66   :  { %3968 = vmatpush3.bf16.msra.mxu0 %v4095_v3  ;;  %v178_v3 = vld [vmem:[#allocation2 + $0x100] sm:$0xff] }
  0x67   :  { %3969 = vmatprep.subr.bf16.mxu0 %v4096_v4  ;;  %v180_v4 = vld [vmem:[#allocation2 + $0x110] sm:$0xff] }
  0x69   :  { %385 = vmatmul.mubr.bf16.gmra.mxu0 %v212_v29  ;;  %v232_v29 = vpack.c.bf16 %v192_v25, %v190_v24 }
  0x6a   :  { %392 = vmatprep.mubr.bf16.mxu0 %v215_v30  ;;  %3970 = vmatpush3.bf16.msra.mxu0 %v4097_v5  ;;  %v183_v5 = vld [vmem:[#allocation2 + $0x128] sm:$0xff]  ;;  %v5117_v30 = vld [vmem:[#allocation5 + $0x54] ss:$8 sps:$4 sm:$0xff]  }
  0x6b   :  { %3971 = vmatprep.subr.bf16.mxu0 %v4098_v6  ;;  %v185_v6 = vld [vmem:[#allocation2 + $0x138] sm:$0xff]  ;;  %936 = vmatprep.subr.bf16.mxu1 %v5117_v30 }
  0x6c   :  { %937 = vmatpush1.bf16.msra.mxu1 %v5119_v32 }
  0x6d   :  { %938 = vmatprep.subr.bf16.mxu1 %v5123_v33 }
  0x6e   :  { %3972 = vmatpush3.bf16.msra.mxu0 %v4099_v7  ;;  %v226_v7 = vpack.c.bf16 %v180_v4, %v178_v3 }
  0x6f   :  { %3973 = vmatprep.subr.bf16.mxu0 %v4100_v8  ;;  %v229_v8 = vpack.c.bf16 %v185_v6, %v183_v5 }
  0x71   :  { %393 = vmatmul.mubr.bf16.gmra.mxu0 %v214_v35  ;;  %v196_v35 = vld [vmem:[#allocation2 + $0x190] sm:$0xff] }
  0x72   :  { %400 = vmatprep.mubr.bf16.mxu0 %v217_v36  ;;  %3974 = vmatpush3.bf16.msra.mxu0 %v4101_v9  ;;  %v182_v9 = vld [vmem:[#allocation2 + $0x120] sm:$0xff]  ;;  %v234_v39 = vpack.c.bf16 %v196_v35, %v194_v34 }
  0x73   :  { %3975 = vmatprep.subr.bf16.mxu0 %v4102_v10  ;;  %v184_v10 = vld [vmem:[#allocation2 + $0x130] sm:$0xff]  ;;  %v5125_v36 = vld [vmem:[#allocation5 + $0x40] ss:$8 sps:$4 sm:$0xff]  }
  0x74   :  { %v228_v13 = vpack.c.bf16 %v184_v10, %v182_v9  ;;  %939 = vmatpush1.bf16.msra.mxu1 %v5125_v36 }
  0x75   :  { %940 = vmatprep.subr.bf16.mxu1 %v5129_v40 }
  0x76   :  { %3976 = vmatpush3.bf16.msra.mxu0 %v4103_v14  ;;  %v231_v14 = vpack.c.bf16 %v189_v12, %v187_v11 }
  0x77   :  { %3977 = vmatprep.subr.bf16.mxu0 %v4104_v15  ;;  %v186_v15 = vld [vmem:[#allocation2 + $0x140] sm:$0xff] }
  0x79   :  { %401 = vmatmul.mubr.bf16.gmra.mxu0 %v216_v41  ;;  %v237_v41 = vpack.c.bf16 %v201_v38, %v199_v37 }
  0x7a   :  { %408 = vmatprep.mubr.bf16.mxu0 %v219_v42  ;;  %3978 = vmatpush3.bf16.msra.mxu0 %v4105_v16  ;;  %v188_v16 = vld [vmem:[#allocation2 + $0x150] sm:$0xff] }
  0x7b   :  { %3979 = vmatprep.subr.bf16.mxu0 %v4106_v17  ;;  %v191_v17 = vld [vmem:[#allocation2 + $0x168] sm:$0xff]  ;;  %v230_v20 = vpack.c.bf16 %v188_v16, %v186_v15  ;;  %v5131_v42 = vld [vmem:[#allocation5 + $0x30] ss:$8 sps:$4 sm:$0xff]  }
  0x7c   :  { %941 = vmatpush1.bf16.msra.mxu1 %v5131_v42 }
  0x7d   :  { %942 = vmatprep.subr.bf16.mxu1 %v5135_v43 }
  0x7e   :  { %3980 = vmatpush3.bf16.msra.mxu0 %v4107_v18  ;;  %v193_v18 = vld [vmem:[#allocation2 + $0x178] sm:$0xff] }
  0x7f   :  { %v233_v22 = vpack.c.bf16 %v193_v18, %v191_v17 }
  0x80   :  { %943 = vmatpush1.bf16.msra.mxu1 %v5137_v46 }
  0x81   :  { %409 = vmatmul.mubr.bf16.gmra.mxu0 %v218_v47  ;;  %v203_v47 = vld [vmem:[#allocation2 + $0x1c8] sm:$0xff]  ;;  %944 = vmatprep.subr.bf16.mxu1 %v5141_v50 }
  0x82   :  { %416 = vmatprep.mubr.bf16.mxu0 %v221_v48  ;;  %v205_v48 = vld [vmem:[#allocation2 + $0x1d8] sm:$0xff] }
  0x83   :  { %v239_v51 = vpack.c.bf16 %v205_v48, %v203_v47 }
  0x84   :  { %945 = vmatpush1.bf16.msra.mxu1 %v5143_v52 }
  0x89   :  { %417 = vmatmul.mubr.bf16.gmra.mxu0 %v220_v53  ;;  %v5147_v53 = vld [vmem:[#allocation5 + $0x4] ss:$8 sps:$4 sm:$0xff]  }
  0x8a   :  { %424 = vmatprep.mubr.bf16.mxu0 %v223_v54  ;;  %v202_v54 = vld [vmem:[#allocation2 + $0x1c0] sm:$0xff]  ;;  %946 = vmatprep.subr.bf16.mxu1 %v5147_v53 }
  0x8b   :  { %947 = vmatpush1.bf16.msra.mxu1 %v5149_v56 }
  0x8c   :  { %2295 = vmatprep.subr.bf16.mxu1 %v5105_v19 }
  0x91   :  { %425 = vmatmul.mubr.bf16.gmra.mxu0 %v222_v59  ;;  %v238_v59 = vpack.c.bf16 %v204_v55, %v202_v54 }
  0x92   :  { %432 = vmatprep.mubr.bf16.mxu0 %v225_v60  ;;  %v241_v60 = vpack.c.bf16 %v209_v58, %v207_v57 }
  0x99   :  { %433 = vmatmul.mubr.bf16.gmra.mxu0 %v224_v1 }
  0x9a   :  { %440 = vmatprep.mubr.bf16.mxu0 %v227_v2  ;;  %v5158_v2 = vld [vmem:[%s5558_s3] ss:$0 sm:$0xff] }
  0xa1   :  { %441 = vmatmul.mubr.bf16.gmra.mxu0 %v226_v7 }
  0xa2   :  { %448 = vmatprep.mubr.bf16.mxu0 %v229_v8 }
  0xa9   :  { %449 = vmatmul.mubr.bf16.gmra.mxu0 %v228_v13 }
  0xaa   :  { %456 = vmatprep.mubr.bf16.mxu0 %v231_v14 }
  0xb1   :  { %457 = vmatmul.mubr.bf16.gmra.mxu0 %v230_v20 }
  0xb2   :  { %464 = vmatprep.mubr.bf16.mxu0 %v233_v22 }
  0xb9   :  { %465 = vmatmul.mubr.bf16.gmra.mxu0 %v232_v29 }
  0xba   :  { %472 = vmatprep.mubr.bf16.mxu0 %v235_v31 }
  0xc1   :  { %473 = vmatmul.mubr.bf16.gmra.mxu0 %v234_v39 }
  0xc2   :  { %480 = vmatprep.mubr.bf16.mxu0 %v237_v41 }
  0xc9   :  { %481 = vmatmul.mubr.bf16.gmra.mxu0 %v236_v49 }
  0xca   :  { %488 = vmatprep.mubr.bf16.mxu0 %v239_v51 }
  0xd1   :  { %489 = vmatmul.mubr.bf16.gmra.mxu0 %v238_v59 }
  0xd2   :  { %496 = vmatprep.mubr.bf16.mxu0 %v241_v60 }
  0xd9   :  { %497 = vmatmul.mubr.bf16.gmra.mxu0 %v240_v0 }
 0x121   :  { %v3869_v1 = vpop.f32.mrf.mxu0 }
 0x123   :  { %v3870_v3 = vpop.f32.mrf.mxu0 }
 0x124   :  { %v3871_v4 = vadd.f32 %v3870_v3, %v3869_v1 }
 0x125   :  { %v3872_v5 = vpop.f32.mrf.mxu0 }
 0x126   :  { %v379_v6 = vadd.f32 %v3871_v4, %v5158_v2 }
 0x127   :  { %v3873_v7 = vpop.f32.mrf.mxu0 }
 0x128   :  { %v3325_v8 = vmul.f32 -1.442695, %v379_v6  ;;  %v3874_v9 = vadd.f32 %v3873_v7, %v3872_v5 }
 0x129   :  { %v3875_v10 = vpop.f32.mrf.mxu0 }
 0x12a   :  { %4132 = vpow2.f32 %v3325_v8  ;;  %v382_v11 = vadd.f32 %v3874_v9, %v5158_v2 }
 0x12b   :  { %v3876_v12 = vpop.f32.mrf.mxu0 }
 0x12c   :  { %v3326_v13 = vmul.f32 -1.442695, %v382_v11  ;;  %v3877_v14 = vadd.f32 %v3876_v12, %v3875_v10 }
 0x12d   :  { %v3878_v15 = vpop.f32.mrf.mxu0 }
 0x12e   :  { %4134 = vpow2.f32 %v3326_v13  ;;  %v387_v16 = vadd.f32 %v3877_v14, %v5158_v2 }
 0x12f   :  { %v3879_v17 = vpop.f32.mrf.mxu0 }
 0x130   :  { %v3327_v18 = vmul.f32 -1.442695, %v387_v16  ;;  %v3880_v19 = vadd.f32 %v3879_v17, %v3878_v15  ;;  %v697_v15 = vld [vmem:[#allocation8] sm:$0xff]  ;;  %v698_v16 = vld [vmem:[#allocation8 + $0x8] sm:$0xff] }
 0x131   :  { %v3881_v20 = vpop.f32.mrf.mxu0 }
 0x132   :  { %4136 = vpow2.f32 %v3327_v18  ;;  %v390_v22 = vadd.f32 %v3880_v19, %v5158_v2 }
 0x133   :  { %v3882_v24 = vpop.f32.mrf.mxu0 }
 0x134   :  { %v3328_v25 = vmul.f32 -1.442695, %v390_v22  ;;  %v3883_v27 = vadd.f32 %v3882_v24, %v3881_v20 }
 0x135   :  { %v3884_v28 = vpop.f32.mrf.mxu0 }
 0x136   :  { %4138 = vpow2.f32 %v3328_v25  ;;  %v395_v29 = vadd.f32 %v3883_v27, %v5158_v2 }
 0x137   :  { %v4133_v31 = vpop.eup %4132  ;;  %v3885_v34 = vpop.f32.mrf.mxu0 }
 0x138   :  { %v601_v35 = vadd.f32 1.0, %v4133_v31  ;;  %v3329_v37 = vmul.f32 -1.442695, %v395_v29  ;;  %v3886_v38 = vadd.f32 %v3885_v34, %v3884_v28  ;;  %v5041_v29 = vmov 1.0|1.0  }
 0x139   :  { %v3887_v39 = vpop.f32.mrf.mxu0 }
 0x13a   :  { %v398_v41 = vadd.f32 %v3886_v38, %v5158_v2  ;;  %4140 = vpow2.f32 %v3329_v37 }
 0x13b   :  { %v4135_v44 = vpop.eup %4134  ;;  %v3888_v45 = vpop.f32.mrf.mxu0  ;;  %4142 = vrcp.f32 %v601_v35 }
 0x13c   :  { %v602_v47 = vadd.f32 1.0, %v4135_v44  ;;  %v3330_v48 = vmul.f32 -1.442695, %v398_v41  ;;  %v3889_v49 = vadd.f32 %v3888_v45, %v3887_v39  ;;  %v699_v44 = vld [vmem:[#allocation8 + $0x10] sm:$0xff]  ;;  %v700_v45 = vld [vmem:[#allocation8 + $0x18] sm:$0xff] }
 0x13d   :  { %v3890_v51 = vpop.f32.mrf.mxu0 }
 0x13e   :  { %4144 = vrcp.f32 %v602_v47  ;;  %v403_v54 = vadd.f32 %v3889_v49, %v5158_v2 }
 0x13f   :  { %v4137_v55 = vpop.eup %4136  ;;  %4146 = vpow2.f32 %v3330_v48  ;;  %v3891_v57 = vpop.f32.mrf.mxu0 }
 0x140   :  { %v603_v58 = vadd.f32 1.0, %v4137_v55  ;;  %v3331_v59 = vmul.f32 -1.442695, %v403_v54  ;;  %v3892_v60 = vadd.f32 %v3891_v57, %v3890_v51 }
 0x141   :  { %v3893_v62 = vpop.f32.mrf.mxu0 }
 0x142   :  { %v406_v63 = vadd.f32 %v3892_v60, %v5158_v2  ;;  %4148 = vpow2.f32 %v3331_v59 }
 0x143   :  { %v4139_v0 = vpop.eup %4138  ;;  %v3894_v1 = vpop.f32.mrf.mxu0  ;;  %4150 = vrcp.f32 %v603_v58 }
 0x144   :  { %v604_v3 = vadd.f32 1.0, %v4139_v0  ;;  %v3332_v4 = vmul.f32 -1.442695, %v406_v63  ;;  %v3895_v5 = vadd.f32 %v3894_v1, %v3893_v62  ;;  %v701_v1 = vld [vmem:[#allocation8 + $0x20] sm:$0xff] }
 0x145   :  { %v3896_v6 = vpop.f32.mrf.mxu0 }
 0x146   :  { %4152 = vrcp.f32 %v604_v3  ;;  %v411_v7 = vadd.f32 %v3895_v5, %v5158_v2  ;;  %v702_v3 = vld [vmem:[#allocation8 + $0x28] sm:$0xff] }
 0x147   :  { %4154 = vpow2.f32 %v3332_v4  ;;  %v3897_v8 = vpop.f32.mrf.mxu0  ;;  %v4141_v9 = vpop.eup %4140 }
 0x148   :  { %v3333_v10 = vmul.f32 -1.442695, %v411_v7  ;;  %v3898_v11 = vadd.f32 %v3897_v8, %v3896_v6  ;;  %v4143_v12 = vpop.eup %4142  ;;  %v605_v13 = vadd.f32 1.0, %v4141_v9 }
 0x149   :  { %v3899_v14 = vpop.f32.mrf.mxu0  ;;  %vm729_vm0 = vcmp.lt.f32.partialorder %v697_v15, %v4143_v12 }
 0x14a   :  { %4156 = vpow2.f32 %v3333_v10  ;;  %v414_v17 = vadd.f32 %v3898_v11, %v5158_v2 }
 0x14b   :  { %v4145_v18 = vpop.eup %4144  ;;  %v3900_v19 = vpop.f32.mrf.mxu0  ;;  %4158 = vrcp.f32 %v605_v13 }
 0x14c   :  { %v4147_v20 = vpop.eup %4146  ;;  %v3334_v22 = vmul.f32 -1.442695, %v414_v17  ;;  %v3901_v24 = vadd.f32 %v3900_v19, %v3899_v14  ;;  %vm730_vm1 = vcmp.lt.f32.partialorder %v698_v16, %v4145_v18  ;;  %v703_v16 = vld [vmem:[#allocation8 + $0x30] sm:$0xff]  ;;  %v704_v17 = vld [vmem:[#allocation8 + $0x38] sm:$0xff] }
 0x14d   :  { %v606_v25 = vadd.f32 1.0, %v4147_v20  ;;  %v3902_v27 = vpop.f32.mrf.mxu0  ;;  %vm3405_vm2 = vmpackc.low %vm730_vm1, %vm729_vm0 }
 0x14e   :  { %4160 = vpow2.f32 %v3334_v22  ;;  %v419_v28 = vadd.f32 %v3901_v24, %v5158_v2  ;;  %3406 = vmatmul.mubr.msk.bf16.vlgmr.msra.gmra.mxu1 %vm3405_vm2, %v5041_v29 }
 0x14f   :  { %4162 = vrcp.f32 %v606_v25  ;;  %v3903_v31 = vpop.f32.mrf.mxu0  ;;  %974 = vmatprep.mubr.bf16.mxu1 %v5040_v61  ;;  %2296 = vmatpush1.bf16.msra.mxu1 %v5107_v21  ;;  %v4149_v34 = vpop.eup %4148 }
 0x150   :  { %v3335_v35 = vmul.f32 -1.442695, %v419_v28  ;;  %v3904_v37 = vadd.f32 %v3903_v31, %v3902_v27  ;;  %2297 = vmatprep.subr.bf16.mxu1 %v5111_v23  ;;  %v4151_v38 = vpop.eup %4150  ;;  %v607_v39 = vadd.f32 1.0, %v4149_v34 }
 0x151   :  { %v3905_v41 = vpop.f32.mrf.mxu0  ;;  %vm731_vm3 = vcmp.lt.f32.partialorder %v699_v44, %v4151_v38  ;;  %v705_v38 = vld [vmem:[#allocation8 + $0x40] sm:$0xff] }
 0x152   :  { %4164 = vpow2.f32 %v3335_v35  ;;  %v422_v47 = vadd.f32 %v3904_v37, %v5158_v2 }
 0x153   :  { %v4153_v48 = vpop.eup %4152  ;;  %v3906_v49 = vpop.f32.mrf.mxu0  ;;  %2298 = vmatpush1.bf16.msra.mxu1 %v5114_v26  ;;  %4166 = vrcp.f32 %v607_v39 }
 0x154   :  { %v4155_v51 = vpop.eup %4154  ;;  %v3336_v54 = vmul.f32 -1.442695, %v422_v47  ;;  %v3907_v21 = vadd.f32 %v3906_v49, %v3905_v41  ;;  %vm732_vm4 = vcmp.lt.f32.partialorder %v700_v45, %v4153_v48  ;;  %2299 = vmatprep.subr.bf16.mxu1 %v5117_v30 }
 0x155   :  { %v608_v23 = vadd.f32 1.0, %v4155_v51  ;;  %v3908_v55 = vpop.f32.mrf.mxu0  ;;  %vm3407_vm5 = vmpackc.low %vm732_vm4, %vm731_vm3 }
 0x156   :  { %4168 = vpow2.f32 %v3336_v54  ;;  %v427_v57 = vadd.f32 %v3907_v21, %v5158_v2  ;;  %3408 = vmatmul.mubr.msk.bf16.gmra.mxu1 %vm3407_vm5, %v5041_v29 }
 0x157   :  { %v4157_v58 = vpop.eup %4156  ;;  %4170 = vrcp.f32 %v608_v23  ;;  %v3909_v59 = vpop.f32.mrf.mxu0  ;;  %984 = vmatprep.mubr.bf16.mxu1 %v5040_v61  ;;  %2300 = vmatpush1.bf16.msra.mxu1 %v5119_v32 }
 0x158   :  { %v609_v26 = vadd.f32 1.0, %v4157_v58  ;;  %v3337_v60 = vmul.f32 -1.442695, %v427_v57  ;;  %v3910_v62 = vadd.f32 %v3909_v59, %v3908_v55  ;;  %2301 = vmatprep.subr.bf16.mxu1 %v5123_v33  ;;  %v4159_v63 = vpop.eup %4158  ;;  %v708_v59 = vld [vmem:[#allocation8 + $0x58] sm:$0xff] }
 0x159   :  { %v3911_v30 = vpop.f32.mrf.mxu0  ;;  %vm733_vm6 = vcmp.lt.f32.partialorder %v701_v1, %v4159_v63 }
 0x15a   :  { %v430_v0 = vadd.f32 %v3910_v62, %v5158_v2  ;;  %4172 = vpow2.f32 %v3337_v60 }
 0x15b   :  { %v4161_v4 = vpop.eup %4160  ;;  %v3912_v5 = vpop.f32.mrf.mxu0  ;;  %2302 = vmatpush1.bf16.msra.mxu1 %v5125_v36  ;;  %4174 = vrcp.f32 %v609_v26 }
 0x15c   :  { %v4163_v6 = vpop.eup %4162  ;;  %v610_v7 = vadd.f32 1.0, %v4161_v4  ;;  %v3338_v32 = vmul.f32 -1.442695, %v430_v0  ;;  %v3913_v8 = vadd.f32 %v3912_v5, %v3911_v30  ;;  %2303 = vmatprep.subr.bf16.mxu1 %v5129_v40 }
 0x15d   :  { %v3914_v9 = vpop.f32.mrf.mxu0  ;;  %vm734_vm7 = vcmp.lt.f32.partialorder %v702_v3, %v4163_v6 }
 0x15e   :  { %4176 = vrcp.f32 %v610_v7  ;;  %v435_v33 = vadd.f32 %v3913_v8, %v5158_v2  ;;  %vm3409_vm8 = vmpackc.low %vm734_vm7, %vm733_vm6 }
 0x15f   :  { %v4165_v10 = vpop.eup %4164  ;;  %4178 = vpow2.f32 %v3338_v32  ;;  %3410 = vmatmul.mubr.msk.bf16.gmra.mxu1 %vm3409_vm8, %v5041_v29  ;;  %v3915_v11 = vpop.f32.mrf.mxu0 }
 0x160   :  { %v611_v36 = vadd.f32 1.0, %v4165_v10  ;;  %v3339_v12 = vmul.f32 -1.442695, %v435_v33  ;;  %v3916_v13 = vadd.f32 %v3915_v11, %v3914_v9  ;;  %994 = vmatprep.mubr.bf16.mxu1 %v5040_v61  ;;  %2304 = vmatpush1.bf16.msra.mxu1 %v5131_v42  ;;  %v4167_v14 = vpop.eup %4166  ;;  %v709_v11 = vld [vmem:[#allocation8 + $0x60] sm:$0xff] }
 0x161   :  { %v3917_v40 = vpop.f32.mrf.mxu0  ;;  %2305 = vmatprep.subr.bf16.mxu1 %v5135_v43  ;;  %vm735_vm9 = vcmp.lt.f32.partialorder %v703_v16, %v4167_v14 }
 0x162   :  { %v438_v15 = vadd.f32 %v3916_v13, %v5158_v2  ;;  %4180 = vpow2.f32 %v3339_v12 }
 0x163   :  { %v4169_v18 = vpop.eup %4168  ;;  %v3918_v19 = vpop.f32.mrf.mxu0  ;;  %4182 = vrcp.f32 %v611_v36  ;;  %v710_v36 = vld [vmem:[#allocation8 + $0x68] sm:$0xff] }
 0x164   :  { %v4171_v20 = vpop.eup %4170  ;;  %v612_v22 = vadd.f32 1.0, %v4169_v18  ;;  %v3340_v24 = vmul.f32 -1.442695, %v438_v15  ;;  %v3919_v25 = vadd.f32 %v3918_v19, %v3917_v40  ;;  %2306 = vmatpush1.bf16.msra.mxu1 %v5137_v46 }
 0x165   :  { %v3920_v27 = vpop.f32.mrf.mxu0  ;;  %vm736_vm10 = vcmp.lt.f32.partialorder %v704_v17, %v4171_v20  ;;  %2307 = vmatprep.subr.bf16.mxu1 %v5141_v50  ;;  %v706_v50 = vld [vmem:[#allocation8 + $0x48] sm:$0xff] }
 0x166   :  { %4184 = vrcp.f32 %v612_v22  ;;  %v443_v42 = vadd.f32 %v3919_v25, %v5158_v2  ;;  %vm3411_vm11 = vmpackc.low %vm736_vm10, %vm735_vm9 }
 0x167   :  { %4186 = vpow2.f32 %v3340_v24  ;;  %3412 = vmatmul.mubr.msk.bf16.gmra.mxu1 %vm3411_vm11, %v5041_v29  ;;  %v3921_v43 = vpop.f32.mrf.mxu0  ;;  %v4173_v28 = vpop.eup %4172 }
 0x168   :  { %v3341_v31 = vmul.f32 -1.442695, %v443_v42  ;;  %v3922_v34 = vadd.f32 %v3921_v43, %v3920_v27  ;;  %1004 = vmatprep.mubr.bf16.mxu1 %v5040_v61  ;;  %2308 = vmatpush1.bf16.msra.mxu1 %v5143_v52  ;;  %v4175_v46 = vpop.eup %4174  ;;  %v613_v35 = vadd.f32 1.0, %v4173_v28  ;;  %v711_v28 = vld [vmem:[#allocation8 + $0x70] sm:$0xff] }
 0x169   :  { %v3923_v37 = vpop.f32.mrf.mxu0  ;;  %2309 = vmatprep.subr.bf16.mxu1 %v5147_v53  ;;  %vm737_vm12 = vcmp.lt.f32.partialorder %v705_v38, %v4175_v46 }
 0x16a   :  { %4188 = vpow2.f32 %v3341_v31  ;;  %v446_v39 = vadd.f32 %v3922_v34, %v5158_v2  ;;  %v712_v31 = vld [vmem:[#allocation8 + $0x78] sm:$0xff] }
 0x16b   :  { %v4177_v41 = vpop.eup %4176  ;;  %v3924_v44 = vpop.f32.mrf.mxu0  ;;  %4190 = vrcp.f32 %v613_v35 }
 0x16c   :  { %v4179_v45 = vpop.eup %4178  ;;  %v3342_v47 = vmul.f32 -1.442695, %v446_v39  ;;  %v3925_v48 = vadd.f32 %v3924_v44, %v3923_v37  ;;  %vm738_vm13 = vcmp.lt.f32.partialorder %v706_v50, %v4177_v41  ;;  %2310 = vmatpush1.bf16.msra.mxu1 %v5149_v56  ;;  %v707_v56 = vld [vmem:[#allocation8 + $0x50] sm:$0xff] }
 0x16d   :  { %v614_v52 = vadd.f32 1.0, %v4179_v45  ;;  %v3926_v49 = vpop.f32.mrf.mxu0  ;;  %vm3413_vm14 = vmpackc.low %vm738_vm13, %vm737_vm12 }
 0x16e   :  { %4192 = vpow2.f32 %v3342_v47  ;;  %v451_v51 = vadd.f32 %v3925_v48, %v5158_v2 }
 0x16f   :  { %4194 = vrcp.f32 %v614_v52  ;;  %3414 = vmatmul.mubr.msk.bf16.gmra.mxu1 %vm3413_vm14, %v5041_v29  ;;  %v3927_v53 = vpop.f32.mrf.mxu0  ;;  %v4181_v54 = vpop.eup %4180 }
 0x170   :  { %v3343_v21 = vmul.f32 -1.442695, %v451_v51  ;;  %v3928_v23 = vadd.f32 %v3927_v53, %v3926_v49  ;;  %1014 = vmatprep.mubr.bf16.mxu1 %v5040_v61  ;;  %v4183_v55 = vpop.eup %4182  ;;  %v615_v57 = vadd.f32 1.0, %v4181_v54  ;;  %v713_v53 = vld [vmem:[#allocation8 + $0x80] sm:$0xff]  ;;  %v714_v54 = vld [vmem:[#allocation8 + $0x88] sm:$0xff] }
 0x171   :  { %v3929_v58 = vpop.f32.mrf.mxu0  ;;  %vm739_vm15 = vcmp.lt.f32.partialorder %v707_v56, %v4183_v55 }
 0x172   :  { %4196 = vpow2.f32 %v3343_v21  ;;  %v454_v26 = vadd.f32 %v3928_v23, %v5158_v2 }
 0x173   :  { %v4185_v60 = vpop.eup %4184  ;;  %v3930_v62 = vpop.f32.mrf.mxu0  ;;  %4198 = vrcp.f32 %v615_v57 }
 0x174   :  { %v4187_v30 = vpop.eup %4186  ;;  %v3344_v63 = vmul.f32 -1.442695, %v454_v26  ;;  %v3931_v0 = vadd.f32 %v3930_v62, %v3929_v58  ;;  %vm740_vm0 = vcmp.lt.f32.partialorder %v708_v59, %v4185_v60 }
 0x175   :  { %v616_v1 = vadd.f32 1.0, %v4187_v30  ;;  %v3932_v3 = vpop.f32.mrf.mxu0  ;;  %vm3415_vm1 = vmpackc.low %vm740_vm0, %vm739_vm15 }
 0x176   :  { %4200 = vpow2.f32 %v3344_v63  ;;  %v459_v4 = vadd.f32 %v3931_v0, %v5158_v2 }
 0x177   :  { %v4189_v5 = vpop.eup %4188  ;;  %4202 = vrcp.f32 %v616_v1  ;;  %3416 = vmatmul.mubr.msk.bf16.gmra.mxu1 %vm3415_vm1, %v5041_v29  ;;  %v3933_v6 = vpop.f32.mrf.mxu0 }
 0x178   :  { %v617_v7 = vadd.f32 1.0, %v4189_v5  ;;  %v3345_v32 = vmul.f32 -1.442695, %v459_v4  ;;  %v3934_v8 = vadd.f32 %v3933_v6, %v3932_v3  ;;  %1024 = vmatprep.mubr.bf16.mxu1 %v5040_v61  ;;  %v4191_v33 = vpop.eup %4190  ;;  %v715_v5 = vld [vmem:[#allocation8 + $0x90] sm:$0xff]  ;;  %v716_v6 = vld [vmem:[#allocation8 + $0x98] sm:$0xff] }
 0x179   :  { %v3935_v9 = vpop.f32.mrf.mxu0  ;;  %vm741_vm2 = vcmp.lt.f32.partialorder %v709_v11, %v4191_v33 }
 0x17a   :  { %v462_v10 = vadd.f32 %v3934_v8, %v5158_v2  ;;  %4204 = vpow2.f32 %v3345_v32 }
 0x17b   :  { %v4193_v12 = vpop.eup %4192  ;;  %v3936_v13 = vpop.f32.mrf.mxu0  ;;  %4206 = vrcp.f32 %v617_v7 }
 0x17c   :  { %v4195_v40 = vpop.eup %4194  ;;  %v618_v14 = vadd.f32 1.0, %v4193_v12  ;;  %v3346_v15 = vmul.f32 -1.442695, %v462_v10  ;;  %v3937_v16 = vadd.f32 %v3936_v13, %v3935_v9 }
 0x17d   :  { %v3938_v17 = vpop.f32.mrf.mxu0  ;;  %vm742_vm3 = vcmp.lt.f32.partialorder %v710_v36, %v4195_v40 }
 0x17e   :  { %4208 = vrcp.f32 %v618_v14  ;;  %v467_v18 = vadd.f32 %v3937_v16, %v5158_v2  ;;  %vm3417_vm4 = vmpackc.low %vm742_vm3, %vm741_vm2 }
 0x17f   :  { %v4197_v19 = vpop.eup %4196  ;;  %4210 = vpow2.f32 %v3346_v15  ;;  %3418 = vmatmul.mubr.msk.bf16.gmra.mxu1 %vm3417_vm4, %v5041_v29  ;;  %v3939_v20 = vpop.f32.mrf.mxu0 }
 0x180   :  { %v619_v22 = vadd.f32 1.0, %v4197_v19  ;;  %v3347_v24 = vmul.f32 -1.442695, %v467_v18  ;;  %v3940_v25 = vadd.f32 %v3939_v20, %v3938_v17  ;;  %1034 = vmatprep.mubr.bf16.mxu1 %v5040_v61  ;;  %v4199_v42 = vpop.eup %4198  ;;  %v717_v20 = vld [vmem:[#allocation8 + $0xa0] sm:$0xff] }
 0x181   :  { %v3941_v27 = vpop.f32.mrf.mxu0  ;;  %vm743_vm5 = vcmp.lt.f32.partialorder %v711_v28, %v4199_v42 }
 0x182   :  { %v470_v43 = vadd.f32 %v3940_v25, %v5158_v2  ;;  %4212 = vpow2.f32 %v3347_v24 }
 0x183   :  { %v4201_v34 = vpop.eup %4200  ;;  %v3942_v46 = vpop.f32.mrf.mxu0  ;;  %4214 = vrcp.f32 %v619_v22  ;;  %v718_v22 = vld [vmem:[#allocation8 + $0xa8] sm:$0xff] }
 0x184   :  { %v4203_v35 = vpop.eup %4202  ;;  %v620_v37 = vadd.f32 1.0, %v4201_v34  ;;  %v3348_v38 = vmul.f32 -1.442695, %v470_v43  ;;  %v3943_v50 = vadd.f32 %v3942_v46, %v3941_v27 }
 0x185   :  { %v3944_v39 = vpop.f32.mrf.mxu0  ;;  %vm744_vm6 = vcmp.lt.f32.partialorder %v712_v31, %v4203_v35 }
 0x186   :  { %4216 = vrcp.f32 %v620_v37  ;;  %v475_v41 = vadd.f32 %v3943_v50, %v5158_v2  ;;  %vm3419_vm7 = vmpackc.low %vm744_vm6, %vm743_vm5 }
 0x187   :  { %4218 = vpow2.f32 %v3348_v38  ;;  %3420 = vmatmul.mubr.msk.bf16.gmra.mxu1 %vm3419_vm7, %v5041_v29  ;;  %v3945_v44 = vpop.f32.mrf.mxu0  ;;  %v4205_v45 = vpop.eup %4204 }
 0x188   :  { %v3349_v47 = vmul.f32 -1.442695, %v475_v41  ;;  %v3946_v48 = vadd.f32 %v3945_v44, %v3944_v39  ;;  %1044 = vmatprep.mubr.bf16.mxu1 %v5040_v61  ;;  %v4207_v52 = vpop.eup %4206  ;;  %v621_v49 = vadd.f32 1.0, %v4205_v45  ;;  %v719_v44 = vld [vmem:[#allocation8 + $0xb0] sm:$0xff]  ;;  %v720_v45 = vld [vmem:[#allocation8 + $0xb8] sm:$0xff] }
 0x189   :  { %v3947_v51 = vpop.f32.mrf.mxu0  ;;  %vm745_vm8 = vcmp.lt.f32.partialorder %v713_v53, %v4207_v52 }
 0x18a   :  { %4220 = vpow2.f32 %v3349_v47  ;;  %v478_v21 = vadd.f32 %v3946_v48, %v5158_v2 }
 0x18b   :  { %v4209_v23 = vpop.eup %4208  ;;  %v3948_v55 = vpop.f32.mrf.mxu0  ;;  %4222 = vrcp.f32 %v621_v49 }
 0x18c   :  { %v4211_v57 = vpop.eup %4210  ;;  %v3350_v58 = vmul.f32 -1.442695, %v478_v21  ;;  %v3949_v56 = vadd.f32 %v3948_v55, %v3947_v51  ;;  %vm746_vm9 = vcmp.lt.f32.partialorder %v714_v54, %v4209_v23  ;;  %v721_v54 = vld [vmem:[#allocation8 + $0xc0] sm:$0xff]  ;;  %v722_v21 = vld [vmem:[#allocation8 + $0xc8] sm:$0xff] }
 0x18d   :  { %v622_v59 = vadd.f32 1.0, %v4211_v57  ;;  %v3950_v26 = vpop.f32.mrf.mxu0  ;;  %vm3421_vm10 = vmpackc.low %vm746_vm9, %vm745_vm8 }
 0x18e   :  { %4224 = vpow2.f32 %v3350_v58  ;;  %v483_v60 = vadd.f32 %v3949_v56, %v5158_v2 }
 0x18f   :  { %4226 = vrcp.f32 %v622_v59  ;;  %3422 = vmatmul.mubr.msk.bf16.gmra.mxu1 %vm3421_vm10, %v5041_v29  ;;  %v3951_v62 = vpop.f32.mrf.mxu0  ;;  %v4213_v30 = vpop.eup %4212 }
 0x190   :  { %v3351_v63 = vmul.f32 -1.442695, %v483_v60  ;;  %v3952_v0 = vadd.f32 %v3951_v62, %v3950_v26  ;;  %1054 = vmatprep.mubr.bf16.mxu1 %v5040_v61  ;;  %v4215_v1 = vpop.eup %4214  ;;  %v623_v3 = vadd.f32 1.0, %v4213_v30  ;;  %v723_v26 = vld [vmem:[#allocation8 + $0xd0] sm:$0xff]  ;;  %v724_v60 = vld [vmem:[#allocation8 + $0xd8] sm:$0xff] }
 0x191   :  { %v3953_v4 = vpop.f32.mrf.mxu0  ;;  %vm747_vm11 = vcmp.lt.f32.partialorder %v715_v5, %v4215_v1  ;;  %v725_v1 = vld [vmem:[#allocation8 + $0xe0] sm:$0xff] }
 0x192   :  { %4228 = vpow2.f32 %v3351_v63  ;;  %v486_v7 = vadd.f32 %v3952_v0, %v5158_v2 }
 0x193   :  { %v4217_v32 = vpop.eup %4216  ;;  %v3954_v8 = vpop.f32.mrf.mxu0  ;;  %4230 = vrcp.f32 %v623_v3  ;;  %v726_v3 = vld [vmem:[#allocation8 + $0xe8] sm:$0xff] }
 0x194   :  { %v4219_v9 = vpop.eup %4218  ;;  %v3352_v33 = vmul.f32 -1.442695, %v486_v7  ;;  %v3955_v10 = vadd.f32 %v3954_v8, %v3953_v4  ;;  %vm748_vm12 = vcmp.lt.f32.partialorder %v716_v6, %v4217_v32  ;;  %v727_v6 = vld [vmem:[#allocation8 + $0xf0] sm:$0xff]  ;;  %v728_v7 = vld [vmem:[#allocation8 + $0xf8] sm:$0xff]  ;;  %v842_v8 = vlaneseq }
 0x195   :  { %v624_v11 = vadd.f32 1.0, %v4219_v9  ;;  %v3956_v36 = vpop.f32.mrf.mxu0  ;;  %vm3423_vm13 = vmpackc.low %vm748_vm12, %vm747_vm11 }
 0x196   :  { %4232 = vpow2.f32 %v3352_v33  ;;  %v491_v12 = vadd.f32 %v3955_v10, %v5158_v2  ;;  %v843_v9 = vshrl.u32 %v842_v8, 7  ;;  %v145_v10 = vld [vmem:[%s5559_s4] sm:$0x3] }
 0x197   :  { %v4221_v13 = vpop.eup %4220  ;;  %4234 = vrcp.f32 %v624_v11  ;;  %3424 = vmatmul.mubr.msk.bf16.gmra.mxu1 %vm3423_vm13, %v5041_v29  ;;  %v3957_v40 = vpop.f32.mrf.mxu0 }
 0x198   :  { %v625_v14 = vadd.f32 1.0, %v4221_v13  ;;  %v3353_v15 = vmul.f32 -1.442695, %v491_v12  ;;  %v3958_v16 = vadd.f32 %v3957_v40, %v3956_v36  ;;  %1064 = vmatprep.mubr.bf16.mxu1 %v5040_v61  ;;  %v4223_v18 = vpop.eup %4222  ;;  %v844_v33 = vsub.s32 0, %v843_v9 }
 0x199   :  { %v3959_v17 = vpop.f32.mrf.mxu0  ;;  %vm749_vm14 = vcmp.lt.f32.partialorder %v717_v20, %v4223_v18  ;;  %v848_v11 = vsub.s32 1, %v843_v9 }
 0x19a   :  { %v494_v19 = vadd.f32 %v3958_v16, %v5158_v2  ;;  %4236 = vpow2.f32 %v3353_v15  ;;  %v5242_v36 = vrot.slane %v145_v10, %v844_v33 }
 0x19b   :  { %v4225_v24 = vpop.eup %4224  ;;  %v3960_v25 = vpop.f32.mrf.mxu0  ;;  %4238 = vrcp.f32 %v625_v14  ;;  %v5244_v12 = vrot.slane %v145_v10, %v848_v11 }
 0x19c   :  { %v4227_v27 = vpop.eup %4226  ;;  %v626_v42 = vadd.f32 1.0, %v4225_v24  ;;  %v3354_v43 = vmul.f32 -1.442695, %v494_v19  ;;  %v3961_v28 = vadd.f32 %v3960_v25, %v3959_v17 }
 0x19d   :  { %v3962_v31 = vpop.f32.mrf.mxu0  ;;  %vm750_vm15 = vcmp.lt.f32.partialorder %v718_v22, %v4227_v27 }
 0x19e   :  { %4240 = vrcp.f32 %v626_v42  ;;  %v499_v34 = vadd.f32 %v3961_v28, %v5158_v2  ;;  %vm3425_vm0 = vmpackc.low %vm750_vm15, %vm749_vm14 }
 0x19f   :  { %v4229_v46 = vpop.eup %4228  ;;  %4242 = vpow2.f32 %v3354_v43  ;;  %3426 = vmatmul.mubr.msk.bf16.gmra.mxu1 %vm3425_vm0, %v5041_v29  ;;  %v3963_v35 = vpop.f32.mrf.mxu0 }
 0x1a0   :  { %v627_v37 = vadd.f32 1.0, %v4229_v46  ;;  %v3355_v38 = vmul.f32 -1.442695, %v499_v34  ;;  %v3964_v50 = vadd.f32 %v3963_v35, %v3962_v31  ;;  %1074 = vmatprep.mubr.bf16.mxu1 %v5040_v61  ;;  %v4231_v39 = vpop.eup %4230 }
 0x1a1   :  { %vm751_vm1 = vcmp.lt.f32.partialorder %v719_v44, %v4231_v39 }
 0x1a2   :  { %v502_v41 = vadd.f32 %v3964_v50, %v5158_v2  ;;  %4244 = vpow2.f32 %v3355_v38 }
 0x1a3   :  { %v4233_v47 = vpop.eup %4232  ;;  %4246 = vrcp.f32 %v627_v37 }
 0x1a4   :  { %v4235_v48 = vpop.eup %4234  ;;  %v628_v52 = vadd.f32 1.0, %v4233_v47  ;;  %v3356_v49 = vmul.f32 -1.442695, %v502_v41 }
 0x1a5   :  { %vm752_vm2 = vcmp.lt.f32.partialorder %v720_v45, %v4235_v48 }
 0x1a6   :  { %4248 = vrcp.f32 %v628_v52  ;;  %vm3427_vm3 = vmpackc.low %vm752_vm2, %vm751_vm1 }
 0x1a7   :  { %4250 = vpow2.f32 %v3356_v49  ;;  %3428 = vmatmul.mubr.msk.bf16.gmra.mxu1 %vm3427_vm3, %v5041_v29  ;;  %v4237_v51 = vpop.eup %4236 }
 0x1a8   :  { %1084 = vmatprep.mubr.bf16.mxu1 %v5040_v61  ;;  %v4239_v53 = vpop.eup %4238  ;;  %v629_v2 = vadd.f32 1.0, %v4237_v51 }
 0x1a9   :  { %vm753_vm4 = vcmp.lt.f32.partialorder %v721_v54, %v4239_v53 }
 0x1aa   :  { %4252 = vrcp.f32 %v629_v2 }
 0x1ab   :  { %v4241_v23 = vpop.eup %4240 }
 0x1ac   :  { %v4243_v55 = vpop.eup %4242  ;;  %vm754_vm5 = vcmp.lt.f32.partialorder %v722_v21, %v4241_v23 }
 0x1ad   :  { %v630_v57 = vadd.f32 1.0, %v4243_v55  ;;  %vm3429_vm6 = vmpackc.low %vm754_vm5, %vm753_vm4 }
 0x1af   :  { %4254 = vrcp.f32 %v630_v57  ;;  %3430 = vmatmul.mubr.msk.bf16.gmra.mxu1 %vm3429_vm6, %v5041_v29  ;;  %v4245_v58 = vpop.eup %4244 }
 0x1b0   :  { %1094 = vmatprep.mubr.bf16.mxu1 %v5040_v61  ;;  %v4247_v56 = vpop.eup %4246  ;;  %v631_v59 = vadd.f32 1.0, %v4245_v58 }
 0x1b1   :  { %vm755_vm7 = vcmp.lt.f32.partialorder %v723_v26, %v4247_v56 }
 0x1b2   :  { %4256 = vrcp.f32 %v631_v59 }
 0x1b3   :  { %v4249_v62 = vpop.eup %4248 }
 0x1b4   :  { %v4251_v30 = vpop.eup %4250  ;;  %vm756_vm8 = vcmp.lt.f32.partialorder %v724_v60, %v4249_v62 }
 0x1b5   :  { %v632_v63 = vadd.f32 1.0, %v4251_v30  ;;  %vm3431_vm9 = vmpackc.low %vm756_vm8, %vm755_vm7 }
 0x1b7   :  { %4258 = vrcp.f32 %v632_v63  ;;  %3432 = vmatmul.mubr.msk.bf16.gmra.mxu1 %vm3431_vm9, %v5041_v29  ;;  %v4253_v0 = vpop.eup %4252 }
 0x1b8   :  { %1104 = vmatprep.mubr.bf16.mxu1 %v5040_v61  ;;  %vm757_vm10 = vcmp.lt.f32.partialorder %v725_v1, %v4253_v0 }
 0x1bc   :  { %v4255_v4 = vpop.eup %4254 }
 0x1bd   :  { %vm758_vm11 = vcmp.lt.f32.partialorder %v726_v3, %v4255_v4 }
 0x1be   :  { %vm3433_vm12 = vmpackc.low %vm758_vm11, %vm757_vm10 }
 0x1bf   :  { %3434 = vmatmul.mubr.msk.bf16.gmra.mxu1 %vm3433_vm12, %v5041_v29  ;;  %v4257_v5 = vpop.eup %4256 }
 0x1c0   :  { %1114 = vmatprep.mubr.bf16.mxu1 %v5040_v61  ;;  %vm759_vm13 = vcmp.lt.f32.partialorder %v727_v6, %v4257_v5 }
 0x1c4   :  { %v4259_v32 = vpop.eup %4258 }
 0x1c5   :  { %vm760_vm14 = vcmp.lt.f32.partialorder %v728_v7, %v4259_v32 }
 0x1c6   :  { %vm3435_vm15 = vmpackc.low %vm760_vm14, %vm759_vm13 }
 0x1c7   :  { %3436 = vmatmul.mubr.msk.bf16.gmra.mxu1 %vm3435_vm15, %v5041_v29 }
 0x1c8   :  { %2327 = vmatprep.mubr.bf16.mxu1 %v5040_v61 }
 0x20e   :  { %v966_v13 = vpop.f32.mrf.mxu1 }
 0x20f   :  { %v967_v40 = vadd.f32 %v966_v13, %v5242_v36 }
 0x210   :  { %v968_v14 = vpop.f32.mrf.mxu1 }
 0x211   :  { %v3437_v15 = vmul.f32 -1.442695, %v967_v40  ;;  %v969_v16 = vadd.f32 %v968_v14, %v5244_v12 }
 0x212   :  { %v970_v17 = vpop.f32.mrf.mxu1 }
 0x213   :  { %4260 = vpow2.f32 %v3437_v15  ;;  %v3438_v18 = vmul.f32 -1.442695, %v969_v16  ;;  %v971_v19 = vadd.f32 %v970_v17, %v5242_v36 }
 0x214   :  { %v972_v20 = vpop.f32.mrf.mxu1 }
 0x215   :  { %4262 = vpow2.f32 %v3438_v18  ;;  %v3439_v22 = vmul.f32 -1.442695, %v971_v19  ;;  %v973_v24 = vadd.f32 %v972_v20, %v5244_v12 }
 0x216   :  { %v976_v25 = vpop.f32.mrf.mxu1 }
 0x217   :  { %4264 = vpow2.f32 %v3439_v22  ;;  %v3440_v27 = vmul.f32 -1.442695, %v973_v24  ;;  %v977_v42 = vadd.f32 %v976_v25, %v5242_v36 }
 0x218   :  { %v978_v43 = vpop.f32.mrf.mxu1 }
 0x219   :  { %4266 = vpow2.f32 %v3440_v27  ;;  %v3441_v28 = vmul.f32 -1.442695, %v977_v42  ;;  %v979_v31 = vadd.f32 %v978_v43, %v5244_v12  ;;  %v1511_v42 = vld [vmem:[#allocation10 + $0x10] sm:$0xff] }
 0x21a   :  { %v980_v34 = vpop.f32.mrf.mxu1 }
 0x21b   :  { %4268 = vpow2.f32 %v3441_v28  ;;  %v3442_v46 = vmul.f32 -1.442695, %v979_v31  ;;  %v981_v35 = vadd.f32 %v980_v34, %v5242_v36 }
 0x21c   :  { %v982_v37 = vpop.f32.mrf.mxu1 }
 0x21d   :  { %4270 = vpow2.f32 %v3442_v46  ;;  %v3443_v38 = vmul.f32 -1.442695, %v981_v35  ;;  %v983_v50 = vadd.f32 %v982_v37, %v5244_v12  ;;  %v1510_v37 = vld [vmem:[#allocation10 + $0x8] sm:$0xff] }
 0x21f   :  { %4272 = vpow2.f32 %v3443_v38  ;;  %v3444_v39 = vmul.f32 -1.442695, %v983_v50  ;;  %v986_v41 = vpop.f32.mrf.mxu1  ;;  %v1512_v38 = vld [vmem:[#allocation10 + $0x18] sm:$0xff]  ;;  %v1509_v50 = vld [vmem:[#allocation10] sm:$0xff] }
 0x220   :  { %v4261_v44 = vpop.eup %4260  ;;  %v987_v45 = vadd.f32 %v986_v41, %v5242_v36 }
 0x221   :  { %v1317_v47 = vadd.f32 1.0, %v4261_v44  ;;  %4274 = vpow2.f32 %v3444_v39  ;;  %v988_v48 = vpop.f32.mrf.mxu1 }
 0x222   :  { %v4263_v52 = vpop.eup %4262  ;;  %v3445_v49 = vmul.f32 -1.442695, %v987_v45  ;;  %v989_v51 = vadd.f32 %v988_v48, %v5244_v12 }
 0x223   :  { %4276 = vrcp.f32 %v1317_v47  ;;  %v1318_v53 = vadd.f32 1.0, %v4263_v52  ;;  %v990_v2 = vpop.f32.mrf.mxu1 }
 0x224   :  { %v4265_v54 = vpop.eup %4264  ;;  %4278 = vpow2.f32 %v3445_v49  ;;  %v3446_v21 = vmul.f32 -1.442695, %v989_v51  ;;  %v991_v23 = vadd.f32 %v990_v2, %v5242_v36 }
 0x225   :  { %4280 = vrcp.f32 %v1318_v53  ;;  %v1319_v55 = vadd.f32 1.0, %v4265_v54  ;;  %v992_v57 = vpop.f32.mrf.mxu1 }
 0x226   :  { %v4267_v58 = vpop.eup %4266  ;;  %4282 = vpow2.f32 %v3446_v21  ;;  %v3447_v56 = vmul.f32 -1.442695, %v991_v23  ;;  %v993_v59 = vadd.f32 %v992_v57, %v5244_v12 }
 0x227   :  { %4284 = vrcp.f32 %v1319_v55  ;;  %v1320_v26 = vadd.f32 1.0, %v4267_v58  ;;  %v996_v60 = vpop.f32.mrf.mxu1 }
 0x228   :  { %v4269_v62 = vpop.eup %4268  ;;  %4286 = vpow2.f32 %v3447_v56  ;;  %v3448_v30 = vmul.f32 -1.442695, %v993_v59  ;;  %v997_v63 = vadd.f32 %v996_v60, %v5242_v36  ;;  %v1515_v59 = vld [vmem:[#allocation10 + $0x30] sm:$0xff] }
 0x229   :  { %4288 = vrcp.f32 %v1320_v26  ;;  %v1321_v0 = vadd.f32 1.0, %v4269_v62  ;;  %v998_v1 = vpop.f32.mrf.mxu1 }
 0x22a   :  { %v4271_v3 = vpop.eup %4270  ;;  %4290 = vpow2.f32 %v3448_v30  ;;  %v3449_v4 = vmul.f32 -1.442695, %v997_v63  ;;  %v999_v5 = vadd.f32 %v998_v1, %v5244_v12  ;;  %v1514_v1 = vld [vmem:[#allocation10 + $0x28] sm:$0xff] }
 0x22b   :  { %4292 = vrcp.f32 %v1321_v0  ;;  %v1322_v6 = vadd.f32 1.0, %v4271_v3  ;;  %v1000_v7 = vpop.f32.mrf.mxu1  ;;  %v1516_v3 = vld [vmem:[#allocation10 + $0x38] sm:$0xff] }
 0x22c   :  { %v4273_v32 = vpop.eup %4272  ;;  %4294 = vpow2.f32 %v3449_v4  ;;  %v3450_v8 = vmul.f32 -1.442695, %v999_v5  ;;  %v1001_v9 = vadd.f32 %v1000_v7, %v5242_v36  ;;  %v1513_v4 = vld [vmem:[#allocation10 + $0x20] sm:$0xff] }
 0x22d   :  { %4296 = vrcp.f32 %v1322_v6  ;;  %v1323_v33 = vadd.f32 1.0, %v4273_v32  ;;  %v1002_v10 = vpop.f32.mrf.mxu1 }
 0x22e   :  { %v4275_v11 = vpop.eup %4274  ;;  %4298 = vpow2.f32 %v3450_v8  ;;  %v3451_v13 = vmul.f32 -1.442695, %v1001_v9  ;;  %v1003_v40 = vadd.f32 %v1002_v10, %v5244_v12 }
 0x22f   :  { %4300 = vrcp.f32 %v1323_v33  ;;  %v1324_v14 = vadd.f32 1.0, %v4275_v11  ;;  %v1006_v15 = vpop.f32.mrf.mxu1 }
 0x230   :  { %v4277_v16 = vpop.eup %4276  ;;  %4302 = vpow2.f32 %v3451_v13  ;;  %v3452_v17 = vmul.f32 -1.442695, %v1003_v40  ;;  %v1007_v18 = vadd.f32 %v1006_v15, %v5242_v36 }
 0x231   :  { %v4279_v19 = vpop.eup %4278  ;;  %4304 = vrcp.f32 %v1324_v14  ;;  %v1008_v20 = vpop.f32.mrf.mxu1  ;;  %vm1573_vm3 = vcmp.lt.f32.partialorder %v1509_v50, %v4277_v16  ;;  %v1517_v50 = vld [vmem:[#allocation10 + $0x40] sm:$0xff] }
 0x232   :  { %v4281_v22 = vpop.eup %4280  ;;  %v1325_v24 = vadd.f32 1.0, %v4279_v19  ;;  %4306 = vpow2.f32 %v3452_v17  ;;  %v3453_v25 = vmul.f32 -1.442695, %v1007_v18  ;;  %v1009_v27 = vadd.f32 %v1008_v20, %v5244_v12 }
 0x233   :  { %v4283_v43 = vpop.eup %4282  ;;  %v1010_v28 = vpop.f32.mrf.mxu1  ;;  %vm1574_vm1 = vcmp.lt.f32.partialorder %v1510_v37, %v4281_v22 }
 0x234   :  { %v4285_v31 = vpop.eup %4284  ;;  %4308 = vrcp.f32 %v1325_v24  ;;  %v1326_v34 = vadd.f32 1.0, %v4283_v43  ;;  %v3454_v46 = vmul.f32 -1.442695, %v1009_v27  ;;  %v1011_v35 = vadd.f32 %v1010_v28, %v5242_v36  ;;  %v1519_v43 = vld [vmem:[#allocation10 + $0x50] sm:$0xff] }
 0x235   :  { %v4287_v39 = vpop.eup %4286  ;;  %4310 = vpow2.f32 %v3453_v25  ;;  %v1012_v41 = vpop.f32.mrf.mxu1  ;;  %vm1575_vm0 = vcmp.lt.f32.partialorder %v1511_v42, %v4285_v31  ;;  %v1518_v42 = vld [vmem:[#allocation10 + $0x48] sm:$0xff] }
 0x236   :  { %v4289_v44 = vpop.eup %4288  ;;  %4312 = vrcp.f32 %v1326_v34  ;;  %v1327_v45 = vadd.f32 1.0, %v4287_v39  ;;  %v3455_v47 = vmul.f32 -1.442695, %v1011_v35  ;;  %v1013_v48 = vadd.f32 %v1012_v41, %v5244_v12  ;;  %vm3567_vm5 = vmpackc.low %vm1575_vm0, %vm1573_vm3 }
 0x237   :  { %v4291_v52 = vpop.eup %4290  ;;  %4314 = vpow2.f32 %v3454_v46  ;;  %v1016_v49 = vpop.f32.mrf.mxu1  ;;  %vm1576_vm2 = vcmp.lt.f32.partialorder %v1512_v38, %v4289_v44  ;;  %v1520_v46 = vld [vmem:[#allocation10 + $0x58] sm:$0xff] }
 0x238   :  { %v4293_v51 = vpop.eup %4292  ;;  %4316 = vrcp.f32 %v1327_v45  ;;  %v1328_v53 = vadd.f32 1.0, %v4291_v52  ;;  %v3456_v2 = vmul.f32 -1.442695, %v1013_v48  ;;  %v1017_v54 = vadd.f32 %v1016_v49, %v5242_v36  ;;  %vm3565_vm4 = vmpackc.low %vm1576_vm2, %vm1574_vm1 }
 0x239   :  { %v4295_v21 = vpop.eup %4294  ;;  %4318 = vpow2.f32 %v3455_v47  ;;  %v1018_v23 = vpop.f32.mrf.mxu1  ;;  %3566 = vmatprep.mubr.msk.bf16.mxu0 %vm3565_vm4, %v5041_v29  ;;  %vm1577_vm9 = vcmp.lt.f32.partialorder %v1513_v4, %v4293_v51  ;;  %v1521_v4 = vld [vmem:[#allocation10 + $0x60] sm:$0xff] }
 0x23a   :  { %v4297_v55 = vpop.eup %4296  ;;  %4320 = vrcp.f32 %v1328_v53  ;;  %v1329_v57 = vadd.f32 1.0, %v4295_v21  ;;  %v3457_v58 = vmul.f32 -1.442695, %v1017_v54  ;;  %v1019_v56 = vadd.f32 %v1018_v23, %v5244_v12  ;;  %3568 = vmatmul.mubr.msk.bf16.vlgmr.msra.gmra.mxu0 %vm3567_vm5, %v5041_v29 }
 0x23b   :  { %v4299_v26 = vpop.eup %4298  ;;  %4322 = vpow2.f32 %v3456_v2  ;;  %v1020_v60 = vpop.f32.mrf.mxu1  ;;  %vm1578_vm7 = vcmp.lt.f32.partialorder %v1514_v1, %v4297_v55 }
 0x23c   :  { %v4301_v62 = vpop.eup %4300  ;;  %4324 = vrcp.f32 %v1329_v57  ;;  %v1330_v30 = vadd.f32 1.0, %v4299_v26  ;;  %v3458_v63 = vmul.f32 -1.442695, %v1019_v56  ;;  %v1021_v0 = vadd.f32 %v1020_v60, %v5242_v36  ;;  %v1523_v26 = vld [vmem:[#allocation10 + $0x70] sm:$0xff] }
 0x23d   :  { %v4303_v5 = vpop.eup %4302  ;;  %4326 = vpow2.f32 %v3457_v58  ;;  %v1022_v6 = vpop.f32.mrf.mxu1  ;;  %vm1579_vm6 = vcmp.lt.f32.partialorder %v1515_v59, %v4301_v62  ;;  %v1522_v59 = vld [vmem:[#allocation10 + $0x68] sm:$0xff] }
 0x23e   :  { %v4305_v7 = vpop.eup %4304  ;;  %4328 = vrcp.f32 %v1330_v30  ;;  %v1331_v32 = vadd.f32 1.0, %v4303_v5  ;;  %v3459_v8 = vmul.f32 -1.442695, %v1021_v0  ;;  %v1023_v9 = vadd.f32 %v1022_v6, %v5244_v12  ;;  %vm3571_vm11 = vmpackc.low %vm1579_vm6, %vm1577_vm9 }
 0x23f   :  { %v4307_v33 = vpop.eup %4306  ;;  %4330 = vpow2.f32 %v3458_v63  ;;  %v1026_v10 = vpop.f32.mrf.mxu1  ;;  %vm1580_vm8 = vcmp.lt.f32.partialorder %v1516_v3, %v4305_v7  ;;  %v1524_v63 = vld [vmem:[#allocation10 + $0x78] sm:$0xff] }
 0x240   :  { %4332 = vrcp.f32 %v1331_v32  ;;  %v1332_v11 = vadd.f32 1.0, %v4307_v33  ;;  %v3460_v13 = vmul.f32 -1.442695, %v1023_v9  ;;  %v1027_v40 = vadd.f32 %v1026_v10, %v5242_v36  ;;  %vm3569_vm10 = vmpackc.low %vm1580_vm8, %vm1578_vm7 }
 0x241   :  { %v4309_v14 = vpop.eup %4308  ;;  %4334 = vpow2.f32 %v3459_v8  ;;  %v1028_v15 = vpop.f32.mrf.mxu1  ;;  %3570 = vmatprep.mubr.msk.bf16.mxu0 %vm3569_vm10, %v5041_v29 }
 0x242   :  { %v4311_v16 = vpop.eup %4310  ;;  %4336 = vrcp.f32 %v1332_v11  ;;  %v3461_v17 = vmul.f32 -1.442695, %v1027_v40  ;;  %v1029_v18 = vadd.f32 %v1028_v15, %v5244_v12  ;;  %3572 = vmatmul.mubr.msk.bf16.gmra.mxu0 %vm3571_vm11, %v5041_v29  ;;  %vm1581_vm0 = vcmp.lt.f32.partialorder %v1517_v50, %v4309_v14 }
 0x243   :  { %v4313_v19 = vpop.eup %4312  ;;  %v1333_v20 = vadd.f32 1.0, %v4311_v16  ;;  %4338 = vpow2.f32 %v3460_v13  ;;  %v1030_v22 = vpop.f32.mrf.mxu1 }
 0x244   :  { %v4315_v24 = vpop.eup %4314  ;;  %4340 = vpow2.f32 %v3461_v17  ;;  %v3462_v25 = vmul.f32 -1.442695, %v1029_v18  ;;  %v1031_v27 = vadd.f32 %v1030_v22, %v5242_v36  ;;  %vm1582_vm12 = vcmp.lt.f32.partialorder %v1518_v42, %v4313_v19 }
 0x245   :  { %v4317_v28 = vpop.eup %4316  ;;  %4342 = vrcp.f32 %v1333_v20  ;;  %v1334_v31 = vadd.f32 1.0, %v4315_v24  ;;  %v1032_v34 = vpop.f32.mrf.mxu1  ;;  %v1527_v24 = vld [vmem:[#allocation10 + $0x90] sm:$0xff] }
 0x246   :  { %v4319_v35 = vpop.eup %4318  ;;  %4344 = vpow2.f32 %v3462_v25  ;;  %v3463_v37 = vmul.f32 -1.442695, %v1031_v27  ;;  %v1033_v38 = vadd.f32 %v1032_v34, %v5244_v12  ;;  %vm1583_vm13 = vcmp.lt.f32.partialorder %v1519_v43, %v4317_v28  ;;  %v1526_v34 = vld [vmem:[#allocation10 + $0x88] sm:$0xff] }
 0x247   :  { %v4321_v39 = vpop.eup %4320  ;;  %4346 = vrcp.f32 %v1334_v31  ;;  %v1335_v41 = vadd.f32 1.0, %v4319_v35  ;;  %v1036_v44 = vpop.f32.mrf.mxu1  ;;  %vm3575_vm1 = vmpackc.low %vm1583_vm13, %vm1581_vm0  ;;  %v1525_v35 = vld [vmem:[#allocation10 + $0x80] sm:$0xff] }
 0x248   :  { %v4323_v45 = vpop.eup %4322  ;;  %4348 = vpow2.f32 %v3463_v37  ;;  %v3464_v47 = vmul.f32 -1.442695, %v1033_v38  ;;  %v1037_v48 = vadd.f32 %v1036_v44, %v5242_v36  ;;  %vm1584_vm14 = vcmp.lt.f32.partialorder %v1520_v46, %v4321_v39  ;;  %v1528_v46 = vld [vmem:[#allocation10 + $0x98] sm:$0xff] }
 0x249   :  { %v4325_v52 = vpop.eup %4324  ;;  %4350 = vrcp.f32 %v1335_v41  ;;  %v1336_v49 = vadd.f32 1.0, %v4323_v45  ;;  %v1038_v51 = vpop.f32.mrf.mxu1  ;;  %vm3573_vm15 = vmpackc.low %vm1584_vm14, %vm1582_vm12 }
 0x24a   :  { %v4327_v53 = vpop.eup %4326  ;;  %4352 = vpow2.f32 %v3464_v47  ;;  %v3465_v2 = vmul.f32 -1.442695, %v1037_v48  ;;  %v1039_v54 = vadd.f32 %v1038_v51, %v5244_v12  ;;  %3574 = vmatprep.mubr.msk.bf16.mxu0 %vm3573_vm15, %v5041_v29  ;;  %vm1585_vm6 = vcmp.lt.f32.partialorder %v1521_v4, %v4325_v52 }
 0x24b   :  { %v4329_v21 = vpop.eup %4328  ;;  %4354 = vrcp.f32 %v1336_v49  ;;  %v1337_v23 = vadd.f32 1.0, %v4327_v53  ;;  %v1040_v55 = vpop.f32.mrf.mxu1  ;;  %3576 = vmatmul.mubr.msk.bf16.gmra.mxu0 %vm3575_vm1, %v5041_v29 }
 0x24c   :  { %v4331_v57 = vpop.eup %4330  ;;  %4356 = vpow2.f32 %v3465_v2  ;;  %v3466_v58 = vmul.f32 -1.442695, %v1039_v54  ;;  %v1041_v56 = vadd.f32 %v1040_v55, %v5242_v36  ;;  %vm1586_vm2 = vcmp.lt.f32.partialorder %v1522_v59, %v4329_v21 }
 0x24d   :  { %v4333_v60 = vpop.eup %4332  ;;  %4358 = vrcp.f32 %v1337_v23  ;;  %v1338_v62 = vadd.f32 1.0, %v4331_v57  ;;  %v1042_v30 = vpop.f32.mrf.mxu1  ;;  %v1531_v57 = vld [vmem:[#allocation10 + $0xb0] sm:$0xff] }
 0x24e   :  { %v4335_v0 = vpop.eup %4334  ;;  %4360 = vpow2.f32 %v3466_v58  ;;  %v3467_v1 = vmul.f32 -1.442695, %v1041_v56  ;;  %v1043_v3 = vadd.f32 %v1042_v30, %v5244_v12  ;;  %vm1587_vm3 = vcmp.lt.f32.partialorder %v1523_v26, %v4333_v60  ;;  %v1530_v30 = vld [vmem:[#allocation10 + $0xa8] sm:$0xff] }
 0x24f   :  { %v4337_v5 = vpop.eup %4336  ;;  %4362 = vrcp.f32 %v1338_v62  ;;  %v1339_v6 = vadd.f32 1.0, %v4335_v0  ;;  %v1046_v7 = vpop.f32.mrf.mxu1  ;;  %vm3579_vm7 = vmpackc.low %vm1587_vm3, %vm1585_vm6 }
 0x250   :  { %v4339_v32 = vpop.eup %4338  ;;  %4364 = vpow2.f32 %v3467_v1  ;;  %v3468_v8 = vmul.f32 -1.442695, %v1043_v3  ;;  %v1047_v9 = vadd.f32 %v1046_v7, %v5242_v36  ;;  %vm1588_vm4 = vcmp.lt.f32.partialorder %v1524_v63, %v4337_v5  ;;  %v1532_v63 = vld [vmem:[#allocation10 + $0xb8] sm:$0xff]  ;;  %v1529_v3 = vld [vmem:[#allocation10 + $0xa0] sm:$0xff] }
 0x251   :  { %v4341_v33 = vpop.eup %4340  ;;  %4366 = vrcp.f32 %v1339_v6  ;;  %v1340_v10 = vadd.f32 1.0, %v4339_v32  ;;  %v1048_v11 = vpop.f32.mrf.mxu1  ;;  %vm3577_vm5 = vmpackc.low %vm1588_vm4, %vm1586_vm2 }
 0x252   :  { %v4343_v13 = vpop.eup %4342  ;;  %v1341_v40 = vadd.f32 1.0, %v4341_v33  ;;  %4368 = vpow2.f32 %v3468_v8  ;;  %v3469_v14 = vmul.f32 -1.442695, %v1047_v9  ;;  %v1049_v15 = vadd.f32 %v1048_v11, %v5244_v12  ;;  %3578 = vmatprep.mubr.msk.bf16.mxu0 %vm3577_vm5, %v5041_v29 }
 0x253   :  { %v4345_v16 = vpop.eup %4344  ;;  %4370 = vrcp.f32 %v1340_v10  ;;  %v1050_v17 = vpop.f32.mrf.mxu1  ;;  %3580 = vmatmul.mubr.msk.bf16.gmra.mxu0 %vm3579_vm7, %v5041_v29  ;;  %vm1589_vm11 = vcmp.lt.f32.partialorder %v1525_v35, %v4343_v13 }
 0x254   :  { %v4347_v18 = vpop.eup %4346  ;;  %4372 = vrcp.f32 %v1341_v40  ;;  %v1342_v19 = vadd.f32 1.0, %v4345_v16  ;;  %v3470_v20 = vmul.f32 -1.442695, %v1049_v15  ;;  %v1051_v22 = vadd.f32 %v1050_v17, %v5242_v36  ;;  %v1534_v17 = vld [vmem:[#allocation10 + $0xc8] sm:$0xff] }
 0x255   :  { %v4349_v25 = vpop.eup %4348  ;;  %4374 = vpow2.f32 %v3469_v14  ;;  %v1052_v27 = vpop.f32.mrf.mxu1  ;;  %vm1590_vm9 = vcmp.lt.f32.partialorder %v1526_v34, %v4347_v18  ;;  %v1535_v18 = vld [vmem:[#allocation10 + $0xd0] sm:$0xff]  ;;  %v1533_v34 = vld [vmem:[#allocation10 + $0xc0] sm:$0xff] }
 0x256   :  { %v4351_v42 = vpop.eup %4350  ;;  %4376 = vrcp.f32 %v1342_v19  ;;  %v1343_v43 = vadd.f32 1.0, %v4349_v25  ;;  %v3471_v28 = vmul.f32 -1.442695, %v1051_v22  ;;  %v1053_v31 = vadd.f32 %v1052_v27, %v5244_v12 }
 0x257   :  { %v4353_v37 = vpop.eup %4352  ;;  %4378 = vpow2.f32 %v3470_v20  ;;  %v1056_v38 = vpop.f32.mrf.mxu1  ;;  %vm1591_vm8 = vcmp.lt.f32.partialorder %v1527_v24, %v4351_v42  ;;  %v1536_v24 = vld [vmem:[#allocation10 + $0xd8] sm:$0xff] }
 0x258   :  { %v4355_v50 = vpop.eup %4354  ;;  %4380 = vrcp.f32 %v1343_v43  ;;  %v1344_v39 = vadd.f32 1.0, %v4353_v37  ;;  %v3472_v41 = vmul.f32 -1.442695, %v1053_v31  ;;  %v1057_v44 = vadd.f32 %v1056_v38, %v5242_v36  ;;  %vm3583_vm13 = vmpackc.low %vm1591_vm8, %vm1589_vm11 }
 0x259   :  { %v4357_v45 = vpop.eup %4356  ;;  %4382 = vpow2.f32 %v3471_v28  ;;  %v1058_v47 = vpop.f32.mrf.mxu1  ;;  %vm1592_vm10 = vcmp.lt.f32.partialorder %v1528_v46, %v4355_v50 }
 0x25a   :  { %v4359_v48 = vpop.eup %4358  ;;  %4384 = vrcp.f32 %v1344_v39  ;;  %v1345_v52 = vadd.f32 1.0, %v4357_v45  ;;  %v3473_v49 = vmul.f32 -1.442695, %v1057_v44  ;;  %v1059_v51 = vadd.f32 %v1058_v47, %v5244_v12  ;;  %vm3581_vm12 = vmpackc.low %vm1592_vm10, %vm1590_vm9 }
 0x25b   :  { %v4361_v53 = vpop.eup %4360  ;;  %4386 = vpow2.f32 %v3472_v41  ;;  %3582 = vmatprep.mubr.msk.bf16.mxu0 %vm3581_vm12, %v5041_v29  ;;  %v1060_v2 = vpop.f32.mrf.mxu1  ;;  %vm1593_vm2 = vcmp.lt.f32.partialorder %v1529_v3, %v4359_v48 }
 0x25c   :  { %v4363_v54 = vpop.eup %4362  ;;  %4388 = vrcp.f32 %v1345_v52  ;;  %v1346_v21 = vadd.f32 1.0, %v4361_v53  ;;  %v3474_v23 = vmul.f32 -1.442695, %v1059_v51  ;;  %v1061_v55 = vadd.f32 %v1060_v2, %v5242_v36  ;;  %3584 = vmatmul.mubr.msk.bf16.gmra.mxu0 %vm3583_vm13, %v5041_v29  ;;  %v1538_v2 = vld [vmem:[#allocation10 + $0xe8] sm:$0xff] }
 0x25d   :  { %v4365_v58 = vpop.eup %4364  ;;  %4390 = vpow2.f32 %v3473_v49  ;;  %v1062_v56 = vpop.f32.mrf.mxu1  ;;  %vm1594_vm15 = vcmp.lt.f32.partialorder %v1530_v30, %v4363_v54  ;;  %v1539_v54 = vld [vmem:[#allocation10 + $0xf0] sm:$0xff] }
 0x25e   :  { %v4367_v59 = vpop.eup %4366  ;;  %4392 = vrcp.f32 %v1346_v21  ;;  %v1347_v26 = vadd.f32 1.0, %v4365_v58  ;;  %v3475_v60 = vmul.f32 -1.442695, %v1061_v55  ;;  %v1063_v62 = vadd.f32 %v1062_v56, %v5244_v12 }
 0x25f   :  { %v4369_v0 = vpop.eup %4368  ;;  %4394 = vpow2.f32 %v3474_v23  ;;  %v1066_v1 = vpop.f32.mrf.mxu1  ;;  %vm1595_vm14 = vcmp.lt.f32.partialorder %v1531_v57, %v4367_v59  ;;  %v1540_v57 = vld [vmem:[#allocation10 + $0xf8] sm:$0xff] }
 0x260   :  { %v4371_v4 = vpop.eup %4370  ;;  %4396 = vrcp.f32 %v1347_v26  ;;  %v1348_v5 = vadd.f32 1.0, %v4369_v0  ;;  %v3476_v6 = vmul.f32 -1.442695, %v1063_v62  ;;  %v1067_v7 = vadd.f32 %v1066_v1, %v5242_v36  ;;  %vm3587_vm3 = vmpackc.low %vm1595_vm14, %vm1593_vm2  ;;  %v1537_v26 = vld [vmem:[#allocation10 + $0xe0] sm:$0xff] }
 0x261   :  { %v4373_v32 = vpop.eup %4372  ;;  %4398 = vpow2.f32 %v3475_v60  ;;  %v1068_v8 = vpop.f32.mrf.mxu1  ;;  %vm1596_vm0 = vcmp.lt.f32.partialorder %v1532_v63, %v4371_v4 }
 0x262   :  { %v4375_v9 = vpop.eup %4374  ;;  %4400 = vrcp.f32 %v1348_v5  ;;  %v3477_v33 = vmul.f32 -1.442695, %v1067_v7  ;;  %v1069_v10 = vadd.f32 %v1068_v8, %v5244_v12  ;;  %vm3585_vm1 = vmpackc.low %vm1596_vm0, %vm1594_vm15  ;;  %vm1597_vm8 = vcmp.lt.f32.partialorder %v1533_v34, %v4373_v32 }
 0x263   :  { %v4377_v11 = vpop.eup %4376  ;;  %v1349_v13 = vadd.f32 1.0, %v4375_v9  ;;  %4402 = vpow2.f32 %v3476_v6  ;;  %3586 = vmatprep.mubr.msk.bf16.mxu0 %vm3585_vm1, %v5041_v29  ;;  %v1070_v40 = vpop.f32.mrf.mxu1 }
 0x264   :  { %v4379_v14 = vpop.eup %4378  ;;  %4404 = vpow2.f32 %v3477_v33  ;;  %v3478_v15 = vmul.f32 -1.442695, %v1069_v10  ;;  %v1071_v16 = vadd.f32 %v1070_v40, %v5242_v36  ;;  %3588 = vmatmul.mubr.msk.bf16.gmra.mxu0 %vm3587_vm3, %v5041_v29  ;;  %vm1598_vm4 = vcmp.lt.f32.partialorder %v1534_v17, %v4377_v11 }
 0x265   :  { %v4381_v19 = vpop.eup %4380  ;;  %4406 = vrcp.f32 %v1349_v13  ;;  %v1350_v20 = vadd.f32 1.0, %v4379_v14  ;;  %v1072_v22 = vpop.f32.mrf.mxu1  ;;  %v1543_v14 = vld [vmem:[#allocation10 + $0x110] sm:$0xff] }
 0x266   :  { %v4383_v25 = vpop.eup %4382  ;;  %4408 = vpow2.f32 %v3478_v15  ;;  %v3479_v27 = vmul.f32 -1.442695, %v1071_v16  ;;  %v1073_v42 = vadd.f32 %v1072_v22, %v5244_v12  ;;  %vm1599_vm5 = vcmp.lt.f32.partialorder %v1535_v18, %v4381_v19  ;;  %v1542_v22 = vld [vmem:[#allocation10 + $0x108] sm:$0xff] }
 0x267   :  { %v4385_v43 = vpop.eup %4384  ;;  %4410 = vrcp.f32 %v1350_v20  ;;  %v1351_v28 = vadd.f32 1.0, %v4383_v25  ;;  %v1076_v31 = vpop.f32.mrf.mxu1  ;;  %vm3591_vm9 = vmpackc.low %vm1599_vm5, %vm1597_vm8  ;;  %v1541_v25 = vld [vmem:[#allocation10 + $0x100] sm:$0xff] }
 0x268   :  { %v4387_v46 = vpop.eup %4386  ;;  %4412 = vpow2.f32 %v3479_v27  ;;  %v3480_v35 = vmul.f32 -1.442695, %v1073_v42  ;;  %v1077_v37 = vadd.f32 %v1076_v31, %v5242_v36  ;;  %vm1600_vm6 = vcmp.lt.f32.partialorder %v1536_v24, %v4385_v43  ;;  %v1544_v24 = vld [vmem:[#allocation10 + $0x118] sm:$0xff] }
 0x269   :  { %v4389_v38 = vpop.eup %4388  ;;  %4414 = vrcp.f32 %v1351_v28  ;;  %v1352_v50 = vadd.f32 1.0, %v4387_v46  ;;  %v1078_v39 = vpop.f32.mrf.mxu1  ;;  %vm3589_vm7 = vmpackc.low %vm1600_vm6, %vm1598_vm4 }
 0x26a   :  { %v4391_v41 = vpop.eup %4390  ;;  %4416 = vpow2.f32 %v3480_v35  ;;  %v3481_v44 = vmul.f32 -1.442695, %v1077_v37  ;;  %v1079_v45 = vadd.f32 %v1078_v39, %v5244_v12  ;;  %3590 = vmatprep.mubr.msk.bf16.mxu0 %vm3589_vm7, %v5041_v29  ;;  %vm1601_vm14 = vcmp.lt.f32.partialorder %v1537_v26, %v4389_v38 }
 0x26b   :  { %v4393_v47 = vpop.eup %4392  ;;  %4418 = vrcp.f32 %v1352_v50  ;;  %v1353_v48 = vadd.f32 1.0, %v4391_v41  ;;  %v1080_v52 = vpop.f32.mrf.mxu1 }
 0x26c   :  { %v4395_v49 = vpop.eup %4394  ;;  %4420 = vpow2.f32 %v3481_v44  ;;  %v3482_v51 = vmul.f32 -1.442695, %v1079_v45  ;;  %v1081_v53 = vadd.f32 %v1080_v52, %v5242_v36  ;;  %3592 = vmatmul.mubr.msk.bf16.gmra.mxu0 %vm3591_vm9, %v5041_v29  ;;  %vm1602_vm10 = vcmp.lt.f32.partialorder %v1538_v2, %v4393_v47 }
 0x26d   :  { %v4397_v21 = vpop.eup %4396  ;;  %4422 = vrcp.f32 %v1353_v48  ;;  %v1354_v23 = vadd.f32 1.0, %v4395_v49  ;;  %v1082_v55 = vpop.f32.mrf.mxu1  ;;  %v1547_v49 = vld [vmem:[#allocation10 + $0x130] sm:$0xff] }
 0x26e   :  { %v4399_v58 = vpop.eup %4398  ;;  %4424 = vpow2.f32 %v3482_v51  ;;  %v3483_v56 = vmul.f32 -1.442695, %v1081_v53  ;;  %v1083_v59 = vadd.f32 %v1082_v55, %v5244_v12  ;;  %vm1603_vm11 = vcmp.lt.f32.partialorder %v1539_v54, %v4397_v21  ;;  %v1546_v55 = vld [vmem:[#allocation10 + $0x128] sm:$0xff] }
 0x26f   :  { %v4401_v60 = vpop.eup %4400  ;;  %4426 = vrcp.f32 %v1354_v23  ;;  %v1355_v62 = vadd.f32 1.0, %v4399_v58  ;;  %v1086_v30 = vpop.f32.mrf.mxu1  ;;  %vm3595_vm15 = vmpackc.low %vm1603_vm11, %vm1601_vm14 }
 0x270   :  { %v4403_v63 = vpop.eup %4402  ;;  %4428 = vpow2.f32 %v3483_v56  ;;  %v3484_v0 = vmul.f32 -1.442695, %v1083_v59  ;;  %v1087_v1 = vadd.f32 %v1086_v30, %v5242_v36  ;;  %vm1604_vm12 = vcmp.lt.f32.partialorder %v1540_v57, %v4401_v60  ;;  %v1548_v57 = vld [vmem:[#allocation10 + $0x138] sm:$0xff]  ;;  %v1545_v59 = vld [vmem:[#allocation10 + $0x120] sm:$0xff] }
 0x271   :  { %v4405_v3 = vpop.eup %4404  ;;  %4430 = vrcp.f32 %v1355_v62  ;;  %v1356_v4 = vadd.f32 1.0, %v4403_v63  ;;  %v1088_v5 = vpop.f32.mrf.mxu1  ;;  %vm3593_vm13 = vmpackc.low %vm1604_vm12, %vm1602_vm10 }
 0x272   :  { %v4407_v6 = vpop.eup %4406  ;;  %v1357_v7 = vadd.f32 1.0, %v4405_v3  ;;  %4432 = vpow2.f32 %v3484_v0  ;;  %v3485_v32 = vmul.f32 -1.442695, %v1087_v1  ;;  %v1089_v8 = vadd.f32 %v1088_v5, %v5244_v12  ;;  %3594 = vmatprep.mubr.msk.bf16.mxu0 %vm3593_vm13, %v5041_v29 }
 0x273   :  { %v4409_v9 = vpop.eup %4408  ;;  %4434 = vrcp.f32 %v1356_v4  ;;  %v1090_v33 = vpop.f32.mrf.mxu1  ;;  %vm1605_vm3 = vcmp.lt.f32.partialorder %v1541_v25, %v4407_v6 }
 0x274   :  { %v4411_v10 = vpop.eup %4410  ;;  %4436 = vrcp.f32 %v1357_v7  ;;  %v1358_v11 = vadd.f32 1.0, %v4409_v9  ;;  %v3486_v13 = vmul.f32 -1.442695, %v1089_v8  ;;  %v1091_v40 = vadd.f32 %v1090_v33, %v5242_v36  ;;  %3596 = vmatmul.mubr.msk.bf16.gmra.mxu0 %vm3595_vm15, %v5041_v29  ;;  %v1550_v33 = vld [vmem:[#allocation10 + $0x148] sm:$0xff] }
 0x275   :  { %v4413_v15 = vpop.eup %4412  ;;  %4438 = vpow2.f32 %v3485_v32  ;;  %v1092_v16 = vpop.f32.mrf.mxu1  ;;  %vm1606_vm1 = vcmp.lt.f32.partialorder %v1542_v22, %v4411_v10  ;;  %v1551_v10 = vld [vmem:[#allocation10 + $0x150] sm:$0xff]  ;;  %v1549_v22 = vld [vmem:[#allocation10 + $0x140] sm:$0xff] }
 0x276   :  { %v4415_v17 = vpop.eup %4414  ;;  %4440 = vrcp.f32 %v1358_v11  ;;  %v1359_v18 = vadd.f32 1.0, %v4413_v15  ;;  %v3487_v19 = vmul.f32 -1.442695, %v1091_v40  ;;  %v1093_v20 = vadd.f32 %v1092_v16, %v5244_v12 }
 0x277   :  { %v4417_v27 = vpop.eup %4416  ;;  %4442 = vpow2.f32 %v3486_v13  ;;  %v1096_v42 = vpop.f32.mrf.mxu1  ;;  %vm1607_vm0 = vcmp.lt.f32.partialorder %v1543_v14, %v4415_v17  ;;  %v1552_v14 = vld [vmem:[#allocation10 + $0x158] sm:$0xff] }
 0x278   :  { %v4419_v43 = vpop.eup %4418  ;;  %4444 = vrcp.f32 %v1359_v18  ;;  %v1360_v28 = vadd.f32 1.0, %v4417_v27  ;;  %v3488_v31 = vmul.f32 -1.442695, %v1093_v20  ;;  %v1097_v34 = vadd.f32 %v1096_v42, %v5242_v36  ;;  %vm3599_vm5 = vmpackc.low %vm1607_vm0, %vm1605_vm3 }
 0x279   :  { %v4421_v46 = vpop.eup %4420  ;;  %4446 = vpow2.f32 %v3487_v19  ;;  %v1098_v35 = vpop.f32.mrf.mxu1  ;;  %vm1608_vm2 = vcmp.lt.f32.partialorder %v1544_v24, %v4419_v43 }
 0x27a   :  { %v4423_v37 = vpop.eup %4422  ;;  %4448 = vrcp.f32 %v1360_v28  ;;  %v1361_v38 = vadd.f32 1.0, %v4421_v46  ;;  %v3489_v50 = vmul.f32 -1.442695, %v1097_v34  ;;  %v1099_v39 = vadd.f32 %v1098_v35, %v5244_v12  ;;  %vm3597_vm4 = vmpackc.low %vm1608_vm2, %vm1606_vm1 }
 0x27b   :  { %v4425_v41 = vpop.eup %4424  ;;  %4450 = vpow2.f32 %v3488_v31  ;;  %3598 = vmatprep.mubr.msk.bf16.mxu0 %vm3597_vm4, %v5041_v29  ;;  %v1100_v44 = vpop.f32.mrf.mxu1  ;;  %vm1609_vm10 = vcmp.lt.f32.partialorder %v1545_v59, %v4423_v37 }
 0x27c   :  { %v4427_v45 = vpop.eup %4426  ;;  %4452 = vrcp.f32 %v1361_v38  ;;  %v1362_v47 = vadd.f32 1.0, %v4425_v41  ;;  %v3490_v48 = vmul.f32 -1.442695, %v1099_v39  ;;  %v1101_v52 = vadd.f32 %v1100_v44, %v5242_v36  ;;  %3600 = vmatmul.mubr.msk.bf16.gmra.mxu0 %vm3599_vm5, %v5041_v29  ;;  %v1554_v44 = vld [vmem:[#allocation10 + $0x168] sm:$0xff] }
 0x27d   :  { %v4429_v51 = vpop.eup %4428  ;;  %4454 = vpow2.f32 %v3489_v50  ;;  %v1102_v53 = vpop.f32.mrf.mxu1  ;;  %vm1610_vm7 = vcmp.lt.f32.partialorder %v1546_v55, %v4427_v45 }
 0x27e   :  { %v4431_v2 = vpop.eup %4430  ;;  %4456 = vrcp.f32 %v1362_v47  ;;  %v1363_v54 = vadd.f32 1.0, %v4429_v51  ;;  %v3491_v21 = vmul.f32 -1.442695, %v1101_v52  ;;  %v1103_v23 = vadd.f32 %v1102_v53, %v5244_v12  ;;  %v1556_v52 = vld [vmem:[#allocation10 + $0x178] sm:$0xff] }
 0x27f   :  { %v4433_v58 = vpop.eup %4432  ;;  %4458 = vpow2.f32 %v3490_v48  ;;  %v1106_v56 = vpop.f32.mrf.mxu1  ;;  %vm1611_vm6 = vcmp.lt.f32.partialorder %v1547_v49, %v4431_v2  ;;  %v1555_v49 = vld [vmem:[#allocation10 + $0x170] sm:$0xff] }
 0x280   :  { %v4435_v26 = vpop.eup %4434  ;;  %4460 = vrcp.f32 %v1363_v54  ;;  %v1364_v60 = vadd.f32 1.0, %v4433_v58  ;;  %v3492_v62 = vmul.f32 -1.442695, %v1103_v23  ;;  %v1107_v30 = vadd.f32 %v1106_v56, %v5242_v36  ;;  %vm3603_vm11 = vmpackc.low %vm1611_vm6, %vm1609_vm10  ;;  %v1553_v23 = vld [vmem:[#allocation10 + $0x160] sm:$0xff] }
 0x281   :  { %v4437_v63 = vpop.eup %4436  ;;  %4462 = vpow2.f32 %v3491_v21  ;;  %v1108_v0 = vpop.f32.mrf.mxu1  ;;  %vm1612_vm8 = vcmp.lt.f32.partialorder %v1548_v57, %v4435_v26 }
 0x282   :  { %v4439_v1 = vpop.eup %4438  ;;  %4464 = vrcp.f32 %v1364_v60  ;;  %v3493_v3 = vmul.f32 -1.442695, %v1107_v30  ;;  %v1109_v4 = vadd.f32 %v1108_v0, %v5244_v12  ;;  %vm3601_vm9 = vmpackc.low %vm1612_vm8, %vm1610_vm7  ;;  %vm1613_vm0 = vcmp.lt.f32.partialorder %v1549_v22, %v4437_v63  ;;  %v1559_v0 = vld [vmem:[#allocation10 + $0x190] sm:$0xff]  ;;  %v1561_v22 = vld [vmem:[#allocation10 + $0x1a0] sm:$0xff] }
 0x283   :  { %v4441_v5 = vpop.eup %4440  ;;  %v1365_v6 = vadd.f32 1.0, %v4439_v1  ;;  %4466 = vpow2.f32 %v3492_v62  ;;  %3602 = vmatprep.mubr.msk.bf16.mxu0 %vm3601_vm9, %v5041_v29  ;;  %v1110_v7 = vpop.f32.mrf.mxu1 }
 0x284   :  { %v4443_v32 = vpop.eup %4442  ;;  %4468 = vpow2.f32 %v3493_v3  ;;  %v3494_v8 = vmul.f32 -1.442695, %v1109_v4  ;;  %v1111_v9 = vadd.f32 %v1110_v7, %v5242_v36  ;;  %3604 = vmatmul.mubr.msk.bf16.gmra.mxu0 %vm3603_vm11, %v5041_v29  ;;  %vm1614_vm12 = vcmp.lt.f32.partialorder %v1550_v33, %v4441_v5  ;;  %v1558_v4 = vld [vmem:[#allocation10 + $0x188] sm:$0xff]  ;;  %v1560_v5 = vld [vmem:[#allocation10 + $0x198] sm:$0xff]  ;;  %v1557_v7 = vld [vmem:[#allocation10 + $0x180] sm:$0xff] }
 0x285   :  { %v4445_v11 = vpop.eup %4444  ;;  %4470 = vrcp.f32 %v1365_v6  ;;  %v1366_v13 = vadd.f32 1.0, %v4443_v32  ;;  %v1112_v40 = vpop.f32.mrf.mxu1 }
 0x286   :  { %v4447_v15 = vpop.eup %4446  ;;  %4472 = vpow2.f32 %v3494_v8  ;;  %v3495_v16 = vmul.f32 -1.442695, %v1111_v9  ;;  %v1113_v17 = vadd.f32 %v1112_v40, %v5244_v12  ;;  %vm1615_vm13 = vcmp.lt.f32.partialorder %v1551_v10, %v4445_v11 }
 0x287   :  { %v4449_v18 = vpop.eup %4448  ;;  %4474 = vrcp.f32 %v1366_v13  ;;  %v1367_v19 = vadd.f32 1.0, %v4447_v15  ;;  %v1116_v20 = vpop.f32.mrf.mxu1  ;;  %vm3607_vm1 = vmpackc.low %vm1615_vm13, %vm1613_vm0  ;;  %v1563_v15 = vld [vmem:[#allocation10 + $0x1b0] sm:$0xff] }
 0x288   :  { %v4451_v24 = vpop.eup %4450  ;;  %4476 = vpow2.f32 %v3495_v16  ;;  %v3496_v25 = vmul.f32 -1.442695, %v1113_v17  ;;  %v1117_v27 = vadd.f32 %v1116_v20, %v5242_v36  ;;  %vm1616_vm14 = vcmp.lt.f32.partialorder %v1552_v14, %v4449_v18  ;;  %v1562_v18 = vld [vmem:[#allocation10 + $0x1a8] sm:$0xff] }
 0x289   :  { %v4453_v42 = vpop.eup %4452  ;;  %4478 = vrcp.f32 %v1367_v19  ;;  %v1368_v43 = vadd.f32 1.0, %v4451_v24  ;;  %v1118_v28 = vpop.f32.mrf.mxu1  ;;  %vm3605_vm15 = vmpackc.low %vm1616_vm14, %vm1614_vm12  ;;  %v1564_v19 = vld [vmem:[#allocation10 + $0x1b8] sm:$0xff] }
 0x28a   :  { %v4455_v31 = vpop.eup %4454  ;;  %4480 = vpow2.f32 %v3496_v25  ;;  %v3497_v34 = vmul.f32 -1.442695, %v1117_v27  ;;  %v1119_v46 = vadd.f32 %v1118_v28, %v5244_v12  ;;  %3606 = vmatprep.mubr.msk.bf16.mxu0 %vm3605_vm15, %v5041_v29  ;;  %vm1617_vm6 = vcmp.lt.f32.partialorder %v1553_v23, %v4453_v42  ;;  %v1568_v28 = vld [vmem:[#allocation10 + $0x1d8] sm:$0xff] }
 0x28b   :  { %v4457_v35 = vpop.eup %4456  ;;  %4482 = vrcp.f32 %v1368_v43  ;;  %v1369_v37 = vadd.f32 1.0, %v4455_v31  ;;  %v1120_v38 = vpop.f32.mrf.mxu1  ;;  %v1566_v43 = vld [vmem:[#allocation10 + $0x1c8] sm:$0xff]  ;;  %v1567_v31 = vld [vmem:[#allocation10 + $0x1d0] sm:$0xff] }
 0x28c   :  { %v4459_v50 = vpop.eup %4458  ;;  %4484 = vpow2.f32 %v3497_v34  ;;  %v3498_v39 = vmul.f32 -1.442695, %v1119_v46  ;;  %v1121_v41 = vadd.f32 %v1120_v38, %v5242_v36  ;;  %3608 = vmatmul.mubr.msk.bf16.gmra.mxu0 %vm3607_vm1, %v5041_v29  ;;  %vm1618_vm2 = vcmp.lt.f32.partialorder %v1554_v44, %v4457_v35  ;;  %v1565_v35 = vld [vmem:[#allocation10 + $0x1c0] sm:$0xff] }
 0x28d   :  { %v4461_v45 = vpop.eup %4460  ;;  %4486 = vrcp.f32 %v1369_v37  ;;  %v1370_v47 = vadd.f32 1.0, %v4459_v50  ;;  %v1122_v48 = vpop.f32.mrf.mxu1  ;;  %v1570_v50 = vld [vmem:[#allocation10 + $0x1e8] sm:$0xff] }
 0x28e   :  { %v4463_v51 = vpop.eup %4462  ;;  %4488 = vpow2.f32 %v3498_v39  ;;  %v3499_v53 = vmul.f32 -1.442695, %v1121_v41  ;;  %v1123_v2 = vadd.f32 %v1122_v48, %v5244_v12  ;;  %vm1619_vm4 = vcmp.lt.f32.partialorder %v1555_v49, %v4461_v45  ;;  %v1572_v39 = vld [vmem:[#allocation10 + $0x1f8] sm:$0xff]  ;;  %v1571_v41 = vld [vmem:[#allocation10 + $0x1f0] sm:$0xff] }
 0x28f   :  { %v4465_v54 = vpop.eup %4464  ;;  %4490 = vrcp.f32 %v1370_v47  ;;  %v1371_v21 = vadd.f32 1.0, %v4463_v51  ;;  %vm3611_vm7 = vmpackc.low %vm1619_vm4, %vm1617_vm6  ;;  %v1569_v47 = vld [vmem:[#allocation10 + $0x1e0] sm:$0xff] }
 0x290   :  { %v4467_v55 = vpop.eup %4466  ;;  %4492 = vpow2.f32 %v3499_v53  ;;  %v3500_v57 = vmul.f32 -1.442695, %v1123_v2  ;;  %vm1620_vm3 = vcmp.lt.f32.partialorder %v1556_v52, %v4465_v54  ;;  %v5356_v53 = vld [vmem:[%s5558_s3] ss:$0 sm:$0xff]  ;;  %s5043_s3 = smov [#allocation11]  }
 0x291   :  { %v4469_v58 = vpop.eup %4468  ;;  %4494 = vrcp.f32 %v1371_v21  ;;  %v1372_v56 = vadd.f32 1.0, %v4467_v55  ;;  %vm3609_vm5 = vmpackc.low %vm1620_vm3, %vm1618_vm2  ;;  %s3294_s9 = sshll.u32 %s5043_s3, 4  ;;  %s3295_s9 = int_to_ptr.vmem [resolvable:$true] %s3294_s9 }
 0x292   :  { %v4471_v59 = vpop.eup %4470  ;;  %4496 = vpow2.f32 %v3500_v57  ;;  %3610 = vmatprep.mubr.msk.bf16.mxu0 %vm3609_vm5, %v5041_v29  ;;  %v1373_v63 = vadd.f32 1.0, %v4469_v58  ;;  %s5001_s10 = scalar_lea.vmem %s3295_s9, 8192  ;;  %p5006_p12 = scmp.lt.s32.totalorder %s3295_s9, %s3295_s9 }
 0x293   :  { %v4473_v26 = vpop.eup %4472  ;;  %4498 = vrcp.f32 %v1372_v56  ;;  %vm1621_vm12 = vcmp.lt.f32.partialorder %v1557_v7, %v4471_v59  ;;  %p5002_p11 = scmp.ne.s32.totalorder %s3295_s9, %s5001_s10  ;;  %p5007_p13 = scmp.lt.s32.totalorder %s5001_s10, %s5001_s10 }
 0x294   :  { %v4475_v60 = vpop.eup %4474  ;;  %v1374_v62 = vadd.f32 1.0, %v4473_v26  ;;  %3612 = vmatmul.mubr.msk.bf16.gmra.mxu0 %vm3611_vm7, %v5041_v29 }
 0x295   :  { %v4477_v30 = vpop.eup %4476  ;;  %vm1622_vm9 = vcmp.lt.f32.partialorder %v1558_v4, %v4475_v60  ;;  %p5008_p0 = por %p5007_p13, %p5006_p12 }
 0x296   :  { %v4479_v1 = vpop.eup %4478  ;;  %v1375_v3 = vadd.f32 1.0, %v4477_v30  ;;  %4500 = vrcp.f32 %v1374_v62 }
 0x297   :  { %v4481_v6 = vpop.eup %4480  ;;  %vm1623_vm8 = vcmp.lt.f32.partialorder %v1559_v0, %v4479_v1  ;;  %p5009_p1 = pnand %p5008_p0, %p5002_p11 }
 0x298   :  { %v4483_v32 = vpop.eup %4482  ;;  %4502 = vrcp.f32 %v1375_v3  ;;  %v1376_v8 = vadd.f32 1.0, %v4481_v6  ;;  %vm3615_vm13 = vmpackc.low %vm1623_vm8, %vm1621_vm12 }
 0x299   :  { %v4485_v9 = vpop.eup %4484  ;;  %4504 = vrcp.f32 %v1373_v63  ;;  %vm1624_vm10 = vcmp.lt.f32.partialorder %v1560_v5, %v4483_v32 }
 0x29a   :  { %v4487_v33 = vpop.eup %4486  ;;  %4506 = vrcp.f32 %v1376_v8  ;;  %vm3613_vm11 = vmpackc.low %vm1624_vm10, %vm1622_vm9  ;;  %v1377_v14 = vadd.f32 1.0, %v4485_v9 }
 0x29b   :  { %v4489_v10 = vpop.eup %4488  ;;  %3614 = vmatprep.mubr.msk.bf16.mxu0 %vm3613_vm11, %v5041_v29  ;;  %vm1625_vm2 = vcmp.lt.f32.partialorder %v1561_v22, %v4487_v33 }
 0x29c   :  { %v4491_v11 = vpop.eup %4490  ;;  %v1378_v13 = vadd.f32 1.0, %v4489_v10  ;;  %3616 = vmatmul.mubr.msk.bf16.gmra.mxu0 %vm3615_vm13, %v5041_v29 }
 0x29d   :  { %v4493_v40 = vpop.eup %4492  ;;  %vm1626_vm15 = vcmp.lt.f32.partialorder %v1562_v18, %v4491_v11 }
 0x29e   :  { %v4495_v16 = vpop.eup %4494  ;;  %v1379_v17 = vadd.f32 1.0, %v4493_v40  ;;  %4508 = vrcp.f32 %v1378_v13 }
 0x29f   :  { %v4497_v20 = vpop.eup %4496  ;;  %vm1627_vm14 = vcmp.lt.f32.partialorder %v1563_v15, %v4495_v16 }
 0x2a0   :  { %v4499_v24 = vpop.eup %4498  ;;  %4510 = vrcp.f32 %v1379_v17  ;;  %v1380_v25 = vadd.f32 1.0, %v4497_v20  ;;  %vm3619_vm3 = vmpackc.low %vm1627_vm14, %vm1625_vm2 }
 0x2a1   :  { %4512 = vrcp.f32 %v1377_v14  ;;  %vm1628_vm0 = vcmp.lt.f32.partialorder %v1564_v19, %v4499_v24 }
 0x2a2   :  { %4514 = vrcp.f32 %v1380_v25  ;;  %vm3617_vm1 = vmpackc.low %vm1628_vm0, %vm1626_vm15 }
 0x2a3   :  { %3618 = vmatprep.mubr.msk.bf16.mxu0 %vm3617_vm1, %v5041_v29  ;;  %v4501_v27 = vpop.eup %4500 }
 0x2a4   :  { %3620 = vmatmul.mubr.msk.bf16.gmra.mxu0 %vm3619_vm3, %v5041_v29  ;;  %vm1630_vm4 = vcmp.lt.f32.partialorder %v1566_v43, %v4501_v27 }
 0x2a5   :  { %v4503_v42 = vpop.eup %4502 }
 0x2a6   :  { %v4505_v34 = vpop.eup %4504  ;;  %vm1631_vm6 = vcmp.lt.f32.partialorder %v1567_v31, %v4503_v42 }
 0x2a7   :  { %v4507_v46 = vpop.eup %4506  ;;  %vm1629_vm8 = vcmp.lt.f32.partialorder %v1565_v35, %v4505_v34 }
 0x2a8   :  { %vm1632_vm5 = vcmp.lt.f32.partialorder %v1568_v28, %v4507_v46  ;;  %vm3623_vm9 = vmpackc.low %vm1631_vm6, %vm1629_vm8 }
 0x2a9   :  { %vm3621_vm7 = vmpackc.low %vm1632_vm5, %vm1630_vm4 }
 0x2aa   :  { %3622 = vmatprep.mubr.msk.bf16.mxu0 %vm3621_vm7, %v5041_v29 }
 0x2ab   :  { %v4509_v37 = vpop.eup %4508 }
 0x2ac   :  { %3624 = vmatmul.mubr.msk.bf16.gmra.mxu0 %vm3623_vm9, %v5041_v29  ;;  %vm1634_vm10 = vcmp.lt.f32.partialorder %v1570_v50, %v4509_v37 }
 0x2ad   :  { %v4511_v38 = vpop.eup %4510 }
 0x2ae   :  { %v4513_v44 = vpop.eup %4512  ;;  %vm1635_vm12 = vcmp.lt.f32.partialorder %v1571_v41, %v4511_v38 }
 0x2af   :  { %v4515_v45 = vpop.eup %4514  ;;  %vm1633_vm14 = vcmp.lt.f32.partialorder %v1569_v47, %v4513_v44  ;;  %v2152_v47 = vld [vmem:[#allocation8 + $0x108] sm:$0xff] }
 0x2b0   :  { %vm1636_vm11 = vcmp.lt.f32.partialorder %v1572_v39, %v4515_v45  ;;  %vm3627_vm15 = vmpackc.low %vm1635_vm12, %vm1633_vm14  ;;  %v2151_v45 = vld [vmem:[#allocation8 + $0x100] sm:$0xff] }
 0x2b1   :  { %vm3625_vm13 = vmpackc.low %vm1636_vm11, %vm1634_vm10 }
 0x2b2   :  { %3626 = vmatprep.mubr.msk.bf16.mxu0 %vm3625_vm13, %v5041_v29 }
 0x2b4   :  { %3628 = vmatmul.mubr.msk.bf16.gmra.mxu0 %vm3627_vm15, %v5041_v29 }
 0x2fa   :  { %v3981_v48 = vpop.f32.mrf.mxu0 }
 0x2fc   :  { %v3982_v52 = vpop.f32.mrf.mxu0 }
 0x2fd   :  { %v3983_v49 = vadd.f32 %v3982_v52, %v3981_v48 }
 0x2fe   :  { %v3984_v51 = vpop.f32.mrf.mxu0 }
 0x2ff   :  { %v1832_v2 = vadd.f32 %v5356_v53, %v3983_v49 }
 0x300   :  { %v3985_v54 = vpop.f32.mrf.mxu0 }
 0x301   :  { %v3629_v21 = vmul.f32 -1.442695, %v1832_v2  ;;  %v3986_v23 = vadd.f32 %v3985_v54, %v3984_v51 }
 0x302   :  { %v3987_v55 = vpop.f32.mrf.mxu0 }
 0x303   :  { %4516 = vpow2.f32 %v3629_v21  ;;  %v1835_v57 = vadd.f32 %v5356_v53, %v3986_v23 }
 0x304   :  { %v3988_v58 = vpop.f32.mrf.mxu0 }
 0x305   :  { %v3630_v56 = vmul.f32 -1.442695, %v1835_v57  ;;  %v3989_v59 = vadd.f32 %v3988_v58, %v3987_v55 }
 0x306   :  { %v3990_v26 = vpop.f32.mrf.mxu0 }
 0x307   :  { %4518 = vpow2.f32 %v3630_v56  ;;  %v1840_v60 = vadd.f32 %v5356_v53, %v3989_v59 }
 0x308   :  { %v3991_v62 = vpop.f32.mrf.mxu0 }
 0x309   :  { %v3631_v30 = vmul.f32 -1.442695, %v1840_v60  ;;  %v3992_v63 = vadd.f32 %v3991_v62, %v3990_v26 }
 0x30b   :  { %4520 = vpow2.f32 %v3631_v30  ;;  %v1843_v0 = vadd.f32 %v5356_v53, %v3992_v63  ;;  %v3993_v1 = vpop.f32.mrf.mxu0  ;;  %v2153_v30 = vld [vmem:[#allocation8 + $0x110] sm:$0xff]  ;;  %v2154_v63 = vld [vmem:[#allocation8 + $0x118] sm:$0xff] }
 0x30d   :  { %v3632_v3 = vmul.f32 -1.442695, %v1843_v0  ;;  %v3994_v4 = vpop.f32.mrf.mxu0 }
 0x30e   :  { %v3995_v5 = vadd.f32 %v3994_v4, %v3993_v1 }
 0x30f   :  { %4522 = vpow2.f32 %v3632_v3  ;;  %v3996_v6 = vpop.f32.mrf.mxu0 }
 0x310   :  { %v4517_v7 = vpop.eup %4516  ;;  %v1848_v32 = vadd.f32 %v5356_v53, %v3995_v5 }
 0x311   :  { %v2054_v8 = vadd.f32 1.0, %v4517_v7  ;;  %v3997_v9 = vpop.f32.mrf.mxu0 }
 0x312   :  { %v3633_v33 = vmul.f32 -1.442695, %v1848_v32  ;;  %v3998_v10 = vadd.f32 %v3997_v9, %v3996_v6 }
 0x313   :  { %v3999_v11 = vpop.f32.mrf.mxu0 }
 0x314   :  { %v4519_v13 = vpop.eup %4518  ;;  %4524 = vpow2.f32 %v3633_v33  ;;  %v1851_v40 = vadd.f32 %v5356_v53, %v3998_v10 }
 0x315   :  { %4526 = vrcp.f32 %v2054_v8  ;;  %v2055_v14 = vadd.f32 1.0, %v4519_v13  ;;  %v4000_v15 = vpop.f32.mrf.mxu0 }
 0x316   :  { %v3634_v16 = vmul.f32 -1.442695, %v1851_v40  ;;  %v4001_v17 = vadd.f32 %v4000_v15, %v3999_v11 }
 0x317   :  { %4528 = vrcp.f32 %v2055_v14  ;;  %v4002_v18 = vpop.f32.mrf.mxu0 }
 0x318   :  { %v4521_v19 = vpop.eup %4520  ;;  %4530 = vpow2.f32 %v3634_v16  ;;  %v1856_v20 = vadd.f32 %v5356_v53, %v4001_v17  ;;  %v2155_v17 = vld [vmem:[#allocation8 + $0x120] sm:$0xff] }
 0x319   :  { %v2056_v22 = vadd.f32 1.0, %v4521_v19  ;;  %v4003_v24 = vpop.f32.mrf.mxu0 }
 0x31a   :  { %v3635_v25 = vmul.f32 -1.442695, %v1856_v20  ;;  %v4004_v27 = vadd.f32 %v4003_v24, %v4002_v18  ;;  %v2156_v18 = vld [vmem:[#allocation8 + $0x128] sm:$0xff] }
 0x31c   :  { %v4523_v42 = vpop.eup %4522  ;;  %4532 = vpow2.f32 %v3635_v25  ;;  %v1859_v43 = vadd.f32 %v5356_v53, %v4004_v27  ;;  %v4005_v28 = vpop.f32.mrf.mxu0 }
 0x31d   :  { %4534 = vrcp.f32 %v2056_v22  ;;  %v2057_v31 = vadd.f32 1.0, %v4523_v42 }
 0x31e   :  { %v3636_v34 = vmul.f32 -1.442695, %v1859_v43  ;;  %v4006_v46 = vpop.f32.mrf.mxu0 }
 0x31f   :  { %4536 = vrcp.f32 %v2057_v31  ;;  %v4007_v35 = vadd.f32 %v4006_v46, %v4005_v28 }
 0x320   :  { %4538 = vpow2.f32 %v3636_v34  ;;  %v4008_v37 = vpop.f32.mrf.mxu0 }
 0x321   :  { %v4525_v38 = vpop.eup %4524  ;;  %v1864_v50 = vadd.f32 %v5356_v53, %v4007_v35 }
 0x322   :  { %v4527_v39 = vpop.eup %4526  ;;  %v2058_v41 = vadd.f32 1.0, %v4525_v38  ;;  %v4009_v44 = vpop.f32.mrf.mxu0 }
 0x323   :  { %v3637_v48 = vmul.f32 -1.442695, %v1864_v50  ;;  %v4010_v52 = vadd.f32 %v4009_v44, %v4008_v37  ;;  %vm2183_vm0 = vcmp.lt.f32.partialorder %v2151_v45, %v4527_v39  ;;  %v2157_v39 = vld [vmem:[#allocation8 + $0x130] sm:$0xff] }
 0x324   :  { %v4529_v49 = vpop.eup %4528  ;;  %v4011_v51 = vpop.f32.mrf.mxu0 }
 0x325   :  { %v4531_v2 = vpop.eup %4530  ;;  %4540 = vpow2.f32 %v3637_v48  ;;  %v1867_v54 = vadd.f32 %v5356_v53, %v4010_v52  ;;  %vm2184_vm1 = vcmp.lt.f32.partialorder %v2152_v47, %v4529_v49 }
 0x326   :  { %4542 = vrcp.f32 %v2058_v41  ;;  %v2059_v21 = vadd.f32 1.0, %v4531_v2  ;;  %v4012_v23 = vpop.f32.mrf.mxu0  ;;  %vm3693_vm2 = vmpackc.low %vm2184_vm1, %vm2183_vm0  ;;  %v2158_v41 = vld [vmem:[#allocation8 + $0x138] sm:$0xff] }
 0x327   :  { %v3638_v55 = vmul.f32 -1.442695, %v1867_v54  ;;  %v4013_v57 = vadd.f32 %v4012_v23, %v4011_v51  ;;  %3694 = vmatmul.mubr.msk.bf16.vlgmr.msra.gmra.mxu1 %vm3693_vm2, %v5041_v29 }
 0x328   :  { %4544 = vrcp.f32 %v2059_v21  ;;  %v4014_v58 = vpop.f32.mrf.mxu0  ;;  %2337 = vmatprep.mubr.bf16.mxu1 %v5040_v61 }
 0x329   :  { %v4533_v56 = vpop.eup %4532  ;;  %4546 = vpow2.f32 %v3638_v55  ;;  %v1872_v59 = vadd.f32 %v5356_v53, %v4013_v57 }
 0x32a   :  { %v4535_v26 = vpop.eup %4534  ;;  %v2060_v60 = vadd.f32 1.0, %v4533_v56  ;;  %v4015_v62 = vpop.f32.mrf.mxu0 }
 0x32b   :  { %v3639_v0 = vmul.f32 -1.442695, %v1872_v59  ;;  %v4016_v1 = vadd.f32 %v4015_v62, %v4014_v58  ;;  %vm2185_vm3 = vcmp.lt.f32.partialorder %v2153_v30, %v4535_v26  ;;  %v2160_v62 = vld [vmem:[#allocation8 + $0x148] sm:$0xff] }
 0x32c   :  { %v4537_v3 = vpop.eup %4536  ;;  %v4017_v4 = vpop.f32.mrf.mxu0 }
 0x32d   :  { %v4539_v5 = vpop.eup %4538  ;;  %4548 = vpow2.f32 %v3639_v0  ;;  %v1875_v6 = vadd.f32 %v5356_v53, %v4016_v1  ;;  %vm2186_vm4 = vcmp.lt.f32.partialorder %v2154_v63, %v4537_v3 }
 0x32e   :  { %4550 = vrcp.f32 %v2060_v60  ;;  %v2061_v7 = vadd.f32 1.0, %v4539_v5  ;;  %v4018_v32 = vpop.f32.mrf.mxu0  ;;  %vm3695_vm5 = vmpackc.low %vm2186_vm4, %vm2185_vm3  ;;  %v2159_v60 = vld [vmem:[#allocation8 + $0x140] sm:$0xff] }
 0x32f   :  { %v3640_v8 = vmul.f32 -1.442695, %v1875_v6  ;;  %v4019_v9 = vadd.f32 %v4018_v32, %v4017_v4  ;;  %3696 = vmatmul.mubr.msk.bf16.gmra.mxu1 %vm3695_vm5, %v5041_v29 }
 0x330   :  { %4552 = vrcp.f32 %v2061_v7  ;;  %v4020_v33 = vpop.f32.mrf.mxu0  ;;  %2347 = vmatprep.mubr.bf16.mxu1 %v5040_v61 }
 0x331   :  { %4554 = vpow2.f32 %v3640_v8  ;;  %v1880_v10 = vadd.f32 %v5356_v53, %v4019_v9 }
 0x332   :  { %v4541_v11 = vpop.eup %4540  ;;  %v4021_v13 = vpop.f32.mrf.mxu0 }
 0x333   :  { %v4543_v40 = vpop.eup %4542  ;;  %v2062_v14 = vadd.f32 1.0, %v4541_v11  ;;  %v3641_v15 = vmul.f32 -1.442695, %v1880_v10  ;;  %v4022_v16 = vadd.f32 %v4021_v13, %v4020_v33 }
 0x334   :  { %v4023_v19 = vpop.f32.mrf.mxu0  ;;  %vm2187_vm6 = vcmp.lt.f32.partialorder %v2155_v17, %v4543_v40  ;;  %v2161_v40 = vld [vmem:[#allocation8 + $0x150] sm:$0xff] }
 0x335   :  { %v4545_v20 = vpop.eup %4544  ;;  %v1883_v22 = vadd.f32 %v5356_v53, %v4022_v16  ;;  %4556 = vpow2.f32 %v3641_v15 }
 0x336   :  { %v4547_v24 = vpop.eup %4546  ;;  %v4024_v25 = vpop.f32.mrf.mxu0  ;;  %vm2188_vm7 = vcmp.lt.f32.partialorder %v2156_v18, %v4545_v20  ;;  %4558 = vrcp.f32 %v2062_v14  ;;  %v2162_v14 = vld [vmem:[#allocation8 + $0x158] sm:$0xff] }
 0x337   :  { %v2063_v27 = vadd.f32 1.0, %v4547_v24  ;;  %v3642_v42 = vmul.f32 -1.442695, %v1883_v22  ;;  %v4025_v43 = vadd.f32 %v4024_v25, %v4023_v19  ;;  %vm3697_vm8 = vmpackc.low %vm2188_vm7, %vm2187_vm6 }
 0x338   :  { %v4026_v28 = vpop.f32.mrf.mxu0  ;;  %3698 = vmatmul.mubr.msk.bf16.gmra.mxu1 %vm3697_vm8, %v5041_v29 }
 0x339   :  { %4560 = vrcp.f32 %v2063_v27  ;;  %v1888_v31 = vadd.f32 %v5356_v53, %v4025_v43  ;;  %2357 = vmatprep.mubr.bf16.mxu1 %v5040_v61 }
 0x33a   :  { %v4549_v34 = vpop.eup %4548  ;;  %4562 = vpow2.f32 %v3642_v42  ;;  %v4027_v46 = vpop.f32.mrf.mxu0 }
 0x33b   :  { %v4551_v35 = vpop.eup %4550  ;;  %v2064_v37 = vadd.f32 1.0, %v4549_v34  ;;  %v3643_v38 = vmul.f32 -1.442695, %v1888_v31  ;;  %v4028_v50 = vadd.f32 %v4027_v46, %v4026_v28 }
 0x33c   :  { %v4029_v44 = vpop.f32.mrf.mxu0  ;;  %vm2189_vm9 = vcmp.lt.f32.partialorder %v2157_v39, %v4551_v35 }
 0x33d   :  { %v4553_v45 = vpop.eup %4552  ;;  %v1891_v47 = vadd.f32 %v5356_v53, %v4028_v50  ;;  %4564 = vpow2.f32 %v3643_v38  ;;  %v2164_v38 = vld [vmem:[#allocation8 + $0x168] sm:$0xff] }
 0x33e   :  { %v4555_v48 = vpop.eup %4554  ;;  %v4030_v52 = vpop.f32.mrf.mxu0  ;;  %vm2190_vm10 = vcmp.lt.f32.partialorder %v2158_v41, %v4553_v45  ;;  %4566 = vrcp.f32 %v2064_v37  ;;  %v2163_v37 = vld [vmem:[#allocation8 + $0x160] sm:$0xff] }
 0x33f   :  { %v2065_v49 = vadd.f32 1.0, %v4555_v48  ;;  %v3644_v51 = vmul.f32 -1.442695, %v1891_v47  ;;  %v4031_v2 = vadd.f32 %v4030_v52, %v4029_v44  ;;  %vm3699_vm11 = vmpackc.low %vm2190_vm10, %vm2189_vm9 }
 0x340   :  { %v4032_v54 = vpop.f32.mrf.mxu0  ;;  %3700 = vmatmul.mubr.msk.bf16.gmra.mxu1 %vm3699_vm11, %v5041_v29 }
 0x341   :  { %4568 = vrcp.f32 %v2065_v49  ;;  %v1896_v21 = vadd.f32 %v5356_v53, %v4031_v2  ;;  %2367 = vmatprep.mubr.bf16.mxu1 %v5040_v61 }
 0x342   :  { %4570 = vpow2.f32 %v3644_v51  ;;  %v4033_v23 = vpop.f32.mrf.mxu0  ;;  %v4557_v55 = vpop.eup %4556 }
 0x343   :  { %v3645_v57 = vmul.f32 -1.442695, %v1896_v21  ;;  %v4034_v58 = vadd.f32 %v4033_v23, %v4032_v54  ;;  %v4559_v56 = vpop.eup %4558  ;;  %v2066_v59 = vadd.f32 1.0, %v4557_v55 }
 0x344   :  { %v4035_v26 = vpop.f32.mrf.mxu0  ;;  %vm2191_vm12 = vcmp.lt.f32.partialorder %v2159_v60, %v4559_v56  ;;  %v2166_v56 = vld [vmem:[#allocation8 + $0x178] sm:$0xff] }
 0x345   :  { %4572 = vpow2.f32 %v3645_v57  ;;  %v1899_v30 = vadd.f32 %v5356_v53, %v4034_v58  ;;  %v2165_v58 = vld [vmem:[#allocation8 + $0x170] sm:$0xff] }
 0x346   :  { %v4561_v63 = vpop.eup %4560  ;;  %v4036_v0 = vpop.f32.mrf.mxu0  ;;  %4574 = vrcp.f32 %v2066_v59 }
 0x347   :  { %v4563_v1 = vpop.eup %4562  ;;  %v3646_v3 = vmul.f32 -1.442695, %v1899_v30  ;;  %v4037_v4 = vadd.f32 %v4036_v0, %v4035_v26  ;;  %vm2192_vm13 = vcmp.lt.f32.partialorder %v2160_v62, %v4561_v63 }
 0x348   :  { %v2067_v5 = vadd.f32 1.0, %v4563_v1  ;;  %v4038_v6 = vpop.f32.mrf.mxu0  ;;  %vm3701_vm14 = vmpackc.low %vm2192_vm13, %vm2191_vm12 }
 0x349   :  { %4576 = vpow2.f32 %v3646_v3  ;;  %v1904_v7 = vadd.f32 %v5356_v53, %v4037_v4  ;;  %3702 = vmatmul.mubr.msk.bf16.gmra.mxu1 %vm3701_vm14, %v5041_v29 }
 0x34a   :  { %4578 = vrcp.f32 %v2067_v5  ;;  %v4039_v32 = vpop.f32.mrf.mxu0  ;;  %2377 = vmatprep.mubr.bf16.mxu1 %v5040_v61  ;;  %v4565_v8 = vpop.eup %4564 }
 0x34b   :  { %v3647_v9 = vmul.f32 -1.442695, %v1904_v7  ;;  %v4040_v33 = vadd.f32 %v4039_v32, %v4038_v6  ;;  %v4567_v10 = vpop.eup %4566  ;;  %v2068_v11 = vadd.f32 1.0, %v4565_v8 }
 0x34c   :  { %v4041_v13 = vpop.f32.mrf.mxu0  ;;  %vm2193_vm15 = vcmp.lt.f32.partialorder %v2161_v40, %v4567_v10 }
 0x34d   :  { %4580 = vpow2.f32 %v3647_v9  ;;  %v1907_v15 = vadd.f32 %v5356_v53, %v4040_v33  ;;  %v2167_v9 = vld [vmem:[#allocation8 + $0x180] sm:$0xff]  ;;  %v2168_v33 = vld [vmem:[#allocation8 + $0x188] sm:$0xff] }
 0x34e   :  { %v4569_v16 = vpop.eup %4568  ;;  %v4042_v17 = vpop.f32.mrf.mxu0  ;;  %4582 = vrcp.f32 %v2068_v11 }
 0x34f   :  { %v4571_v18 = vpop.eup %4570  ;;  %v3648_v19 = vmul.f32 -1.442695, %v1907_v15  ;;  %v4043_v20 = vadd.f32 %v4042_v17, %v4041_v13  ;;  %vm2194_vm0 = vcmp.lt.f32.partialorder %v2162_v14, %v4569_v16 }
 0x350   :  { %v2069_v22 = vadd.f32 1.0, %v4571_v18  ;;  %v4044_v24 = vpop.f32.mrf.mxu0  ;;  %vm3703_vm1 = vmpackc.low %vm2194_vm0, %vm2193_vm15 }
 0x351   :  { %4584 = vpow2.f32 %v3648_v19  ;;  %v1912_v25 = vadd.f32 %v5356_v53, %v4043_v20  ;;  %3704 = vmatmul.mubr.msk.bf16.gmra.mxu1 %vm3703_vm1, %v5041_v29 }
 0x352   :  { %v4573_v27 = vpop.eup %4572  ;;  %4586 = vrcp.f32 %v2069_v22  ;;  %v4045_v42 = vpop.f32.mrf.mxu0  ;;  %2387 = vmatprep.mubr.bf16.mxu1 %v5040_v61 }
 0x353   :  { %v2070_v43 = vadd.f32 1.0, %v4573_v27  ;;  %v3649_v28 = vmul.f32 -1.442695, %v1912_v25  ;;  %v4046_v31 = vadd.f32 %v4045_v42, %v4044_v24  ;;  %v4575_v46 = vpop.eup %4574 }
 0x354   :  { %v4047_v34 = vpop.f32.mrf.mxu0  ;;  %vm2195_vm2 = vcmp.lt.f32.partialorder %v2163_v37, %v4575_v46 }
 0x355   :  { %v1915_v35 = vadd.f32 %v5356_v53, %v4046_v31  ;;  %4588 = vpow2.f32 %v3649_v28  ;;  %v2170_v28 = vld [vmem:[#allocation8 + $0x198] sm:$0xff] }
 0x356   :  { %v4577_v50 = vpop.eup %4576  ;;  %v4048_v39 = vpop.f32.mrf.mxu0  ;;  %4590 = vrcp.f32 %v2070_v43  ;;  %v2169_v43 = vld [vmem:[#allocation8 + $0x190] sm:$0xff] }
 0x357   :  { %v4579_v41 = vpop.eup %4578  ;;  %v2071_v44 = vadd.f32 1.0, %v4577_v50  ;;  %v3650_v45 = vmul.f32 -1.442695, %v1915_v35  ;;  %v4049_v47 = vadd.f32 %v4048_v39, %v4047_v34 }
 0x358   :  { %v4050_v48 = vpop.f32.mrf.mxu0  ;;  %vm2196_vm3 = vcmp.lt.f32.partialorder %v2164_v38, %v4579_v41 }
 0x359   :  { %4592 = vrcp.f32 %v2071_v44  ;;  %v1920_v52 = vadd.f32 %v5356_v53, %v4049_v47  ;;  %vm3705_vm4 = vmpackc.low %vm2196_vm3, %vm2195_vm2 }
 0x35a   :  { %v4581_v49 = vpop.eup %4580  ;;  %4594 = vpow2.f32 %v3650_v45  ;;  %3706 = vmatmul.mubr.msk.bf16.gmra.mxu1 %vm3705_vm4, %v5041_v29  ;;  %v4051_v51 = vpop.f32.mrf.mxu0 }
 0x35b   :  { %v2072_v2 = vadd.f32 1.0, %v4581_v49  ;;  %v3651_v54 = vmul.f32 -1.442695, %v1920_v52  ;;  %v4052_v21 = vadd.f32 %v4051_v51, %v4050_v48  ;;  %2397 = vmatprep.mubr.bf16.mxu1 %v5040_v61  ;;  %v4583_v55 = vpop.eup %4582 }
 0x35c   :  { %v4053_v23 = vpop.f32.mrf.mxu0  ;;  %vm2197_vm5 = vcmp.lt.f32.partialorder %v2165_v58, %v4583_v55 }
 0x35d   :  { %v1923_v57 = vadd.f32 %v5356_v53, %v4052_v21  ;;  %4596 = vpow2.f32 %v3651_v54  ;;  %v2171_v54 = vld [vmem:[#allocation8 + $0x1a0] sm:$0xff]  ;;  %v2172_v21 = vld [vmem:[#allocation8 + $0x1a8] sm:$0xff] }
 0x35e   :  { %v4585_v59 = vpop.eup %4584  ;;  %v4054_v26 = vpop.f32.mrf.mxu0  ;;  %4598 = vrcp.f32 %v2072_v2 }
 0x35f   :  { %v4587_v60 = vpop.eup %4586  ;;  %v2073_v62 = vadd.f32 1.0, %v4585_v59  ;;  %v3652_v30 = vmul.f32 -1.442695, %v1923_v57  ;;  %v4055_v63 = vadd.f32 %v4054_v26, %v4053_v23 }
 0x360   :  { %v4056_v0 = vpop.f32.mrf.mxu0  ;;  %vm2198_vm6 = vcmp.lt.f32.partialorder %v2166_v56, %v4587_v60 }
 0x361   :  { %4600 = vrcp.f32 %v2073_v62  ;;  %v1928_v1 = vadd.f32 %v5356_v53, %v4055_v63  ;;  %vm3707_vm7 = vmpackc.low %vm2198_vm6, %vm2197_vm5 }
 0x362   :  { %4602 = vpow2.f32 %v3652_v30  ;;  %3708 = vmatmul.mubr.msk.bf16.gmra.mxu1 %vm3707_vm7, %v5041_v29  ;;  %v4057_v3 = vpop.f32.mrf.mxu0  ;;  %v4589_v4 = vpop.eup %4588 }
 0x363   :  { %v3653_v5 = vmul.f32 -1.442695, %v1928_v1  ;;  %v4058_v6 = vadd.f32 %v4057_v3, %v4056_v0  ;;  %2407 = vmatprep.mubr.bf16.mxu1 %v5040_v61  ;;  %v4591_v7 = vpop.eup %4590  ;;  %v2074_v32 = vadd.f32 1.0, %v4589_v4 }
 0x364   :  { %v4059_v8 = vpop.f32.mrf.mxu0  ;;  %vm2199_vm8 = vcmp.lt.f32.partialorder %v2167_v9, %v4591_v7 }
 0x365   :  { %4604 = vpow2.f32 %v3653_v5  ;;  %v1931_v10 = vadd.f32 %v5356_v53, %v4058_v6  ;;  %v2173_v5 = vld [vmem:[#allocation8 + $0x1b0] sm:$0xff]  ;;  %v2174_v6 = vld [vmem:[#allocation8 + $0x1b8] sm:$0xff] }
 0x366   :  { %v4593_v11 = vpop.eup %4592  ;;  %v4060_v13 = vpop.f32.mrf.mxu0  ;;  %4606 = vrcp.f32 %v2074_v32 }
 0x367   :  { %v4595_v40 = vpop.eup %4594  ;;  %v3654_v14 = vmul.f32 -1.442695, %v1931_v10  ;;  %v4061_v15 = vadd.f32 %v4060_v13, %v4059_v8  ;;  %vm2200_vm9 = vcmp.lt.f32.partialorder %v2168_v33, %v4593_v11  ;;  %v2175_v11 = vld [vmem:[#allocation8 + $0x1c0] sm:$0xff]  ;;  %v2176_v13 = vld [vmem:[#allocation8 + $0x1c8] sm:$0xff] }
 0x368   :  { %v2075_v16 = vadd.f32 1.0, %v4595_v40  ;;  %v4062_v17 = vpop.f32.mrf.mxu0  ;;  %vm3709_vm10 = vmpackc.low %vm2200_vm9, %vm2199_vm8 }
 0x369   :  { %4608 = vpow2.f32 %v3654_v14  ;;  %v1936_v18 = vadd.f32 %v5356_v53, %v4061_v15 }
 0x36a   :  { %4610 = vrcp.f32 %v2075_v16  ;;  %3710 = vmatmul.mubr.msk.bf16.gmra.mxu1 %vm3709_vm10, %v5041_v29  ;;  %v4063_v19 = vpop.f32.mrf.mxu0  ;;  %v4597_v20 = vpop.eup %4596 }
 0x36b   :  { %v3655_v22 = vmul.f32 -1.442695, %v1936_v18  ;;  %v4064_v24 = vadd.f32 %v4063_v19, %v4062_v17  ;;  %2417 = vmatprep.mubr.bf16.mxu1 %v5040_v61  ;;  %v4599_v25 = vpop.eup %4598  ;;  %v2076_v27 = vadd.f32 1.0, %v4597_v20  ;;  %v2177_v19 = vld [vmem:[#allocation8 + $0x1d0] sm:$0xff]  ;;  %v2178_v20 = vld [vmem:[#allocation8 + $0x1d8] sm:$0xff] }
 0x36c   :  { %v4065_v42 = vpop.f32.mrf.mxu0  ;;  %vm2201_vm11 = vcmp.lt.f32.partialorder %v2169_v43, %v4599_v25  ;;  %v2180_v43 = vld [vmem:[#allocation8 + $0x1e8] sm:$0xff] }
 0x36d   :  { %4612 = vpow2.f32 %v3655_v22  ;;  %v1939_v31 = vadd.f32 %v5356_v53, %v4064_v24 }
 0x36e   :  { %v4601_v34 = vpop.eup %4600  ;;  %v4066_v46 = vpop.f32.mrf.mxu0  ;;  %4614 = vrcp.f32 %v2076_v27 }
 0x36f   :  { %v4603_v35 = vpop.eup %4602  ;;  %v3656_v37 = vmul.f32 -1.442695, %v1939_v31  ;;  %v4067_v38 = vadd.f32 %v4066_v46, %v4065_v42  ;;  %vm2202_vm12 = vcmp.lt.f32.partialorder %v2170_v28, %v4601_v34  ;;  %v2179_v42 = vld [vmem:[#allocation8 + $0x1e0] sm:$0xff]  ;;  %v2181_v34 = vld [vmem:[#allocation8 + $0x1f0] sm:$0xff]  ;;  %v2182_v46 = vld [vmem:[#allocation8 + $0x1f8] sm:$0xff] }
 0x370   :  { %v2077_v50 = vadd.f32 1.0, %v4603_v35  ;;  %v4068_v39 = vpop.f32.mrf.mxu0  ;;  %vm3711_vm13 = vmpackc.low %vm2202_vm12, %vm2201_vm11 }
 0x371   :  { %4616 = vpow2.f32 %v3656_v37  ;;  %v1944_v41 = vadd.f32 %v5356_v53, %v4067_v38 }
 0x372   :  { %v4605_v44 = vpop.eup %4604  ;;  %4618 = vrcp.f32 %v2077_v50  ;;  %3712 = vmatmul.mubr.msk.bf16.gmra.mxu1 %vm3711_vm13, %v5041_v29  ;;  %v4069_v45 = vpop.f32.mrf.mxu0 }
 0x373   :  { %v2078_v47 = vadd.f32 1.0, %v4605_v44  ;;  %v3657_v48 = vmul.f32 -1.442695, %v1944_v41  ;;  %v4070_v52 = vadd.f32 %v4069_v45, %v4068_v39  ;;  %2427 = vmatprep.mubr.bf16.mxu1 %v5040_v61  ;;  %v4607_v51 = vpop.eup %4606 }
 0x374   :  { %v4071_v49 = vpop.f32.mrf.mxu0  ;;  %vm2203_vm14 = vcmp.lt.f32.partialorder %v2171_v54, %v4607_v51 }
 0x375   :  { %v1947_v2 = vadd.f32 %v5356_v53, %v4070_v52  ;;  %4620 = vpow2.f32 %v3657_v48 }
 0x376   :  { %v4609_v23 = vpop.eup %4608  ;;  %v4072_v55 = vpop.f32.mrf.mxu0  ;;  %4622 = vrcp.f32 %v2078_v47 }
 0x377   :  { %v4611_v57 = vpop.eup %4610  ;;  %v2079_v58 = vadd.f32 1.0, %v4609_v23  ;;  %v3658_v56 = vmul.f32 -1.442695, %v1947_v2  ;;  %v4073_v59 = vadd.f32 %v4072_v55, %v4071_v49 }
 0x378   :  { %v4074_v26 = vpop.f32.mrf.mxu0  ;;  %vm2204_vm15 = vcmp.lt.f32.partialorder %v2172_v21, %v4611_v57 }
 0x379   :  { %4624 = vrcp.f32 %v2079_v58  ;;  %v1952_v60 = vadd.f32 %v5356_v53, %v4073_v59  ;;  %vm3713_vm0 = vmpackc.low %vm2204_vm15, %vm2203_vm14 }
 0x37a   :  { %v4613_v62 = vpop.eup %4612  ;;  %4626 = vpow2.f32 %v3658_v56  ;;  %3714 = vmatmul.mubr.msk.bf16.gmra.mxu1 %vm3713_vm0, %v5041_v29  ;;  %v4075_v30 = vpop.f32.mrf.mxu0 }
 0x37b   :  { %v2080_v63 = vadd.f32 1.0, %v4613_v62  ;;  %v3659_v0 = vmul.f32 -1.442695, %v1952_v60  ;;  %v4076_v1 = vadd.f32 %v4075_v30, %v4074_v26  ;;  %2437 = vmatprep.mubr.bf16.mxu1 %v5040_v61  ;;  %v4615_v3 = vpop.eup %4614 }
 0x37c   :  { %vm2205_vm1 = vcmp.lt.f32.partialorder %v2173_v5, %v4615_v3 }
 0x37d   :  { %v1955_v4 = vadd.f32 %v5356_v53, %v4076_v1  ;;  %4628 = vpow2.f32 %v3659_v0 }
 0x37e   :  { %v4617_v7 = vpop.eup %4616  ;;  %4630 = vrcp.f32 %v2080_v63 }
 0x37f   :  { %v4619_v32 = vpop.eup %4618  ;;  %v2081_v8 = vadd.f32 1.0, %v4617_v7  ;;  %v3660_v9 = vmul.f32 -1.442695, %v1955_v4 }
 0x380   :  { %vm2206_vm2 = vcmp.lt.f32.partialorder %v2174_v6, %v4619_v32 }
 0x381   :  { %4632 = vrcp.f32 %v2081_v8  ;;  %vm3715_vm3 = vmpackc.low %vm2206_vm2, %vm2205_vm1 }
 0x382   :  { %4634 = vpow2.f32 %v3660_v9  ;;  %3716 = vmatmul.mubr.msk.bf16.gmra.mxu1 %vm3715_vm3, %v5041_v29  ;;  %v4621_v33 = vpop.eup %4620 }
 0x383   :  { %2447 = vmatprep.mubr.bf16.mxu1 %v5040_v61  ;;  %v4623_v10 = vpop.eup %4622  ;;  %v2082_v53 = vadd.f32 1.0, %v4621_v33 }
 0x384   :  { %vm2207_vm4 = vcmp.lt.f32.partialorder %v2175_v11, %v4623_v10 }
 0x385   :  { %4636 = vrcp.f32 %v2082_v53 }
 0x386   :  { %v4625_v40 = vpop.eup %4624 }
 0x387   :  { %v4627_v14 = vpop.eup %4626  ;;  %vm2208_vm5 = vcmp.lt.f32.partialorder %v2176_v13, %v4625_v40 }
 0x388   :  { %v2083_v15 = vadd.f32 1.0, %v4627_v14  ;;  %vm3717_vm6 = vmpackc.low %vm2208_vm5, %vm2207_vm4 }
 0x38a   :  { %4638 = vrcp.f32 %v2083_v15  ;;  %3718 = vmatmul.mubr.msk.bf16.gmra.mxu1 %vm3717_vm6, %v5041_v29  ;;  %v4629_v16 = vpop.eup %4628 }
 0x38b   :  { %2457 = vmatprep.mubr.bf16.mxu1 %v5040_v61  ;;  %v4631_v17 = vpop.eup %4630  ;;  %v2084_v18 = vadd.f32 1.0, %v4629_v16 }
 0x38c   :  { %vm2209_vm7 = vcmp.lt.f32.partialorder %v2177_v19, %v4631_v17 }
 0x38d   :  { %4640 = vrcp.f32 %v2084_v18 }
 0x38e   :  { %v4633_v22 = vpop.eup %4632 }
 0x38f   :  { %v4635_v24 = vpop.eup %4634  ;;  %vm2210_vm8 = vcmp.lt.f32.partialorder %v2178_v20, %v4633_v22 }
 0x390   :  { %v2085_v25 = vadd.f32 1.0, %v4635_v24  ;;  %vm3719_vm9 = vmpackc.low %vm2210_vm8, %vm2209_vm7 }
 0x392   :  { %4642 = vrcp.f32 %v2085_v25  ;;  %3720 = vmatmul.mubr.msk.bf16.gmra.mxu1 %vm3719_vm9, %v5041_v29  ;;  %v4637_v27 = vpop.eup %4636 }
 0x393   :  { %2467 = vmatprep.mubr.bf16.mxu1 %v5040_v61  ;;  %vm2211_vm10 = vcmp.lt.f32.partialorder %v2179_v42, %v4637_v27 }
 0x397   :  { %v4639_v28 = vpop.eup %4638 }
 0x398   :  { %vm2212_vm11 = vcmp.lt.f32.partialorder %v2180_v43, %v4639_v28 }
 0x399   :  { %vm3721_vm12 = vmpackc.low %vm2212_vm11, %vm2211_vm10 }
 0x39a   :  { %3722 = vmatmul.mubr.msk.bf16.gmra.mxu1 %vm3721_vm12, %v5041_v29  ;;  %v4641_v31 = vpop.eup %4640 }
 0x39b   :  { %2477 = vmatprep.mubr.bf16.mxu1 %v5040_v61  ;;  %vm2213_vm13 = vcmp.lt.f32.partialorder %v2181_v34, %v4641_v31 }
 0x39f   :  { %v4643_v35 = vpop.eup %4642 }
 0x3a0   :  { %vm2214_vm14 = vcmp.lt.f32.partialorder %v2182_v46, %v4643_v35  ;;  %v2873_v46 = vld [vmem:[#allocation10 + $0x200] sm:$0xff] }
 0x3a1   :  { %vm3723_vm15 = vmpackc.low %vm2214_vm14, %vm2213_vm13 }
 0x3a2   :  { %3724 = vmatmul.mubr.msk.bf16.gmra.mxu1 %vm3723_vm15, %v5041_v29 }
 0x3e7   :  { %v2329_v37 = vpop.f32.mrf.mxu1 }
 0x3e8   :  { %v2330_v38 = vadd.f32 %v2329_v37, %v5242_v36 }
 0x3e9   :  { %v2331_v50 = vpop.f32.mrf.mxu1 }
 0x3ea   :  { %v3725_v39 = vmul.f32 -1.442695, %v2330_v38  ;;  %v2332_v41 = vadd.f32 %v2331_v50, %v5244_v12 }
 0x3eb   :  { %v2333_v44 = vpop.f32.mrf.mxu1 }
 0x3ec   :  { %4644 = vpow2.f32 %v3725_v39  ;;  %v3726_v45 = vmul.f32 -1.442695, %v2332_v41  ;;  %v2334_v61 = vadd.f32 %v2333_v44, %v5242_v36  ;;  %v2874_v39 = vld [vmem:[#allocation10 + $0x208] sm:$0xff] }
 0x3ed   :  { %v2335_v47 = vpop.f32.mrf.mxu1 }
 0x3ee   :  { %4646 = vpow2.f32 %v3726_v45  ;;  %v3727_v48 = vmul.f32 -1.442695, %v2334_v61  ;;  %v2336_v52 = vadd.f32 %v2335_v47, %v5244_v12 }
 0x3ef   :  { %v2339_v49 = vpop.f32.mrf.mxu1 }
 0x3f0   :  { %4648 = vpow2.f32 %v3727_v48  ;;  %v3728_v29 = vmul.f32 -1.442695, %v2336_v52  ;;  %v2340_v51 = vadd.f32 %v2339_v49, %v5242_v36  ;;  %v5042_v48 = vmov 0.0   ;;  %v2875_v49 = vld [vmem:[#allocation10 + $0x210] sm:$0xff] }
 0x3f1   :  { %v2341_v2 = vpop.f32.mrf.mxu1 }
 0x3f2   :  { %4650 = vpow2.f32 %v3728_v29  ;;  %v3729_v54 = vmul.f32 -1.442695, %v2340_v51  ;;  %v2342_v21 = vadd.f32 %v2341_v2, %v5244_v12 }
 0x3f3   :  { %v2343_v23 = vpop.f32.mrf.mxu1 }
 0x3f4   :  { %4652 = vpow2.f32 %v3729_v54  ;;  %v3730_v55 = vmul.f32 -1.442695, %v2342_v21  ;;  %v2344_v57 = vadd.f32 %v2343_v23, %v5242_v36 }
 0x3f5   :  { %v2345_v58 = vpop.f32.mrf.mxu1 }
 0x3f6   :  { %4654 = vpow2.f32 %v3730_v55  ;;  %v3731_v56 = vmul.f32 -1.442695, %v2344_v57  ;;  %v2346_v59 = vadd.f32 %v2345_v58, %v5244_v12  ;;  %v2876_v57 = vld [vmem:[#allocation10 + $0x218] sm:$0xff] }
 0x3f8   :  { %4656 = vpow2.f32 %v3731_v56  ;;  %v3732_v26 = vmul.f32 -1.442695, %v2346_v59  ;;  %v2349_v60 = vpop.f32.mrf.mxu1 }
 0x3f9   :  { %v4645_v62 = vpop.eup %4644  ;;  %v2350_v30 = vadd.f32 %v2349_v60, %v5242_v36 }
 0x3fa   :  { %v2680_v63 = vadd.f32 1.0, %v4645_v62  ;;  %4658 = vpow2.f32 %v3732_v26  ;;  %v2351_v0 = vpop.f32.mrf.mxu1 }
 0x3fb   :  { %v4647_v1 = vpop.eup %4646  ;;  %v3733_v3 = vmul.f32 -1.442695, %v2350_v30  ;;  %v2352_v4 = vadd.f32 %v2351_v0, %v5244_v12 }
 0x3fc   :  { %4660 = vrcp.f32 %v2680_v63  ;;  %v2681_v5 = vadd.f32 1.0, %v4647_v1  ;;  %v2353_v6 = vpop.f32.mrf.mxu1  ;;  %v2877_v63 = vld [vmem:[#allocation10 + $0x220] sm:$0xff] }
 0x3fd   :  { %v4649_v7 = vpop.eup %4648  ;;  %4662 = vpow2.f32 %v3733_v3  ;;  %v3734_v32 = vmul.f32 -1.442695, %v2352_v4  ;;  %v2354_v8 = vadd.f32 %v2353_v6, %v5242_v36 }
 0x3fe   :  { %4664 = vrcp.f32 %v2681_v5  ;;  %v2682_v9 = vadd.f32 1.0, %v4649_v7  ;;  %v2355_v33 = vpop.f32.mrf.mxu1 }
 0x3ff   :  { %v4651_v10 = vpop.eup %4650  ;;  %4666 = vpow2.f32 %v3734_v32  ;;  %v3735_v53 = vmul.f32 -1.442695, %v2354_v8  ;;  %v2356_v11 = vadd.f32 %v2355_v33, %v5244_v12  ;;  %v2878_v32 = vld [vmem:[#allocation10 + $0x228] sm:$0xff] }
 0x400   :  { %4668 = vrcp.f32 %v2682_v9  ;;  %v2683_v13 = vadd.f32 1.0, %v4651_v10  ;;  %v2359_v40 = vpop.f32.mrf.mxu1 }
 0x401   :  { %v4653_v14 = vpop.eup %4652  ;;  %4670 = vpow2.f32 %v3735_v53  ;;  %v3736_v15 = vmul.f32 -1.442695, %v2356_v11  ;;  %v2360_v16 = vadd.f32 %v2359_v40, %v5242_v36  ;;  %v2879_v40 = vld [vmem:[#allocation10 + $0x230] sm:$0xff] }
 0x402   :  { %4672 = vrcp.f32 %v2683_v13  ;;  %v2684_v17 = vadd.f32 1.0, %v4653_v14  ;;  %v2361_v18 = vpop.f32.mrf.mxu1 }
 0x403   :  { %v4655_v19 = vpop.eup %4654  ;;  %4674 = vpow2.f32 %v3736_v15  ;;  %v3737_v20 = vmul.f32 -1.442695, %v2360_v16  ;;  %v2362_v22 = vadd.f32 %v2361_v18, %v5244_v12 }
 0x404   :  { %4676 = vrcp.f32 %v2684_v17  ;;  %v2685_v24 = vadd.f32 1.0, %v4655_v19  ;;  %v2363_v25 = vpop.f32.mrf.mxu1 }
 0x405   :  { %v4657_v27 = vpop.eup %4656  ;;  %4678 = vpow2.f32 %v3737_v20  ;;  %v3738_v42 = vmul.f32 -1.442695, %v2362_v22  ;;  %v2364_v43 = vadd.f32 %v2363_v25, %v5242_v36  ;;  %v2880_v22 = vld [vmem:[#allocation10 + $0x238] sm:$0xff] }
 0x406   :  { %4680 = vrcp.f32 %v2685_v24  ;;  %v2686_v28 = vadd.f32 1.0, %v4657_v27  ;;  %v2365_v31 = vpop.f32.mrf.mxu1 }
 0x407   :  { %v4659_v34 = vpop.eup %4658  ;;  %4682 = vpow2.f32 %v3738_v42  ;;  %v3739_v35 = vmul.f32 -1.442695, %v2364_v43  ;;  %v2366_v37 = vadd.f32 %v2365_v31, %v5244_v12 }
 0x408   :  { %4684 = vrcp.f32 %v2686_v28  ;;  %v2687_v38 = vadd.f32 1.0, %v4659_v34 }
 0x409   :  { %v4661_v50 = vpop.eup %4660  ;;  %4686 = vpow2.f32 %v3739_v35  ;;  %v3740_v41 = vmul.f32 -1.442695, %v2366_v37  ;;  %v2369_v44 = vpop.f32.mrf.mxu1  ;;  %v2881_v37 = vld [vmem:[#allocation10 + $0x240] sm:$0xff] }
 0x40a   :  { %v4663_v45 = vpop.eup %4662  ;;  %vm2937_vm0 = vcmp.lt.f32.partialorder %v2873_v46, %v4661_v50  ;;  %4688 = vrcp.f32 %v2687_v38  ;;  %v2370_v61 = vadd.f32 %v2369_v44, %v5242_v36 }
 0x40b   :  { %v4665_v47 = vpop.eup %4664  ;;  %v3789_v52 = vsel %vm2937_vm0, 1.0, %v5042_v48  ;;  %v2688_v29 = vadd.f32 1.0, %v4663_v45  ;;  %4690 = vpow2.f32 %v3740_v41  ;;  %v2371_v51 = vpop.f32.mrf.mxu1  ;;  %v2882_v45 = vld [vmem:[#allocation10 + $0x248] sm:$0xff] }
 0x40c   :  { %v4667_v2 = vpop.eup %4666  ;;  %3225 = vst [vmem:[#allocation11] sm:$0xff] %v3789_v52  ;;  %vm2938_vm1 = vcmp.lt.f32.partialorder %v2874_v39, %v4665_v47  ;;  %v3741_v54 = vmul.f32 -1.442695, %v2370_v61  ;;  %v2372_v21 = vadd.f32 %v2371_v51, %v5244_v12 }
 0x40d   :  { %v4669_v23 = vpop.eup %4668  ;;  %v3790_v55 = vsel %vm2938_vm1, 1.0, %v5042_v48  ;;  %4692 = vrcp.f32 %v2688_v29  ;;  %v2689_v58 = vadd.f32 1.0, %v4667_v2  ;;  %v2373_v56 = vpop.f32.mrf.mxu1  ;;  %v2883_v2 = vld [vmem:[#allocation10 + $0x250] sm:$0xff] }
 0x40e   :  { %v4671_v59 = vpop.eup %4670  ;;  %3226 = vst [vmem:[#allocation11 + $0x8] sm:$0xff] %v3790_v55  ;;  %vm2939_vm2 = vcmp.lt.f32.partialorder %v2875_v49, %v4669_v23  ;;  %4694 = vpow2.f32 %v3741_v54  ;;  %v3742_v26 = vmul.f32 -1.442695, %v2372_v21  ;;  %v2374_v60 = vadd.f32 %v2373_v56, %v5242_v36 }
 0x40f   :  { %v4673_v62 = vpop.eup %4672  ;;  %v3791_v30 = vsel %vm2939_vm2, 1.0, %v5042_v48  ;;  %4696 = vrcp.f32 %v2689_v58  ;;  %v2690_v0 = vadd.f32 1.0, %v4671_v59  ;;  %v2375_v1 = vpop.f32.mrf.mxu1  ;;  %v2884_v59 = vld [vmem:[#allocation10 + $0x258] sm:$0xff] }
 0x410   :  { %v4675_v3 = vpop.eup %4674  ;;  %3227 = vst [vmem:[#allocation11 + $0x10] sm:$0xff] %v3791_v30  ;;  %vm2940_vm3 = vcmp.lt.f32.partialorder %v2876_v57, %v4673_v62  ;;  %4698 = vpow2.f32 %v3742_v26  ;;  %v3743_v4 = vmul.f32 -1.442695, %v2374_v60  ;;  %v2376_v5 = vadd.f32 %v2375_v1, %v5244_v12 }
 0x411   :  { %v4677_v6 = vpop.eup %4676  ;;  %v3792_v7 = vsel %vm2940_vm3, 1.0, %v5042_v48  ;;  %4700 = vrcp.f32 %v2690_v0  ;;  %v2691_v8 = vadd.f32 1.0, %v4675_v3  ;;  %v2379_v9 = vpop.f32.mrf.mxu1  ;;  %v2885_v3 = vld [vmem:[#allocation10 + $0x260] sm:$0xff] }
 0x412   :  { %v4679_v33 = vpop.eup %4678  ;;  %3228 = vst [vmem:[#allocation11 + $0x18] sm:$0xff] %v3792_v7  ;;  %vm2941_vm4 = vcmp.lt.f32.partialorder %v2877_v63, %v4677_v6  ;;  %4702 = vpow2.f32 %v3743_v4  ;;  %v3744_v10 = vmul.f32 -1.442695, %v2376_v5  ;;  %v2380_v53 = vadd.f32 %v2379_v9, %v5242_v36 }
 0x413   :  { %v4681_v11 = vpop.eup %4680  ;;  %v3793_v13 = vsel %vm2941_vm4, 1.0, %v5042_v48  ;;  %4704 = vrcp.f32 %v2691_v8  ;;  %v2692_v14 = vadd.f32 1.0, %v4679_v33  ;;  %v2381_v15 = vpop.f32.mrf.mxu1  ;;  %v2886_v33 = vld [vmem:[#allocation10 + $0x268] sm:$0xff] }
 0x414   :  { %v4683_v16 = vpop.eup %4682  ;;  %3229 = vst [vmem:[#allocation11 + $0x20] sm:$0xff] %v3793_v13  ;;  %vm2942_vm5 = vcmp.lt.f32.partialorder %v2878_v32, %v4681_v11  ;;  %4706 = vpow2.f32 %v3744_v10  ;;  %v3745_v17 = vmul.f32 -1.442695, %v2380_v53  ;;  %v2382_v18 = vadd.f32 %v2381_v15, %v5244_v12 }
 0x415   :  { %v4685_v19 = vpop.eup %4684  ;;  %v3794_v20 = vsel %vm2942_vm5, 1.0, %v5042_v48  ;;  %4708 = vrcp.f32 %v2692_v14  ;;  %v2693_v24 = vadd.f32 1.0, %v4683_v16  ;;  %v2383_v25 = vpop.f32.mrf.mxu1  ;;  %v2887_v16 = vld [vmem:[#allocation10 + $0x270] sm:$0xff] }
 0x416   :  { %v4687_v27 = vpop.eup %4686  ;;  %3230 = vst [vmem:[#allocation11 + $0x28] sm:$0xff] %v3794_v20  ;;  %vm2943_vm6 = vcmp.lt.f32.partialorder %v2879_v40, %v4685_v19  ;;  %4710 = vpow2.f32 %v3745_v17  ;;  %v3746_v42 = vmul.f32 -1.442695, %v2382_v18  ;;  %v2384_v43 = vadd.f32 %v2383_v25, %v5242_v36 }
 0x417   :  { %v4689_v28 = vpop.eup %4688  ;;  %v3795_v31 = vsel %vm2943_vm6, 1.0, %v5042_v48  ;;  %4712 = vrcp.f32 %v2693_v24  ;;  %v2694_v34 = vadd.f32 1.0, %v4687_v27  ;;  %v2385_v46 = vpop.f32.mrf.mxu1  ;;  %v2888_v27 = vld [vmem:[#allocation10 + $0x278] sm:$0xff] }
 0x418   :  { %v4691_v35 = vpop.eup %4690  ;;  %3231 = vst [vmem:[#allocation11 + $0x30] sm:$0xff] %v3795_v31  ;;  %vm2944_vm7 = vcmp.lt.f32.partialorder %v2880_v22, %v4689_v28  ;;  %4714 = vpow2.f32 %v3746_v42  ;;  %v3747_v38 = vmul.f32 -1.442695, %v2384_v43  ;;  %v2386_v50 = vadd.f32 %v2385_v46, %v5244_v12 }
 0x419   :  { %v3796_v39 = vsel %vm2944_vm7, 1.0, %v5042_v48  ;;  %4716 = vrcp.f32 %v2694_v34  ;;  %v2695_v41 = vadd.f32 1.0, %v4691_v35 }
 0x41a   :  { %v4693_v44 = vpop.eup %4692  ;;  %3232 = vst [vmem:[#allocation11 + $0x38] sm:$0xff] %v3796_v39  ;;  %4718 = vpow2.f32 %v3747_v38  ;;  %v3748_v61 = vmul.f32 -1.442695, %v2386_v50  ;;  %v2389_v47 = vpop.f32.mrf.mxu1  ;;  %v2889_v39 = vld [vmem:[#allocation10 + $0x280] sm:$0xff] }
 0x41b   :  { %v4695_v52 = vpop.eup %4694  ;;  %vm2945_vm8 = vcmp.lt.f32.partialorder %v2881_v37, %v4693_v44  ;;  %4720 = vrcp.f32 %v2695_v41  ;;  %v2390_v49 = vadd.f32 %v2389_v47, %v5242_v36 }
 0x41c   :  { %v4697_v29 = vpop.eup %4696  ;;  %v3797_v51 = vsel %vm2945_vm8, 1.0, %v5042_v48  ;;  %v2696_v54 = vadd.f32 1.0, %v4695_v52  ;;  %4722 = vpow2.f32 %v3748_v61  ;;  %v2391_v21 = vpop.f32.mrf.mxu1 }
 0x41d   :  { %v4699_v23 = vpop.eup %4698  ;;  %3233 = vst [vmem:[#allocation11 + $0x40] sm:$0xff] %v3797_v51  ;;  %vm2946_vm9 = vcmp.lt.f32.partialorder %v2882_v45, %v4697_v29  ;;  %v3749_v55 = vmul.f32 -1.442695, %v2390_v49  ;;  %v2392_v57 = vadd.f32 %v2391_v21, %v5244_v12  ;;  %v2890_v49 = vld [vmem:[#allocation10 + $0x288] sm:$0xff] }
 0x41e   :  { %v4701_v58 = vpop.eup %4700  ;;  %v3798_v56 = vsel %vm2946_vm9, 1.0, %v5042_v48  ;;  %4724 = vrcp.f32 %v2696_v54  ;;  %v2697_v26 = vadd.f32 1.0, %v4699_v23  ;;  %v2393_v60 = vpop.f32.mrf.mxu1 }
 0x41f   :  { %v4703_v62 = vpop.eup %4702  ;;  %3234 = vst [vmem:[#allocation11 + $0x48] sm:$0xff] %v3798_v56  ;;  %vm2947_vm10 = vcmp.lt.f32.partialorder %v2883_v2, %v4701_v58  ;;  %4726 = vpow2.f32 %v3749_v55  ;;  %v3750_v30 = vmul.f32 -1.442695, %v2392_v57  ;;  %v2394_v63 = vadd.f32 %v2393_v60, %v5242_v36  ;;  %v2891_v55 = vld [vmem:[#allocation10 + $0x290] sm:$0xff] }
 0x420   :  { %v4705_v0 = vpop.eup %4704  ;;  %v3799_v1 = vsel %vm2947_vm10, 1.0, %v5042_v48  ;;  %4728 = vrcp.f32 %v2697_v26  ;;  %v2698_v4 = vadd.f32 1.0, %v4703_v62  ;;  %v2395_v5 = vpop.f32.mrf.mxu1 }
 0x421   :  { %v4707_v6 = vpop.eup %4706  ;;  %3235 = vst [vmem:[#allocation11 + $0x50] sm:$0xff] %v3799_v1  ;;  %vm2948_vm11 = vcmp.lt.f32.partialorder %v2884_v59, %v4705_v0  ;;  %4730 = vpow2.f32 %v3750_v30  ;;  %v3751_v7 = vmul.f32 -1.442695, %v2394_v63  ;;  %v2396_v32 = vadd.f32 %v2395_v5, %v5244_v12  ;;  %v2892_v30 = vld [vmem:[#allocation10 + $0x298] sm:$0xff] }
 0x422   :  { %v4709_v8 = vpop.eup %4708  ;;  %v3800_v9 = vsel %vm2948_vm11, 1.0, %v5042_v48  ;;  %4732 = vrcp.f32 %v2698_v4  ;;  %v2699_v10 = vadd.f32 1.0, %v4707_v6  ;;  %v2399_v53 = vpop.f32.mrf.mxu1 }
 0x423   :  { %v4711_v11 = vpop.eup %4710  ;;  %3236 = vst [vmem:[#allocation11 + $0x58] sm:$0xff] %v3800_v9  ;;  %vm2949_vm12 = vcmp.lt.f32.partialorder %v2885_v3, %v4709_v8  ;;  %4734 = vpow2.f32 %v3751_v7  ;;  %v3752_v13 = vmul.f32 -1.442695, %v2396_v32  ;;  %v2400_v40 = vadd.f32 %v2399_v53, %v5242_v36  ;;  %v2893_v7 = vld [vmem:[#allocation10 + $0x2a0] sm:$0xff] }
 0x424   :  { %v4713_v14 = vpop.eup %4712  ;;  %v3801_v15 = vsel %vm2949_vm12, 1.0, %v5042_v48  ;;  %4736 = vrcp.f32 %v2699_v10  ;;  %v2700_v17 = vadd.f32 1.0, %v4711_v11  ;;  %v2401_v18 = vpop.f32.mrf.mxu1 }
 0x425   :  { %v4715_v19 = vpop.eup %4714  ;;  %3237 = vst [vmem:[#allocation11 + $0x60] sm:$0xff] %v3801_v15  ;;  %vm2950_vm13 = vcmp.lt.f32.partialorder %v2886_v33, %v4713_v14  ;;  %4738 = vpow2.f32 %v3752_v13  ;;  %v3753_v20 = vmul.f32 -1.442695, %v2400_v40  ;;  %v2402_v22 = vadd.f32 %v2401_v18, %v5244_v12  ;;  %v2894_v13 = vld [vmem:[#allocation10 + $0x2a8] sm:$0xff] }
 0x426   :  { %v4717_v24 = vpop.eup %4716  ;;  %v3802_v25 = vsel %vm2950_vm13, 1.0, %v5042_v48  ;;  %4740 = vrcp.f32 %v2700_v17  ;;  %v2701_v42 = vadd.f32 1.0, %v4715_v19  ;;  %v2403_v43 = vpop.f32.mrf.mxu1 }
 0x427   :  { %v4719_v28 = vpop.eup %4718  ;;  %3238 = vst [vmem:[#allocation11 + $0x68] sm:$0xff] %v3802_v25  ;;  %vm2951_vm14 = vcmp.lt.f32.partialorder %v2887_v16, %v4717_v24  ;;  %4742 = vpow2.f32 %v3753_v20  ;;  %v3754_v31 = vmul.f32 -1.442695, %v2402_v22  ;;  %v2404_v34 = vadd.f32 %v2403_v43, %v5242_v36  ;;  %v2895_v20 = vld [vmem:[#allocation10 + $0x2b0] sm:$0xff] }
 0x428   :  { %v4721_v46 = vpop.eup %4720  ;;  %v3803_v35 = vsel %vm2951_vm14, 1.0, %v5042_v48  ;;  %4744 = vrcp.f32 %v2701_v42  ;;  %v2702_v37 = vadd.f32 1.0, %v4719_v28  ;;  %v2405_v38 = vpop.f32.mrf.mxu1 }
 0x429   :  { %v4723_v50 = vpop.eup %4722  ;;  %3239 = vst [vmem:[#allocation11 + $0x70] sm:$0xff] %v3803_v35  ;;  %vm2952_vm15 = vcmp.lt.f32.partialorder %v2888_v27, %v4721_v46  ;;  %4746 = vpow2.f32 %v3754_v31  ;;  %v3755_v41 = vmul.f32 -1.442695, %v2404_v34  ;;  %v2406_v44 = vadd.f32 %v2405_v38, %v5244_v12  ;;  %v2896_v31 = vld [vmem:[#allocation10 + $0x2b8] sm:$0xff] }
 0x42a   :  { %v3804_v45 = vsel %vm2952_vm15, 1.0, %v5042_v48  ;;  %4748 = vrcp.f32 %v2702_v37  ;;  %v2703_v61 = vadd.f32 1.0, %v4723_v50  ;;  %v2409_v47 = vpop.f32.mrf.mxu1 }
 0x42b   :  { %v4725_v52 = vpop.eup %4724  ;;  %3240 = vst [vmem:[#allocation11 + $0x78] sm:$0xff] %v3804_v45  ;;  %4750 = vpow2.f32 %v3755_v41  ;;  %v3756_v29 = vmul.f32 -1.442695, %v2406_v44  ;;  %v2410_v51 = vadd.f32 %v2409_v47, %v5242_v36 }
 0x42c   :  { %v4727_v2 = vpop.eup %4726  ;;  %vm2953_vm0 = vcmp.lt.f32.partialorder %v2889_v39, %v4725_v52  ;;  %4752 = vrcp.f32 %v2703_v61  ;;  %v2411_v54 = vpop.f32.mrf.mxu1  ;;  %v2897_v61 = vld [vmem:[#allocation10 + $0x2c0] sm:$0xff] }
 0x42d   :  { %v4729_v21 = vpop.eup %4728  ;;  %v3805_v23 = vsel %vm2953_vm0, 1.0, %v5042_v48  ;;  %v2704_v57 = vadd.f32 1.0, %v4727_v2  ;;  %4754 = vpow2.f32 %v3756_v29  ;;  %v3757_v58 = vmul.f32 -1.442695, %v2410_v51 }
 0x42e   :  { %v4731_v56 = vpop.eup %4730  ;;  %3241 = vst [vmem:[#allocation11 + $0x80] sm:$0xff] %v3805_v23  ;;  %vm2954_vm1 = vcmp.lt.f32.partialorder %v2890_v49, %v4729_v21  ;;  %v2412_v59 = vadd.f32 %v2411_v54, %v5244_v12  ;;  %v2413_v26 = vpop.f32.mrf.mxu1  ;;  %v2898_v54 = vld [vmem:[#allocation10 + $0x2c8] sm:$0xff] }
 0x42f   :  { %v4733_v60 = vpop.eup %4732  ;;  %v3806_v62 = vsel %vm2954_vm1, 1.0, %v5042_v48  ;;  %4756 = vrcp.f32 %v2704_v57  ;;  %v2705_v63 = vadd.f32 1.0, %v4731_v56  ;;  %v2414_v0 = vadd.f32 %v2413_v26, %v5242_v36  ;;  %v2899_v26 = vld [vmem:[#allocation10 + $0x2d0] sm:$0xff] }
 0x430   :  { %v4735_v1 = vpop.eup %4734  ;;  %3242 = vst [vmem:[#allocation11 + $0x88] sm:$0xff] %v3806_v62  ;;  %vm2955_vm2 = vcmp.lt.f32.partialorder %v2891_v55, %v4733_v60  ;;  %4758 = vpow2.f32 %v3757_v58  ;;  %v3758_v3 = vmul.f32 -1.442695, %v2412_v59  ;;  %v2415_v4 = vpop.f32.mrf.mxu1 }
 0x431   :  { %v4737_v5 = vpop.eup %4736  ;;  %v3807_v6 = vsel %vm2955_vm2, 1.0, %v5042_v48  ;;  %4760 = vrcp.f32 %v2705_v63  ;;  %v2706_v32 = vadd.f32 1.0, %v4735_v1  ;;  %v3759_v8 = vmul.f32 -1.442695, %v2414_v0 }
 0x432   :  { %v4739_v9 = vpop.eup %4738  ;;  %3243 = vst [vmem:[#allocation11 + $0x90] sm:$0xff] %v3807_v6  ;;  %vm2956_vm3 = vcmp.lt.f32.partialorder %v2892_v30, %v4737_v5  ;;  %4762 = vpow2.f32 %v3758_v3  ;;  %v2416_v33 = vadd.f32 %v2415_v4, %v5244_v12  ;;  %v2419_v10 = vpop.f32.mrf.mxu1  ;;  %v2900_v4 = vld [vmem:[#allocation10 + $0x2d8] sm:$0xff] }
 0x433   :  { %v4741_v53 = vpop.eup %4740  ;;  %v3808_v11 = vsel %vm2956_vm3, 1.0, %v5042_v48  ;;  %4764 = vrcp.f32 %v2706_v32  ;;  %v2707_v40 = vadd.f32 1.0, %v4739_v9  ;;  %v2420_v14 = vadd.f32 %v2419_v10, %v5242_v36  ;;  %v2901_v10 = vld [vmem:[#allocation10 + $0x2e0] sm:$0xff] }
 0x434   :  { %v4743_v15 = vpop.eup %4742  ;;  %3244 = vst [vmem:[#allocation11 + $0x98] sm:$0xff] %v3808_v11  ;;  %vm2957_vm4 = vcmp.lt.f32.partialorder %v2893_v7, %v4741_v53  ;;  %4766 = vpow2.f32 %v3759_v8  ;;  %v3760_v16 = vmul.f32 -1.442695, %v2416_v33  ;;  %v2421_v17 = vpop.f32.mrf.mxu1 }
 0x435   :  { %v4745_v18 = vpop.eup %4744  ;;  %v3809_v19 = vsel %vm2957_vm4, 1.0, %v5042_v48  ;;  %4768 = vrcp.f32 %v2707_v40  ;;  %v2708_v22 = vadd.f32 1.0, %v4743_v15  ;;  %v3761_v24 = vmul.f32 -1.442695, %v2420_v14 }
 0x436   :  { %v4747_v25 = vpop.eup %4746  ;;  %3245 = vst [vmem:[#allocation11 + $0xa0] sm:$0xff] %v3809_v19  ;;  %vm2958_vm5 = vcmp.lt.f32.partialorder %v2894_v13, %v4745_v18  ;;  %4770 = vpow2.f32 %v3760_v16  ;;  %v2422_v27 = vadd.f32 %v2421_v17, %v5244_v12  ;;  %v2423_v42 = vpop.f32.mrf.mxu1  ;;  %v2902_v17 = vld [vmem:[#allocation10 + $0x2e8] sm:$0xff] }
 0x437   :  { %v4749_v43 = vpop.eup %4748  ;;  %v3810_v28 = vsel %vm2958_vm5, 1.0, %v5042_v48  ;;  %4772 = vrcp.f32 %v2708_v22  ;;  %v2709_v34 = vadd.f32 1.0, %v4747_v25  ;;  %v2424_v46 = vadd.f32 %v2423_v42, %v5242_v36  ;;  %v2903_v42 = vld [vmem:[#allocation10 + $0x2f0] sm:$0xff] }
 0x438   :  { %v4751_v35 = vpop.eup %4750  ;;  %3246 = vst [vmem:[#allocation11 + $0xa8] sm:$0xff] %v3810_v28  ;;  %vm2959_vm6 = vcmp.lt.f32.partialorder %v2895_v20, %v4749_v43  ;;  %4774 = vpow2.f32 %v3761_v24  ;;  %v3762_v37 = vmul.f32 -1.442695, %v2422_v27  ;;  %v2425_v38 = vpop.f32.mrf.mxu1 }
 0x439   :  { %v4753_v50 = vpop.eup %4752  ;;  %v3811_v39 = vsel %vm2959_vm6, 1.0, %v5042_v48  ;;  %4776 = vrcp.f32 %v2709_v34  ;;  %v2710_v41 = vadd.f32 1.0, %v4751_v35  ;;  %v3763_v44 = vmul.f32 -1.442695, %v2424_v46 }
 0x43a   :  { %v4755_v45 = vpop.eup %4754  ;;  %3247 = vst [vmem:[#allocation11 + $0xb0] sm:$0xff] %v3811_v39  ;;  %vm2960_vm7 = vcmp.lt.f32.partialorder %v2896_v31, %v4753_v50  ;;  %4778 = vpow2.f32 %v3762_v37  ;;  %v2426_v47 = vadd.f32 %v2425_v38, %v5244_v12  ;;  %v2429_v52 = vpop.f32.mrf.mxu1  ;;  %v2904_v38 = vld [vmem:[#allocation10 + $0x2f8] sm:$0xff] }
 0x43b   :  { %v3812_v49 = vsel %vm2960_vm7, 1.0, %v5042_v48  ;;  %4780 = vrcp.f32 %v2710_v41  ;;  %v2711_v29 = vadd.f32 1.0, %v4755_v45  ;;  %v2430_v51 = vadd.f32 %v2429_v52, %v5242_v36 }
 0x43c   :  { %v4757_v2 = vpop.eup %4756  ;;  %3248 = vst [vmem:[#allocation11 + $0xb8] sm:$0xff] %v3812_v49  ;;  %4782 = vpow2.f32 %v3763_v44  ;;  %v3764_v21 = vmul.f32 -1.442695, %v2426_v47  ;;  %v2431_v23 = vpop.f32.mrf.mxu1 }
 0x43d   :  { %v4759_v55 = vpop.eup %4758  ;;  %vm2961_vm8 = vcmp.lt.f32.partialorder %v2897_v61, %v4757_v2  ;;  %4784 = vrcp.f32 %v2711_v29  ;;  %v3765_v57 = vmul.f32 -1.442695, %v2430_v51  ;;  %v2432_v58 = vadd.f32 %v2431_v23, %v5244_v12  ;;  %v2905_v51 = vld [vmem:[#allocation10 + $0x300] sm:$0xff] }
 0x43e   :  { %v4761_v56 = vpop.eup %4760  ;;  %v3813_v59 = vsel %vm2961_vm8, 1.0, %v5042_v48  ;;  %v2712_v60 = vadd.f32 1.0, %v4759_v55  ;;  %4786 = vpow2.f32 %v3764_v21  ;;  %v2433_v62 = vpop.f32.mrf.mxu1 }
 0x43f   :  { %v4763_v30 = vpop.eup %4762  ;;  %3249 = vst [vmem:[#allocation11 + $0xc0] sm:$0xff] %v3813_v59  ;;  %vm2962_vm9 = vcmp.lt.f32.partialorder %v2898_v54, %v4761_v56  ;;  %4788 = vpow2.f32 %v3765_v57  ;;  %v3766_v63 = vmul.f32 -1.442695, %v2432_v58  ;;  %v2434_v0 = vadd.f32 %v2433_v62, %v5242_v36  ;;  %v2906_v56 = vld [vmem:[#allocation10 + $0x308] sm:$0xff] }
 0x440   :  { %v4765_v1 = vpop.eup %4764  ;;  %v3814_v3 = vsel %vm2962_vm9, 1.0, %v5042_v48  ;;  %4790 = vrcp.f32 %v2712_v60  ;;  %v2713_v5 = vadd.f32 1.0, %v4763_v30  ;;  %v2435_v6 = vpop.f32.mrf.mxu1 }
 0x441   :  { %v4767_v7 = vpop.eup %4766  ;;  %3250 = vst [vmem:[#allocation11 + $0xc8] sm:$0xff] %v3814_v3  ;;  %vm2963_vm10 = vcmp.lt.f32.partialorder %v2899_v26, %v4765_v1  ;;  %4792 = vpow2.f32 %v3766_v63  ;;  %v3767_v32 = vmul.f32 -1.442695, %v2434_v0  ;;  %v2436_v8 = vadd.f32 %v2435_v6, %v5244_v12  ;;  %v2907_v1 = vld [vmem:[#allocation10 + $0x310] sm:$0xff] }
 0x442   :  { %v4769_v9 = vpop.eup %4768  ;;  %v3815_v33 = vsel %vm2963_vm10, 1.0, %v5042_v48  ;;  %4794 = vrcp.f32 %v2713_v5  ;;  %v2714_v53 = vadd.f32 1.0, %v4767_v7  ;;  %v2439_v11 = vpop.f32.mrf.mxu1 }
 0x443   :  { %v4771_v13 = vpop.eup %4770  ;;  %3251 = vst [vmem:[#allocation11 + $0xd0] sm:$0xff] %v3815_v33  ;;  %vm2964_vm11 = vcmp.lt.f32.partialorder %v2900_v4, %v4769_v9  ;;  %4796 = vpow2.f32 %v3767_v32  ;;  %v3768_v40 = vmul.f32 -1.442695, %v2436_v8  ;;  %v2440_v14 = vadd.f32 %v2439_v11, %v5242_v36  ;;  %v2908_v9 = vld [vmem:[#allocation10 + $0x318] sm:$0xff] }
 0x444   :  { %v4773_v15 = vpop.eup %4772  ;;  %v3816_v16 = vsel %vm2964_vm11, 1.0, %v5042_v48  ;;  %4798 = vrcp.f32 %v2714_v53  ;;  %v2715_v18 = vadd.f32 1.0, %v4771_v13  ;;  %v2441_v19 = vpop.f32.mrf.mxu1 }
 0x445   :  { %v4775_v20 = vpop.eup %4774  ;;  %3252 = vst [vmem:[#allocation11 + $0xd8] sm:$0xff] %v3816_v16  ;;  %vm2965_vm12 = vcmp.lt.f32.partialorder %v2901_v10, %v4773_v15  ;;  %4800 = vpow2.f32 %v3768_v40  ;;  %v3769_v22 = vmul.f32 -1.442695, %v2440_v14  ;;  %v2442_v24 = vadd.f32 %v2441_v19, %v5244_v12  ;;  %v2909_v15 = vld [vmem:[#allocation10 + $0x320] sm:$0xff] }
 0x446   :  { %v4777_v25 = vpop.eup %4776  ;;  %v3817_v27 = vsel %vm2965_vm12, 1.0, %v5042_v48  ;;  %4802 = vrcp.f32 %v2715_v18  ;;  %v2716_v43 = vadd.f32 1.0, %v4775_v20  ;;  %v2443_v28 = vpop.f32.mrf.mxu1 }
 0x447   :  { %v4779_v31 = vpop.eup %4778  ;;  %3253 = vst [vmem:[#allocation11 + $0xe0] sm:$0xff] %v3817_v27  ;;  %vm2966_vm13 = vcmp.lt.f32.partialorder %v2902_v17, %v4777_v25  ;;  %4804 = vpow2.f32 %v3769_v22  ;;  %v3770_v34 = vmul.f32 -1.442695, %v2442_v24  ;;  %v2444_v46 = vadd.f32 %v2443_v28, %v5242_v36  ;;  %v2910_v25 = vld [vmem:[#allocation10 + $0x328] sm:$0xff] }
 0x448   :  { %v4781_v35 = vpop.eup %4780  ;;  %v3818_v37 = vsel %vm2966_vm13, 1.0, %v5042_v48  ;;  %4806 = vrcp.f32 %v2716_v43  ;;  %v2717_v50 = vadd.f32 1.0, %v4779_v31  ;;  %v2445_v39 = vpop.f32.mrf.mxu1 }
 0x449   :  { %v4783_v41 = vpop.eup %4782  ;;  %3254 = vst [vmem:[#allocation11 + $0xe8] sm:$0xff] %v3818_v37  ;;  %vm2967_vm14 = vcmp.lt.f32.partialorder %v2903_v42, %v4781_v35  ;;  %4808 = vpow2.f32 %v3770_v34  ;;  %v3771_v44 = vmul.f32 -1.442695, %v2444_v46  ;;  %v2446_v45 = vadd.f32 %v2445_v39, %v5244_v12  ;;  %v2911_v35 = vld [vmem:[#allocation10 + $0x330] sm:$0xff] }
 0x44a   :  { %v4785_v61 = vpop.eup %4784  ;;  %v3819_v47 = vsel %vm2967_vm14, 1.0, %v5042_v48  ;;  %4810 = vrcp.f32 %v2717_v50  ;;  %v2718_v52 = vadd.f32 1.0, %v4783_v41  ;;  %v2449_v49 = vpop.f32.mrf.mxu1 }
 0x44b   :  { %v4787_v29 = vpop.eup %4786  ;;  %3255 = vst [vmem:[#allocation11 + $0xf0] sm:$0xff] %v3819_v47  ;;  %vm2968_vm15 = vcmp.lt.f32.partialorder %v2904_v38, %v4785_v61  ;;  %4812 = vpow2.f32 %v3771_v44  ;;  %v3772_v2 = vmul.f32 -1.442695, %v2446_v45  ;;  %v2450_v54 = vadd.f32 %v2449_v49, %v5242_v36  ;;  %v2912_v61 = vld [vmem:[#allocation10 + $0x338] sm:$0xff] }
 0x44c   :  { %v4789_v21 = vpop.eup %4788  ;;  %v3820_v23 = vsel %vm2968_vm15, 1.0, %v5042_v48  ;;  %4814 = vrcp.f32 %v2718_v52  ;;  %v2719_v55 = vadd.f32 1.0, %v4787_v29  ;;  %v2451_v57 = vpop.f32.mrf.mxu1  ;;  %v2913_v29 = vld [vmem:[#allocation10 + $0x340] sm:$0xff] }
 0x44d   :  { %v4791_v58 = vpop.eup %4790  ;;  %3256 = vst [vmem:[#allocation11 + $0xf8] sm:$0xff] %v3820_v23  ;;  %v2720_v59 = vadd.f32 1.0, %v4789_v21  ;;  %4816 = vpow2.f32 %v3772_v2  ;;  %v3773_v26 = vmul.f32 -1.442695, %v2450_v54  ;;  %v2452_v60 = vadd.f32 %v2451_v57, %v5244_v12 }
 0x44e   :  { %v4793_v62 = vpop.eup %4792  ;;  %vm2969_vm0 = vcmp.lt.f32.partialorder %v2905_v51, %v4791_v58  ;;  %4818 = vrcp.f32 %v2719_v55  ;;  %v2453_v30 = vpop.f32.mrf.mxu1  ;;  %v2914_v58 = vld [vmem:[#allocation10 + $0x348] sm:$0xff] }
 0x44f   :  { %v4795_v63 = vpop.eup %4794  ;;  %v3821_v0 = vsel %vm2969_vm0, 1.0, %v5042_v48  ;;  %4820 = vrcp.f32 %v2720_v59  ;;  %v2721_v3 = vadd.f32 1.0, %v4793_v62  ;;  %v3774_v4 = vmul.f32 -1.442695, %v2452_v60 }
 0x450   :  { %v4797_v5 = vpop.eup %4796  ;;  %3257 = vst [vmem:[#allocation11 + $0x100] sm:$0xff] %v3821_v0  ;;  %vm2970_vm1 = vcmp.lt.f32.partialorder %v2906_v56, %v4795_v63  ;;  %4822 = vpow2.f32 %v3773_v26  ;;  %v2454_v6 = vadd.f32 %v2453_v30, %v5242_v36  ;;  %v2455_v7 = vpop.f32.mrf.mxu1  ;;  %v2915_v0 = vld [vmem:[#allocation10 + $0x350] sm:$0xff] }
 0x451   :  { %v4799_v32 = vpop.eup %4798  ;;  %v3822_v8 = vsel %vm2970_vm1, 1.0, %v5042_v48  ;;  %4824 = vrcp.f32 %v2721_v3  ;;  %v2722_v33 = vadd.f32 1.0, %v4797_v5  ;;  %v2456_v10 = vadd.f32 %v2455_v7, %v5244_v12 }
 0x452   :  { %v4801_v53 = vpop.eup %4800  ;;  %3258 = vst [vmem:[#allocation11 + $0x108] sm:$0xff] %v3822_v8  ;;  %vm2971_vm2 = vcmp.lt.f32.partialorder %v2907_v1, %v4799_v32  ;;  %4826 = vpow2.f32 %v3774_v4  ;;  %v3775_v11 = vmul.f32 -1.442695, %v2454_v6  ;;  %v2459_v13 = vpop.f32.mrf.mxu1 }
 0x453   :  { %v4803_v40 = vpop.eup %4802  ;;  %v3823_v14 = vsel %vm2971_vm2, 1.0, %v5042_v48  ;;  %4828 = vrcp.f32 %v2722_v33  ;;  %v2723_v16 = vadd.f32 1.0, %v4801_v53  ;;  %v3776_v17 = vmul.f32 -1.442695, %v2456_v10 }
 0x454   :  { %v4805_v18 = vpop.eup %4804  ;;  %3259 = vst [vmem:[#allocation11 + $0x110] sm:$0xff] %v3823_v14  ;;  %vm2972_vm3 = vcmp.lt.f32.partialorder %v2908_v9, %v4803_v40  ;;  %4830 = vpow2.f32 %v3775_v11  ;;  %v2460_v19 = vadd.f32 %v2459_v13, %v5242_v36  ;;  %v2461_v20 = vpop.f32.mrf.mxu1  ;;  %v2916_v9 = vld [vmem:[#allocation10 + $0x358] sm:$0xff] }
 0x455   :  { %v4807_v22 = vpop.eup %4806  ;;  %v3824_v24 = vsel %vm2972_vm3, 1.0, %v5042_v48  ;;  %4832 = vrcp.f32 %v2723_v16  ;;  %v2724_v27 = vadd.f32 1.0, %v4805_v18  ;;  %v2462_v42 = vadd.f32 %v2461_v20, %v5244_v12 }
 0x456   :  { %v4809_v43 = vpop.eup %4808  ;;  %3260 = vst [vmem:[#allocation11 + $0x118] sm:$0xff] %v3824_v24  ;;  %vm2973_vm4 = vcmp.lt.f32.partialorder %v2909_v15, %v4807_v22  ;;  %4834 = vpow2.f32 %v3776_v17  ;;  %v3777_v28 = vmul.f32 -1.442695, %v2460_v19  ;;  %v2463_v31 = vpop.f32.mrf.mxu1  ;;  %v2917_v15 = vld [vmem:[#allocation10 + $0x360] sm:$0xff] }
 0x457   :  { %v4811_v34 = vpop.eup %4810  ;;  %v3825_v46 = vsel %vm2973_vm4, 1.0, %v5042_v48  ;;  %4836 = vrcp.f32 %v2724_v27  ;;  %v2725_v37 = vadd.f32 1.0, %v4809_v43  ;;  %v3778_v38 = vmul.f32 -1.442695, %v2462_v42 }
 0x458   :  { %v4813_v50 = vpop.eup %4812  ;;  %3261 = vst [vmem:[#allocation11 + $0x120] sm:$0xff] %v3825_v46  ;;  %vm2974_vm5 = vcmp.lt.f32.partialorder %v2910_v25, %v4811_v34  ;;  %4838 = vpow2.f32 %v3777_v28  ;;  %v2464_v39 = vadd.f32 %v2463_v31, %v5242_v36  ;;  %v2465_v41 = vpop.f32.mrf.mxu1  ;;  %v2918_v25 = vld [vmem:[#allocation10 + $0x368] sm:$0xff] }
 0x459   :  { %v4815_v44 = vpop.eup %4814  ;;  %v3826_v45 = vsel %vm2974_vm5, 1.0, %v5042_v48  ;;  %4840 = vrcp.f32 %v2725_v37  ;;  %v2726_v47 = vadd.f32 1.0, %v4813_v50  ;;  %v2466_v52 = vadd.f32 %v2465_v41, %v5244_v12 }
 0x45a   :  { %v4817_v49 = vpop.eup %4816  ;;  %3262 = vst [vmem:[#allocation11 + $0x128] sm:$0xff] %v3826_v45  ;;  %vm2975_vm6 = vcmp.lt.f32.partialorder %v2911_v35, %v4815_v44  ;;  %4842 = vpow2.f32 %v3778_v38  ;;  %v3779_v51 = vmul.f32 -1.442695, %v2464_v39  ;;  %v2469_v2 = vpop.f32.mrf.mxu1  ;;  %v2919_v35 = vld [vmem:[#allocation10 + $0x370] sm:$0xff] }
 0x45b   :  { %v4819_v54 = vpop.eup %4818  ;;  %v3827_v21 = vsel %vm2975_vm6, 1.0, %v5042_v48  ;;  %4844 = vrcp.f32 %v2726_v47  ;;  %v2727_v23 = vadd.f32 1.0, %v4817_v49  ;;  %v3780_v55 = vmul.f32 -1.442695, %v2466_v52 }
 0x45c   :  { %v4821_v57 = vpop.eup %4820  ;;  %3263 = vst [vmem:[#allocation11 + $0x130] sm:$0xff] %v3827_v21  ;;  %vm2976_vm7 = vcmp.lt.f32.partialorder %v2912_v61, %v4819_v54  ;;  %4846 = vpow2.f32 %v3779_v51  ;;  %v2470_v56 = vadd.f32 %v2469_v2, %v5242_v36  ;;  %v2471_v59 = vpop.f32.mrf.mxu1  ;;  %v2920_v61 = vld [vmem:[#allocation10 + $0x378] sm:$0xff] }
 0x45d   :  { %v4823_v26 = vpop.eup %4822  ;;  %v3828_v60 = vsel %vm2976_vm7, 1.0, %v5042_v48  ;;  %vm2977_vm8 = vcmp.lt.f32.partialorder %v2913_v29, %v4821_v57  ;;  %4848 = vrcp.f32 %v2727_v23  ;;  %v2472_v62 = vadd.f32 %v2471_v59, %v5244_v12  ;;  %v2921_v23 = vld [vmem:[#allocation10 + $0x380] sm:$0xff]  ;;  %v2922_v59 = vld [vmem:[#allocation10 + $0x388] sm:$0xff] }
 0x45e   :  { %v4825_v30 = vpop.eup %4824  ;;  %3264 = vst [vmem:[#allocation11 + $0x138] sm:$0xff] %v3828_v60  ;;  %v3829_v63 = vsel %vm2977_vm8, 1.0, %v5042_v48  ;;  %v2728_v1 = vadd.f32 1.0, %v4823_v26  ;;  %4850 = vpow2.f32 %v3780_v55  ;;  %v3781_v3 = vmul.f32 -1.442695, %v2470_v56  ;;  %v2473_v4 = vpop.f32.mrf.mxu1 }
 0x45f   :  { %v4827_v5 = vpop.eup %4826  ;;  %3265 = vst [vmem:[#allocation11 + $0x140] sm:$0xff] %v3829_v63  ;;  %vm2978_vm9 = vcmp.lt.f32.partialorder %v2914_v58, %v4825_v30  ;;  %v3782_v6 = vmul.f32 -1.442695, %v2472_v62  ;;  %v2474_v7 = vadd.f32 %v2473_v4, %v5242_v36  ;;  %v2923_v62 = vld [vmem:[#allocation10 + $0x390] sm:$0xff] }
 0x460   :  { %v4829_v32 = vpop.eup %4828  ;;  %v3830_v8 = vsel %vm2978_vm9, 1.0, %v5042_v48  ;;  %4852 = vrcp.f32 %v2728_v1  ;;  %v2729_v33 = vadd.f32 1.0, %v4827_v5  ;;  %v2475_v10 = vpop.f32.mrf.mxu1 }
 0x461   :  { %v4831_v53 = vpop.eup %4830  ;;  %3266 = vst [vmem:[#allocation11 + $0x148] sm:$0xff] %v3830_v8  ;;  %vm2979_vm10 = vcmp.lt.f32.partialorder %v2915_v0, %v4829_v32  ;;  %4854 = vpow2.f32 %v3781_v3  ;;  %v3783_v11 = vmul.f32 -1.442695, %v2474_v7  ;;  %v2476_v13 = vadd.f32 %v2475_v10, %v5244_v12  ;;  %v2924_v3 = vld [vmem:[#allocation10 + $0x398] sm:$0xff]  ;;  %v2925_v32 = vld [vmem:[#allocation10 + $0x3a0] sm:$0xff] }
 0x462   :  { %v4833_v40 = vpop.eup %4832  ;;  %v3831_v14 = vsel %vm2979_vm10, 1.0, %v5042_v48  ;;  %4856 = vrcp.f32 %v2729_v33  ;;  %v2730_v16 = vadd.f32 1.0, %v4831_v53  ;;  %v2479_v17 = vpop.f32.mrf.mxu1  ;;  %v2926_v53 = vld [vmem:[#allocation10 + $0x3a8] sm:$0xff] }
 0x463   :  { %v4835_v18 = vpop.eup %4834  ;;  %3267 = vst [vmem:[#allocation11 + $0x150] sm:$0xff] %v3831_v14  ;;  %vm2980_vm11 = vcmp.lt.f32.partialorder %v2916_v9, %v4833_v40  ;;  %4858 = vpow2.f32 %v3782_v6  ;;  %v3784_v19 = vmul.f32 -1.442695, %v2476_v13  ;;  %v2480_v20 = vadd.f32 %v2479_v17, %v5242_v36 }
 0x464   :  { %v4837_v22 = vpop.eup %4836  ;;  %v3832_v24 = vsel %vm2980_vm11, 1.0, %v5042_v48  ;;  %4860 = vrcp.f32 %v2730_v16  ;;  %v2731_v27 = vadd.f32 1.0, %v4835_v18  ;;  %v2481_v42 = vpop.f32.mrf.mxu1 }
 0x465   :  { %v4839_v43 = vpop.eup %4838  ;;  %3268 = vst [vmem:[#allocation11 + $0x158] sm:$0xff] %v3832_v24  ;;  %vm2981_vm12 = vcmp.lt.f32.partialorder %v2917_v15, %v4837_v22  ;;  %4862 = vpow2.f32 %v3783_v11  ;;  %v3785_v28 = vmul.f32 -1.442695, %v2480_v20  ;;  %v2482_v31 = vadd.f32 %v2481_v42, %v5244_v12  ;;  %v2927_v15 = vld [vmem:[#allocation10 + $0x3b0] sm:$0xff]  ;;  %v2928_v20 = vld [vmem:[#allocation10 + $0x3b8] sm:$0xff] }
 0x466   :  { %v4841_v34 = vpop.eup %4840  ;;  %v3833_v46 = vsel %vm2981_vm12, 1.0, %v5042_v48  ;;  %4864 = vrcp.f32 %v2731_v27  ;;  %v2732_v37 = vadd.f32 1.0, %v4839_v43  ;;  %v2483_v38 = vpop.f32.mrf.mxu1 }
 0x467   :  { %v4843_v50 = vpop.eup %4842  ;;  %3269 = vst [vmem:[#allocation11 + $0x160] sm:$0xff] %v3833_v46  ;;  %vm2982_vm13 = vcmp.lt.f32.partialorder %v2918_v25, %v4841_v34  ;;  %4866 = vpow2.f32 %v3784_v19  ;;  %v3786_v39 = vmul.f32 -1.442695, %v2482_v31  ;;  %v2484_v41 = vadd.f32 %v2483_v38, %v5242_v36 }
 0x468   :  { %v4845_v44 = vpop.eup %4844  ;;  %v3834_v45 = vsel %vm2982_vm13, 1.0, %v5042_v48  ;;  %4868 = vrcp.f32 %v2732_v37  ;;  %v2733_v47 = vadd.f32 1.0, %v4843_v50  ;;  %v2485_v52 = vpop.f32.mrf.mxu1  ;;  %v2931_v50 = vld [vmem:[#allocation10 + $0x3d0] sm:$0xff] }
 0x469   :  { %v4847_v49 = vpop.eup %4846  ;;  %3270 = vst [vmem:[#allocation11 + $0x168] sm:$0xff] %v3834_v45  ;;  %vm2983_vm14 = vcmp.lt.f32.partialorder %v2919_v35, %v4845_v44  ;;  %4870 = vpow2.f32 %v3785_v28  ;;  %v3787_v29 = vmul.f32 -1.442695, %v2484_v41  ;;  %v2486_v51 = vadd.f32 %v2485_v52, %v5244_v12  ;;  %v2929_v28 = vld [vmem:[#allocation10 + $0x3c0] sm:$0xff]  ;;  %v2930_v35 = vld [vmem:[#allocation10 + $0x3c8] sm:$0xff]  ;;  %v2932_v44 = vld [vmem:[#allocation10 + $0x3d8] sm:$0xff] }
 0x46a   :  { %v4849_v2 = vpop.eup %4848  ;;  %v3835_v54 = vsel %vm2983_vm14, 1.0, %v5042_v48  ;;  %4872 = vrcp.f32 %v2733_v47  ;;  %v2734_v21 = vadd.f32 1.0, %v4847_v49  ;;  %v2933_v47 = vld [vmem:[#allocation10 + $0x3e0] sm:$0xff] }
 0x46b   :  { %v4851_v36 = vpop.eup %4850  ;;  %3271 = vst [vmem:[#allocation11 + $0x170] sm:$0xff] %v3835_v54  ;;  %vm2984_vm15 = vcmp.lt.f32.partialorder %v2920_v61, %v4849_v2  ;;  %4874 = vpow2.f32 %v3786_v39  ;;  %v3788_v55 = vmul.f32 -1.442695, %v2486_v51  ;;  %v2935_v54 = vld [vmem:[#allocation10 + $0x3f0] sm:$0xff] }
 0x46c   :  { %v3836_v57 = vsel %vm2984_vm15, 1.0, %v5042_v48  ;;  %4876 = vrcp.f32 %v2734_v21  ;;  %v2735_v58 = vadd.f32 1.0, %v4851_v36 }
 0x46d   :  { %v4853_v56 = vpop.eup %4852  ;;  %3272 = vst [vmem:[#allocation11 + $0x178] sm:$0xff] %v3836_v57  ;;  %4878 = vpow2.f32 %v3787_v29  ;;  %v2934_v29 = vld [vmem:[#allocation10 + $0x3e8] sm:$0xff] }
 0x46e   :  { %v4855_v12 = vpop.eup %4854  ;;  %vm2985_vm0 = vcmp.lt.f32.partialorder %v2921_v23, %v4853_v56  ;;  %4880 = vrcp.f32 %v2735_v58  ;;  %v2936_v23 = vld [vmem:[#allocation10 + $0x3f8] sm:$0xff] }
 0x46f   :  { %v4857_v26 = vpop.eup %4856  ;;  %v3837_v60 = vsel %vm2985_vm0, 1.0, %v5042_v48  ;;  %v2736_v30 = vadd.f32 1.0, %v4855_v12  ;;  %4882 = vpow2.f32 %v3788_v55 }
 0x470   :  { %v4859_v63 = vpop.eup %4858  ;;  %3273 = vst [vmem:[#allocation11 + $0x180] sm:$0xff] %v3837_v60  ;;  %vm2986_vm1 = vcmp.lt.f32.partialorder %v2922_v59, %v4857_v26 }
 0x471   :  { %v4861_v0 = vpop.eup %4860  ;;  %v3838_v1 = vsel %vm2986_vm1, 1.0, %v5042_v48  ;;  %4884 = vrcp.f32 %v2736_v30  ;;  %v2737_v4 = vadd.f32 1.0, %v4859_v63 }
 0x472   :  { %v4863_v5 = vpop.eup %4862  ;;  %3274 = vst [vmem:[#allocation11 + $0x188] sm:$0xff] %v3838_v1  ;;  %vm2987_vm2 = vcmp.lt.f32.partialorder %v2923_v62, %v4861_v0 }
 0x473   :  { %v4865_v6 = vpop.eup %4864  ;;  %v3839_v7 = vsel %vm2987_vm2, 1.0, %v5042_v48  ;;  %4886 = vrcp.f32 %v2737_v4  ;;  %v2738_v8 = vadd.f32 1.0, %v4863_v5 }
 0x474   :  { %v4867_v9 = vpop.eup %4866  ;;  %3275 = vst [vmem:[#allocation11 + $0x190] sm:$0xff] %v3839_v7  ;;  %vm2988_vm3 = vcmp.lt.f32.partialorder %v2924_v3, %v4865_v6 }
 0x475   :  { %v4869_v33 = vpop.eup %4868  ;;  %v3840_v10 = vsel %vm2988_vm3, 1.0, %v5042_v48  ;;  %4888 = vrcp.f32 %v2738_v8  ;;  %v2739_v11 = vadd.f32 1.0, %v4867_v9 }
 0x476   :  { %v4871_v13 = vpop.eup %4870  ;;  %3276 = vst [vmem:[#allocation11 + $0x198] sm:$0xff] %v3840_v10  ;;  %vm2989_vm4 = vcmp.lt.f32.partialorder %v2925_v32, %v4869_v33 }
 0x477   :  { %v4873_v40 = vpop.eup %4872  ;;  %v3841_v14 = vsel %vm2989_vm4, 1.0, %v5042_v48  ;;  %4890 = vrcp.f32 %v2739_v11  ;;  %v2740_v16 = vadd.f32 1.0, %v4871_v13 }
 0x478   :  { %v4875_v17 = vpop.eup %4874  ;;  %3277 = vst [vmem:[#allocation11 + $0x1a0] sm:$0xff] %v3841_v14  ;;  %vm2990_vm5 = vcmp.lt.f32.partialorder %v2926_v53, %v4873_v40 }
 0x479   :  { %v4877_v18 = vpop.eup %4876  ;;  %v3842_v19 = vsel %vm2990_vm5, 1.0, %v5042_v48  ;;  %4892 = vrcp.f32 %v2740_v16  ;;  %v2741_v22 = vadd.f32 1.0, %v4875_v17 }
 0x47a   :  { %v4879_v24 = vpop.eup %4878  ;;  %3278 = vst [vmem:[#allocation11 + $0x1a8] sm:$0xff] %v3842_v19  ;;  %vm2991_vm6 = vcmp.lt.f32.partialorder %v2927_v15, %v4877_v18 }
 0x47b   :  { %v4881_v25 = vpop.eup %4880  ;;  %v3843_v27 = vsel %vm2991_vm6, 1.0, %v5042_v48  ;;  %4894 = vrcp.f32 %v2741_v22  ;;  %v2742_v42 = vadd.f32 1.0, %v4879_v24 }
 0x47c   :  { %v4883_v43 = vpop.eup %4882  ;;  %3279 = vst [vmem:[#allocation11 + $0x1b0] sm:$0xff] %v3843_v27  ;;  %vm2992_vm7 = vcmp.lt.f32.partialorder %v2928_v20, %v4881_v25 }
 0x47d   :  { %v3844_v31 = vsel %vm2992_vm7, 1.0, %v5042_v48  ;;  %4896 = vrcp.f32 %v2742_v42  ;;  %v2743_v34 = vadd.f32 1.0, %v4883_v43 }
 0x47e   :  { %v4885_v46 = vpop.eup %4884  ;;  %3280 = vst [vmem:[#allocation11 + $0x1b8] sm:$0xff] %v3844_v31 }
 0x47f   :  { %vm2993_vm8 = vcmp.lt.f32.partialorder %v2929_v28, %v4885_v46  ;;  %4898 = vrcp.f32 %v2743_v34 }
 0x480   :  { %v4887_v37 = vpop.eup %4886  ;;  %v3845_v38 = vsel %vm2993_vm8, 1.0, %v5042_v48 }
 0x481   :  { %3281 = vst [vmem:[#allocation11 + $0x1c0] sm:$0xff] %v3845_v38  ;;  %vm2994_vm9 = vcmp.lt.f32.partialorder %v2930_v35, %v4887_v37 }
 0x482   :  { %v4889_v39 = vpop.eup %4888  ;;  %v3846_v41 = vsel %vm2994_vm9, 1.0, %v5042_v48 }
 0x483   :  { %3282 = vst [vmem:[#allocation11 + $0x1c8] sm:$0xff] %v3846_v41  ;;  %vm2995_vm10 = vcmp.lt.f32.partialorder %v2931_v50, %v4889_v39 }
 0x484   :  { %v4891_v45 = vpop.eup %4890  ;;  %v3847_v61 = vsel %vm2995_vm10, 1.0, %v5042_v48 }
 0x485   :  { %3283 = vst [vmem:[#allocation11 + $0x1d0] sm:$0xff] %v3847_v61  ;;  %vm2996_vm11 = vcmp.lt.f32.partialorder %v2932_v44, %v4891_v45 }
 0x486   :  { %v4893_v52 = vpop.eup %4892  ;;  %v3848_v49 = vsel %vm2996_vm11, 1.0, %v5042_v48 }
 0x487   :  { %3284 = vst [vmem:[#allocation11 + $0x1d8] sm:$0xff] %v3848_v49  ;;  %vm2997_vm12 = vcmp.lt.f32.partialorder %v2933_v47, %v4893_v52 }
 0x488   :  { %v4895_v51 = vpop.eup %4894  ;;  %v3849_v2 = vsel %vm2997_vm12, 1.0, %v5042_v48 }
 0x489   :  { %3285 = vst [vmem:[#allocation11 + $0x1e0] sm:$0xff] %v3849_v2  ;;  %vm2998_vm13 = vcmp.lt.f32.partialorder %v2934_v29, %v4895_v51 }
 0x48a   :  { %v4897_v21 = vpop.eup %4896  ;;  %v3850_v36 = vsel %vm2998_vm13, 1.0, %v5042_v48 }
 0x48b   :  { %3286 = vst [vmem:[#allocation11 + $0x1e8] sm:$0xff] %v3850_v36  ;;  %vm2999_vm14 = vcmp.lt.f32.partialorder %v2935_v54, %v4897_v21 }
 0x48c   :  { %v4899_v55 = vpop.eup %4898  ;;  %v3851_v57 = vsel %vm2999_vm14, 1.0, %v5042_v48 }
 0x48d   :  { %3287 = vst [vmem:[#allocation11 + $0x1f0] sm:$0xff] %v3851_v57  ;;  %vm3000_vm15 = vcmp.lt.f32.partialorder %v2936_v23, %v4899_v55 }
 0x48e   :  { %v3852_v58 = vsel %vm3000_vm15, 1.0, %v5042_v48 }
 0x48f   :  { %3288 = vst [vmem:[#allocation11 + $0x1f8] sm:$0xff] %v3852_v58 }
 0x490   :  { %5012 = shalt.err (!%p5009_p1)
}
 0x491   :  { %3300 = dma.vmem_to_hbm [thread:$0]  %s3295_s9, 8192, %s5562_s7, [#allocation4], %s5034_s1, %s5034_s1, %s5035_s16  }
 0x492   :  { %5027 = dma.done.wait [#allocation4], 8192  }
 0x493   :  { %5028 = vsyncadd [#allocation4], 4294959104 }
 0x494   :  { %3304 = vsyncpa [#allocation3], 1 }
 0x495   :  { %3305 = vsyncpa [#allocation6], 1 }
 0x496   :  { %3306 = vsyncpa [#allocation9], 1 }
 0x497   :  { %3307 = vsyncpa [#allocation4], 1 }

</bundles_post_ra>
